<compile_context>
chip_gen: v5e
topology: v5e:2x2
jax: 0.10.0
libtpu: 0.0.40
codegen_flags: <defaults>
</compile_context>

<pallas_src>
import jax
import jax.numpy as jnp
from jax.experimental import pallas as pl
from jax.experimental.pallas import tpu as pltpu

D_IN = 784
D_HID = 512
D_LAT = 20
D_HEAD = 256          # fused fc2/fc3 head, lane-padded
MU_OFF = 0            # mu  lives at lanes [0, 20)
LV_OFF = 128          # logvar lives at lanes [128, 148) -> vreg-aligned slice

_MAX_TB = 1024        # per-tile footprint ~20-24 MiB -> fits v7x's 64 MiB VMEM


def _round_up(n, m):
    return ((n + m - 1) // m) * m


def _pick_tile(B):
    if B <= 16:
        return _round_up(B, 8)
    # >= 2 batch tiles so the "parallel" grid axis can use both v7x TensorCores.
    return min(_MAX_TB, _round_up((B + 1) // 2, 8))


def _vae_kernel(x_ref, eps_ref,
                w1_ref, b1_ref, w23_ref, b23_ref,
                w4_ref, b4_ref, w5_ref, b5_ref,
                recon_ref, mu_ref, logvar_ref):
    # x arrives bf16; weights are stored bf16; accumulation + elementwise math f32.
    x = x_ref[...]

    # encode: fc1 -> relu
    h1 = jnp.dot(x, w1_ref[...], preferred_element_type=jnp.float32) + b1_ref[...]
    h1 = jnp.maximum(h1, 0.0)

    # fused, lane-padded fc2/fc3 head: one [512, 256] matmul
    mulv = (jnp.dot(h1.astype(jnp.bfloat16), w23_ref[...],
                    preferred_element_type=jnp.float32) + b23_ref[...])
    mu = mulv[:, MU_OFF:MU_OFF + D_LAT]
    logvar = mulv[:, LV_OFF:LV_OFF + D_LAT]     # 128-lane-aligned slice: no rotate

    # reparameterize: z = mu + eps * exp(0.5 * logvar)
    z = mu + eps_ref[...] * jnp.exp(0.5 * logvar)

    # decode: fc4 -> relu -> fc5 -> sigmoid
    h2 = (jnp.dot(z.astype(jnp.bfloat16), w4_ref[...],
                  preferred_element_type=jnp.float32) + b4_ref[...])
    h2 = jnp.maximum(h2, 0.0)
    logits = (jnp.dot(h2.astype(jnp.bfloat16), w5_ref[...],
                      preferred_element_type=jnp.float32) + b5_ref[...])

    recon_ref[...] = jax.nn.sigmoid(logits).astype(recon_ref.dtype)   # bf16 store
    mu_ref[...] = mu
    logvar_ref[...] = logvar


@jax.jit
def vae_forward(x, eps, params):
    """x: [B, 784], eps: [B, 20] f32 -> (recon [B,784] bf16, mu [B,20], logvar [B,20])."""
    B = x.shape[0]
    x = x.astype(jnp.bfloat16)            # no-op if caller already passes bf16
    eps = eps.astype(jnp.float32)

    tb = _pick_tile(B)
    Bp = _round_up(B, tb)
    if Bp != B:
        x = jnp.pad(x, ((0, Bp - B), (0, 0)))
        eps = jnp.pad(eps, ((0, Bp - B), (0, 0)))

    grid = (Bp // tb,)

    def batch_spec(d):
        return pl.BlockSpec((tb, d), lambda i: (i, 0))

    def resident(shape):   # weights/biases stay VMEM-resident across grid steps
        return pl.BlockSpec(shape, lambda i: (0, 0))

    args = (x, eps,
            params["w1"], params["b1"],
            params["w23"], params["b23"],
            params["w4"], params["b4"],
            params["w5"], params["b5"])

    in_specs = [
        batch_spec(D_IN),             # x (bf16)
        batch_spec(D_LAT),            # eps (f32)
        resident((D_IN, D_HID)),      # w1 (bf16)
        resident((1, D_HID)),         # b1
        resident((D_HID, D_HEAD)),    # w23 (fused, lane-padded, bf16)
        resident((1, D_HEAD)),        # b23
        resident((D_LAT, D_HID)),     # w4 (bf16)
        resident((1, D_HID)),         # b4
        resident((D_HID, D_IN)),      # w5 (bf16)
        resident((1, D_IN)),          # b5
    ]
    out_specs = (batch_spec(D_IN), batch_spec(D_LAT), batch_spec(D_LAT))
    out_shapes = (jax.ShapeDtypeStruct((Bp, D_IN), jnp.bfloat16),
                  jax.ShapeDtypeStruct((Bp, D_LAT), jnp.float32),
                  jax.ShapeDtypeStruct((Bp, D_LAT), jnp.float32))

    weight_bytes = sum(int(a.size) * a.dtype.itemsize for a in params.values())
    act_bytes = (Bp * D_IN * 2            # x in, bf16
                 + Bp * D_LAT * 4         # eps in, f32
                 + Bp * D_IN * 2          # recon out, bf16
                 + 2 * Bp * D_LAT * 4)    # mu + logvar out, f32
    cost = pl.CostEstimate(
        flops=2 * Bp * (D_IN * D_HID + D_HID * D_HEAD + D_LAT * D_HID + D_HID * D_IN),
        transcendentals=Bp * (D_LAT + 2 * D_IN),   # exp (reparam) + sigmoid ~ exp+recip
        bytes_accessed=weight_bytes + act_bytes,
    )

    recon, mu, logvar = pl.pallas_call(
        _vae_kernel,
        out_shape=out_shapes,
        grid=grid,
        in_specs=in_specs,
        out_specs=out_specs,
        compiler_params=pltpu.CompilerParams(
            dimension_semantics=("parallel",),   # shard batch tiles across TCs
            vmem_limit_bytes=48 << 20,           # safe on v5e/v6e (128 MiB) and v7x (64 MiB)
        ),
        cost_estimate=cost,
    )(*args)

    return recon[:B], mu[:B], logvar[:B]


def init_params(key):
    """nn.Linear-style init; weights pre-transposed to [in, out]; fc2/fc3 fused
    into a lane-padded [512, 256] head (mu @ cols [0,20), logvar @ cols [128,148));
    weights stored bf16, biases f32."""
    def linear(k, d_in, d_out):
        kw, kb = jax.random.split(k)
        bound = 1.0 / jnp.sqrt(d_in)
        w = jax.random.uniform(kw, (d_in, d_out), jnp.float32, -bound, bound)
        b = jax.random.uniform(kb, (1, d_out), jnp.float32, -bound, bound)
        return w, b

    keys = jax.random.split(key, 5)
    w1, b1 = linear(keys[0], D_IN, D_HID)
    w2, b2 = linear(keys[1], D_HID, D_LAT)
    w3, b3 = linear(keys[2], D_HID, D_LAT)
    w4, b4 = linear(keys[3], D_LAT, D_HID)
    w5, b5 = linear(keys[4], D_HID, D_IN)

    w23 = jnp.zeros((D_HID, D_HEAD), jnp.float32)
    w23 = w23.at[:, MU_OFF:MU_OFF + D_LAT].set(w2)
    w23 = w23.at[:, LV_OFF:LV_OFF + D_LAT].set(w3)
    b23 = jnp.zeros((1, D_HEAD), jnp.float32)
    b23 = b23.at[:, MU_OFF:MU_OFF + D_LAT].set(b2)
    b23 = b23.at[:, LV_OFF:LV_OFF + D_LAT].set(b3)

    bf = lambda w: w.astype(jnp.bfloat16)
    return {
        "w1": bf(w1), "b1": b1,
        "w23": bf(w23), "b23": b23,
        "w4": bf(w4), "b4": b4,
        "w5": bf(w5), "b5": b5,
    }


def vae_forward_ref(x, eps, p):
    """Pure-JAX reference mirroring kernel numerics (bf16 MXU operands, f32 accum)."""
    dot = lambda a, w: jnp.dot(a.astype(jnp.bfloat16), w,
                               preferred_element_type=jnp.float32)
    h1 = jnp.maximum(dot(x, p["w1"]) + p["b1"], 0.0)
    mulv = dot(h1, p["w23"]) + p["b23"]
    mu = mulv[:, MU_OFF:MU_OFF + D_LAT]
    logvar = mulv[:, LV_OFF:LV_OFF + D_LAT]
    z = mu + eps * jnp.exp(0.5 * logvar)
    h2 = jnp.maximum(dot(z, p["w4"]) + p["b4"], 0.0)
    recon = jax.nn.sigmoid(dot(h2, p["w5"]) + p["b5"])
    return recon.astype(jnp.bfloat16), mu, logvar


if __name__ == "__main__":
    key = jax.random.PRNGKey(0)
    k_params, k_x, k_eps = jax.random.split(key, 3)

    # Small, module-consistent shapes: MNIST-like inputs in [0,1) (bf16 per the
    # perf review), eps = randn_like(mu) supplied explicitly as an input.
    B = 8
    params = init_params(k_params)
    x = jax.random.uniform(k_x, (B, D_IN), jnp.bfloat16)
    eps = jax.random.normal(k_eps, (B, D_LAT), jnp.float32)

    recon, mu, logvar = vae_forward(x, eps, params)
    jax.block_until_ready((recon, mu, logvar))

    r_ref, mu_ref, lv_ref = vae_forward_ref(x, eps, params)
    assert recon.shape == (B, D_IN) and recon.dtype == jnp.bfloat16
    assert mu.shape == (B, D_LAT) and logvar.shape == (B, D_LAT)
    assert jnp.allclose(recon.astype(jnp.float32), r_ref.astype(jnp.float32),
                        atol=2e-2, rtol=2e-2)
    assert jnp.allclose(mu, mu_ref, atol=2e-2, rtol=2e-2)
    assert jnp.allclose(logvar, lv_ref, atol=2e-2, rtol=2e-2)

    print("KERNEL_OK")
</pallas_src>

<mosaic_0001>
module attributes {stable_mosaic.version = 11 : i64} {
  func.func @_vae_kernel(%arg0: i32, %arg1: memref<8x784xbf16, #tpu.memory_space<vmem>>, %arg2: memref<8x20xf32, #tpu.memory_space<vmem>>, %arg3: memref<784x512xbf16, #tpu.memory_space<vmem>>, %arg4: memref<1x512xf32, #tpu.memory_space<vmem>>, %arg5: memref<512x256xbf16, #tpu.memory_space<vmem>>, %arg6: memref<1x256xf32, #tpu.memory_space<vmem>>, %arg7: memref<20x512xbf16, #tpu.memory_space<vmem>>, %arg8: memref<1x512xf32, #tpu.memory_space<vmem>>, %arg9: memref<512x784xbf16, #tpu.memory_space<vmem>>, %arg10: memref<1x784xf32, #tpu.memory_space<vmem>>, %arg11: memref<8x784xbf16, #tpu.memory_space<vmem>>, %arg12: memref<8x20xf32, #tpu.memory_space<vmem>>, %arg13: memref<8x20xf32, #tpu.memory_space<vmem>>) attributes {dimension_semantics = [#tpu.dimension_semantics<parallel>], iteration_bounds = array<i64: 1>, scalar_prefetch = 0 : i64, scratch_operands = 0 : i64, tpu.core_type = #tpu.core_type<tc>, window_params = [{transform_indices = @transform_0, window_bounds = array<i64: 8, 784>}, {transform_indices = @transform_1, window_bounds = array<i64: 8, 20>}, {pipeline_mode = #tpu.pipeline_mode<synchronous>, transform_indices = @transform_2, window_bounds = array<i64: 784, 512>}, {pipeline_mode = #tpu.pipeline_mode<synchronous>, transform_indices = @transform_3, window_bounds = array<i64: 1, 512>}, {pipeline_mode = #tpu.pipeline_mode<synchronous>, transform_indices = @transform_4, window_bounds = array<i64: 512, 256>}, {pipeline_mode = #tpu.pipeline_mode<synchronous>, transform_indices = @transform_5, window_bounds = array<i64: 1, 256>}, {pipeline_mode = #tpu.pipeline_mode<synchronous>, transform_indices = @transform_6, window_bounds = array<i64: 20, 512>}, {pipeline_mode = #tpu.pipeline_mode<synchronous>, transform_indices = @transform_7, window_bounds = array<i64: 1, 512>}, {pipeline_mode = #tpu.pipeline_mode<synchronous>, transform_indices = @transform_8, window_bounds = array<i64: 512, 784>}, {pipeline_mode = #tpu.pipeline_mode<synchronous>, transform_indices = @transform_9, window_bounds = array<i64: 1, 784>}, {transform_indices = @transform_10, window_bounds = array<i64: 8, 784>}, {transform_indices = @transform_11, window_bounds = array<i64: 8, 20>}, {transform_indices = @transform_12, window_bounds = array<i64: 8, 20>}]} {
    %c0 = arith.constant 0 : index
    %c0_0 = arith.constant 0 : index
    %0 = vector.load %arg1[%c0, %c0_0] : memref<8x784xbf16, #tpu.memory_space<vmem>>, vector<8x784xbf16>
    %c0_1 = arith.constant 0 : index
    %c0_2 = arith.constant 0 : index
    %1 = vector.load %arg3[%c0_1, %c0_2] : memref<784x512xbf16, #tpu.memory_space<vmem>>, vector<784x512xbf16>
    %cst = arith.constant dense<0.000000e+00> : vector<8x512xf32>
    %2 = tpu.matmul %0, %1, %cst {dimension_numbers = #tpu.dot_dimension_numbers<[1], [0], [0], [1], [0, 0, 1, 1], [], []>} : vector<8x784xbf16>, vector<784x512xbf16>, vector<8x512xf32> -> vector<8x512xf32>
    %c0_3 = arith.constant 0 : index
    %c0_4 = arith.constant 0 : index
    %3 = vector.load %arg4[%c0_3, %c0_4] : memref<1x512xf32, #tpu.memory_space<vmem>>, vector<1x512xf32>
    %4 = vector.broadcast %3 : vector<1x512xf32> to vector<8x512xf32>
    %5 = arith.addf %2, %4 : vector<8x512xf32>
    %cst_5 = arith.constant 0.000000e+00 : f32
    %6 = vector.broadcast %cst_5 : f32 to vector<8x512xf32>
    %7 = arith.maximumf %5, %6 : vector<8x512xf32>
    %8 = arith.truncf %7 : vector<8x512xf32> to vector<8x512xbf16>
    %c0_6 = arith.constant 0 : index
    %c0_7 = arith.constant 0 : index
    %9 = vector.load %arg5[%c0_6, %c0_7] : memref<512x256xbf16, #tpu.memory_space<vmem>>, vector<512x256xbf16>
    %cst_8 = arith.constant dense<0.000000e+00> : vector<8x256xf32>
    %10 = tpu.matmul %8, %9, %cst_8 {dimension_numbers = #tpu.dot_dimension_numbers<[1], [0], [0], [1], [0, 0, 1, 1], [], []>} : vector<8x512xbf16>, vector<512x256xbf16>, vector<8x256xf32> -> vector<8x256xf32>
    %c0_9 = arith.constant 0 : index
    %c0_10 = arith.constant 0 : index
    %11 = vector.load %arg6[%c0_9, %c0_10] : memref<1x256xf32, #tpu.memory_space<vmem>>, vector<1x256xf32>
    %12 = vector.broadcast %11 : vector<1x256xf32> to vector<8x256xf32>
    %13 = arith.addf %10, %12 : vector<8x256xf32>
    %14 = vector.extract_strided_slice %13 {offsets = [0, 0], sizes = [8, 20], strides = [1, 1]} : vector<8x256xf32> to vector<8x20xf32>
    %15 = vector.extract_strided_slice %13 {offsets = [0, 128], sizes = [8, 20], strides = [1, 1]} : vector<8x256xf32> to vector<8x20xf32>
    %c0_11 = arith.constant 0 : index
    %c0_12 = arith.constant 0 : index
    %16 = vector.load %arg2[%c0_11, %c0_12] : memref<8x20xf32, #tpu.memory_space<vmem>>, vector<8x20xf32>
    %cst_13 = arith.constant 5.000000e-01 : f32
    %17 = vector.broadcast %cst_13 : f32 to vector<8x20xf32>
    %18 = arith.mulf %17, %15 : vector<8x20xf32>
    %19 = math.exp %18 : vector<8x20xf32>
    %20 = arith.mulf %16, %19 : vector<8x20xf32>
    %21 = arith.addf %14, %20 : vector<8x20xf32>
    %22 = arith.truncf %21 : vector<8x20xf32> to vector<8x20xbf16>
    %c0_14 = arith.constant 0 : index
    %c0_15 = arith.constant 0 : index
    %23 = vector.load %arg7[%c0_14, %c0_15] : memref<20x512xbf16, #tpu.memory_space<vmem>>, vector<20x512xbf16>
    %cst_16 = arith.constant dense<0.000000e+00> : vector<8x512xf32>
    %24 = tpu.matmul %22, %23, %cst_16 {dimension_numbers = #tpu.dot_dimension_numbers<[1], [0], [0], [1], [0, 0, 1, 1], [], []>} : vector<8x20xbf16>, vector<20x512xbf16>, vector<8x512xf32> -> vector<8x512xf32>
    %c0_17 = arith.constant 0 : index
    %c0_18 = arith.constant 0 : index
    %25 = vector.load %arg8[%c0_17, %c0_18] : memref<1x512xf32, #tpu.memory_space<vmem>>, vector<1x512xf32>
    %26 = vector.broadcast %25 : vector<1x512xf32> to vector<8x512xf32>
    %27 = arith.addf %24, %26 : vector<8x512xf32>
    %cst_19 = arith.constant 0.000000e+00 : f32
    %28 = vector.broadcast %cst_19 : f32 to vector<8x512xf32>
    %29 = arith.maximumf %27, %28 : vector<8x512xf32>
    %30 = arith.truncf %29 : vector<8x512xf32> to vector<8x512xbf16>
    %c0_20 = arith.constant 0 : index
    %c0_21 = arith.constant 0 : index
    %31 = vector.load %arg9[%c0_20, %c0_21] : memref<512x784xbf16, #tpu.memory_space<vmem>>, vector<512x784xbf16>
    %cst_22 = arith.constant dense<0.000000e+00> : vector<8x784xf32>
    %32 = tpu.matmul %30, %31, %cst_22 {dimension_numbers = #tpu.dot_dimension_numbers<[1], [0], [0], [1], [0, 0, 1, 1], [], []>} : vector<8x512xbf16>, vector<512x784xbf16>, vector<8x784xf32> -> vector<8x784xf32>
    %c0_23 = arith.constant 0 : index
    %c0_24 = arith.constant 0 : index
    %33 = vector.load %arg10[%c0_23, %c0_24] : memref<1x784xf32, #tpu.memory_space<vmem>>, vector<1x784xf32>
    %34 = vector.broadcast %33 : vector<1x784xf32> to vector<8x784xf32>
    %35 = arith.addf %32, %34 : vector<8x784xf32>
    %36 = arith.negf %35 : vector<8x784xf32>
    %37 = math.exp %36 : vector<8x784xf32>
    %cst_25 = arith.constant 1.000000e+00 : f32
    %38 = vector.broadcast %cst_25 : f32 to vector<8x784xf32>
    %39 = arith.addf %38, %37 : vector<8x784xf32>
    %40 = arith.divf %38, %39 : vector<8x784xf32>
    %41 = arith.truncf %40 : vector<8x784xf32> to vector<8x784xbf16>
    %c0_26 = arith.constant 0 : index
    %c0_27 = arith.constant 0 : index
    %42 = vector.load %arg11[%c0_26, %c0_27] : memref<8x784xbf16, #tpu.memory_space<vmem>>, vector<8x784xbf16>
    tpu.vector_store %arg11[%c0_26, %c0_27], %41 {strides = array<i32>} : memref<8x784xbf16, #tpu.memory_space<vmem>>, vector<8x784xbf16>,
    %c0_28 = arith.constant 0 : index
    %c0_29 = arith.constant 0 : index
    %43 = vector.load %arg12[%c0_28, %c0_29] : memref<8x20xf32, #tpu.memory_space<vmem>>, vector<8x20xf32>
    tpu.vector_store %arg12[%c0_28, %c0_29], %14 {strides = array<i32>} : memref<8x20xf32, #tpu.memory_space<vmem>>, vector<8x20xf32>,
    %c0_30 = arith.constant 0 : index
    %c0_31 = arith.constant 0 : index
    %44 = vector.load %arg13[%c0_30, %c0_31] : memref<8x20xf32, #tpu.memory_space<vmem>>, vector<8x20xf32>
    tpu.vector_store %arg13[%c0_30, %c0_31], %15 {strides = array<i32>} : memref<8x20xf32, #tpu.memory_space<vmem>>, vector<8x20xf32>,
    return
  }
  func.func @transform_0(%arg0: i32) -> (i32, i32) {
    %c0_i32 = arith.constant 0 : i32
    %c0_i32_0 = arith.constant 0 : i32
    return %arg0, %c0_i32 : i32, i32
  }
  func.func @transform_1(%arg0: i32) -> (i32, i32) {
    %c0_i32 = arith.constant 0 : i32
    %c0_i32_0 = arith.constant 0 : i32
    return %arg0, %c0_i32 : i32, i32
  }
  func.func @transform_2(%arg0: i32) -> (i32, i32) {
    %c0_i32 = arith.constant 0 : i32
    %c0_i32_0 = arith.constant 0 : i32
    %c0_i32_1 = arith.constant 0 : i32
    return %c0_i32, %c0_i32_0 : i32, i32
  }
  func.func @transform_3(%arg0: i32) -> (i32, i32) {
    %c0_i32 = arith.constant 0 : i32
    %c0_i32_0 = arith.constant 0 : i32
    %c0_i32_1 = arith.constant 0 : i32
    return %c0_i32, %c0_i32_0 : i32, i32
  }
  func.func @transform_4(%arg0: i32) -> (i32, i32) {
    %c0_i32 = arith.constant 0 : i32
    %c0_i32_0 = arith.constant 0 : i32
    %c0_i32_1 = arith.constant 0 : i32
    return %c0_i32, %c0_i32_0 : i32, i32
  }
  func.func @transform_5(%arg0: i32) -> (i32, i32) {
    %c0_i32 = arith.constant 0 : i32
    %c0_i32_0 = arith.constant 0 : i32
    %c0_i32_1 = arith.constant 0 : i32
    return %c0_i32, %c0_i32_0 : i32, i32
  }
  func.func @transform_6(%arg0: i32) -> (i32, i32) {
    %c0_i32 = arith.constant 0 : i32
    %c0_i32_0 = arith.constant 0 : i32
    %c0_i32_1 = arith.constant 0 : i32
    return %c0_i32, %c0_i32_0 : i32, i32
  }
  func.func @transform_7(%arg0: i32) -> (i32, i32) {
    %c0_i32 = arith.constant 0 : i32
    %c0_i32_0 = arith.constant 0 : i32
    %c0_i32_1 = arith.constant 0 : i32
    return %c0_i32, %c0_i32_0 : i32, i32
  }
  func.func @transform_8(%arg0: i32) -> (i32, i32) {
    %c0_i32 = arith.constant 0 : i32
    %c0_i32_0 = arith.constant 0 : i32
    %c0_i32_1 = arith.constant 0 : i32
    return %c0_i32, %c0_i32_0 : i32, i32
  }
  func.func @transform_9(%arg0: i32) -> (i32, i32) {
    %c0_i32 = arith.constant 0 : i32
    %c0_i32_0 = arith.constant 0 : i32
    %c0_i32_1 = arith.constant 0 : i32
    return %c0_i32, %c0_i32_0 : i32, i32
  }
  func.func @transform_10(%arg0: i32) -> (i32, i32) {
    %c0_i32 = arith.constant 0 : i32
    %c0_i32_0 = arith.constant 0 : i32
    return %arg0, %c0_i32 : i32, i32
  }
  func.func @transform_11(%arg0: i32) -> (i32, i32) {
    %c0_i32 = arith.constant 0 : i32
    %c0_i32_0 = arith.constant 0 : i32
    return %arg0, %c0_i32 : i32, i32
  }
  func.func @transform_12(%arg0: i32) -> (i32, i32) {
    %c0_i32 = arith.constant 0 : i32
    %c0_i32_0 = arith.constant 0 : i32
    return %arg0, %c0_i32 : i32, i32
  }
}

</mosaic_0001>

<bundles_post_ra>
// kernel: vae_forward.1
= control target key start
LH: loop header
LB: loop body
LE: loop exit
PB: predicated region body
PF: predicated region fallthrough
CT: control target
= control target key end

     0   :  { %18 = vsyncpa [#allocation3], 0  ;;  %vm1255_vm0 = vcmask 130048   ;;  %s9987_s0 = inlined_call_operand.vmem [shape: bf16[8,784], index: 0, kind: input, shape index: {}]   ;;  %s9988_s1 = inlined_call_operand.vmem [shape: f32[8,20], index: 1, kind: input, shape index: {}]   ;;  %s9989_s2 = inlined_call_operand.vmem [shape: bf16[784,512], index: 2, kind: input, shape index: {}]   ;;  %s9990_s3 = inlined_call_operand.vmem [shape: f32[1,512], index: 3, kind: input, shape index: {}]   ;;  %s9991_s4 = inlined_call_operand.vmem [shape: bf16[512,256], index: 4, kind: input, shape index: {}]   ;;  %s9992_s5 = inlined_call_operand.vmem [shape: f32[1,256], index: 5, kind: input, shape index: {}]   ;;  %s9993_s6 = inlined_call_operand.vmem [shape: bf16[20,512], index: 6, kind: input, shape index: {}]   ;;  %s9994_s7 = inlined_call_operand.vmem [shape: f32[1,512], index: 7, kind: input, shape index: {}]   ;;  %s9995_s8 = inlined_call_operand.vmem [shape: bf16[512,784], index: 8, kind: input, shape index: {}]   ;;  %s9996_s9 = inlined_call_operand.vmem [shape: f32[1,784], index: 9, kind: input, shape index: {}]   ;;  %s9997_s10 = inlined_call_operand.hbm [shape: bf16[8,784], index: 10, kind: output, shape index: {0}]   ;;  %s9998_s11 = inlined_call_operand.hbm [shape: f32[8,20], index: 11, kind: output, shape index: {1}]   ;;  %s9999_s12 = inlined_call_operand.hbm [shape: f32[8,20], index: 12, kind: output, shape index: {2}]  }
   0x1   :  { %v4348_v0 = vld [vmem:[%s9989_s2 + $0xe0] sm:$0xf]  ;;  %v6231_v1 = vld [vmem:[%s9989_s2 + $0xec] sm:$0xf0] }
   0x2   :  { %v4476_v2 = vld [vmem:[%s9989_s2 + $0x1e0] sm:$0xf]  ;;  %v4349_v3 = vor.u32 %v6231_v1, %v4348_v0  ;;  %v6263_v4 = vld [vmem:[%s9989_s2 + $0x1ec] sm:$0xf0] }
   0x3   :  { %v4604_v5 = vld [vmem:[%s9989_s2 + $0x2e0] sm:$0xf]  ;;  %v6295_v6 = vld [vmem:[%s9989_s2 + $0x2ec] sm:$0xf0]  ;;  %v4477_v7 = vor.u32 %v6263_v4, %v4476_v2 }
   0x4   :  { %v4605_v8 = vor.u32 %v6295_v6, %v4604_v5  ;;  %v4732_v9 = vld [vmem:[%s9989_s2 + $0x3e0] sm:$0xf]  ;;  %v6327_v10 = vld [vmem:[%s9989_s2 + $0x3ec] sm:$0xf0]  ;;  %1259 = vmatpush.bf16.msra.mxu0 %v4349_v3 }
   0x5   :  { %v4332_v11 = vld [vmem:[%s9989_s2 + $0xc0] sm:$0xf]  ;;  %v4733_v12 = vor.u32 %v6327_v10, %v4732_v9  ;;  %v6227_v13 = vld [vmem:[%s9989_s2 + $0xcc] sm:$0xf0]  ;;  %1272 = vmatpush.bf16.msra.mxu1 %v4477_v7 }
   0x6   :  { %v4460_v14 = vld [vmem:[%s9989_s2 + $0x1c0] sm:$0xf]  ;;  %v6259_v15 = vld [vmem:[%s9989_s2 + $0x1cc] sm:$0xf0]  ;;  %1285 = vmatpush.bf16.msra.mxu2 %v4605_v8  ;;  %v4333_v16 = vor.u32 %v6227_v13, %v4332_v11 }
   0x7   :  { %v4461_v17 = vor.u32 %v6259_v15, %v4460_v14  ;;  %v4588_v18 = vld [vmem:[%s9989_s2 + $0x2c0] sm:$0xf]  ;;  %v6291_v19 = vld [vmem:[%s9989_s2 + $0x2cc] sm:$0xf0]  ;;  %1298 = vmatpush.bf16.msra.mxu3 %v4733_v12 }
   0x8   :  { %v4716_v20 = vld [vmem:[%s9989_s2 + $0x3c0] sm:$0xf]  ;;  %v4589_v21 = vor.u32 %v6291_v19, %v4588_v18  ;;  %v6323_v22 = vld [vmem:[%s9989_s2 + $0x3cc] sm:$0xf0]  ;;  %1260 = vmatpush.bf16.msra.mxu0 %v4333_v16 }
   0x9   :  { %v4316_v23 = vld [vmem:[%s9989_s2 + $0xa0] sm:$0xf]  ;;  %v6223_v24 = vld [vmem:[%s9989_s2 + $0xac] sm:$0xf0]  ;;  %v4717_v25 = vor.u32 %v6323_v22, %v4716_v20  ;;  %1273 = vmatpush.bf16.msra.mxu1 %v4461_v17 }
   0xa   :  { %v4444_v26 = vld [vmem:[%s9989_s2 + $0x1a0] sm:$0xf]  ;;  %v6255_v27 = vld [vmem:[%s9989_s2 + $0x1ac] sm:$0xf0]  ;;  %v4317_v29 = vor.u32 %v6223_v24, %v4316_v23  ;;  %1286 = vmatpush.bf16.msra.mxu2 %v4589_v21 }
   0xb   :  { %v4572_v28 = vld [vmem:[%s9989_s2 + $0x2a0] sm:$0xf]  ;;  %v6287_v30 = vld [vmem:[%s9989_s2 + $0x2ac] sm:$0xf0]  ;;  %v4445_v33 = vor.u32 %v6255_v27, %v4444_v26  ;;  %1299 = vmatpush.bf16.msra.mxu3 %v4717_v25  ;;  %v42_v25 = vld [vmem:[%s9987_s0 + $0x8] sm:$0xff] }
   0xc   :  { %v4700_v31 = vld [vmem:[%s9989_s2 + $0x3a0] sm:$0xf]  ;;  %v6319_v32 = vld [vmem:[%s9989_s2 + $0x3ac] sm:$0xf0]  ;;  %v4573_v34 = vor.u32 %v6287_v30, %v4572_v28  ;;  %1261 = vmatpush.bf16.msra.mxu0 %v4317_v29 }
   0xd   :  { %v4300_v35 = vld [vmem:[%s9989_s2 + $0x80] sm:$0xf]  ;;  %v6219_v36 = vld [vmem:[%s9989_s2 + $0x8c] sm:$0xf0]  ;;  %v4701_v38 = vor.u32 %v6319_v32, %v4700_v31  ;;  %1274 = vmatpush.bf16.msra.mxu1 %v4445_v33 }
   0xe   :  { %v4428_v37 = vld [vmem:[%s9989_s2 + $0x180] sm:$0xf]  ;;  %v6251_v39 = vld [vmem:[%s9989_s2 + $0x18c] sm:$0xf0]  ;;  %v4301_v44 = vor.u32 %v6219_v36, %v4300_v35  ;;  %1287 = vmatpush.bf16.msra.mxu2 %v4573_v34  ;;  %v6229_v34 = vld [vmem:[%s9989_s2 + $0xe4] sm:$0xf]  ;;  %v257_v36 = vunpack.c.l.b16 %v42_v25 }
   0xf   :  { %v4556_v40 = vld [vmem:[%s9989_s2 + $0x280] sm:$0xf]  ;;  %v6283_v41 = vld [vmem:[%s9989_s2 + $0x28c] sm:$0xf0]  ;;  %v4429_v45 = vor.u32 %v6251_v39, %v4428_v37  ;;  %1300 = vmatpush.bf16.msra.mxu3 %v4701_v38  ;;  %v4350_v35 = vld [vmem:[%s9989_s2 + $0xf0] sm:$0xf0] }
  0x10   :  { %v4684_v42 = vld [vmem:[%s9989_s2 + $0x380] sm:$0xf]  ;;  %v6315_v43 = vld [vmem:[%s9989_s2 + $0x38c] sm:$0xf0]  ;;  %v4557_v46 = vor.u32 %v6283_v41, %v4556_v40  ;;  %1262 = vmatpush.bf16.msra.mxu0 %v4301_v44 }
  0x11   :  { %v4284_v47 = vld [vmem:[%s9989_s2 + $0x60] sm:$0xf]  ;;  %v6215_v48 = vld [vmem:[%s9989_s2 + $0x6c] sm:$0xf0]  ;;  %v4685_v50 = vor.u32 %v6315_v43, %v4684_v42  ;;  %1275 = vmatpush.bf16.msra.mxu1 %v4429_v45  ;;  %v258_v42 = vunpack.c.h.b16 %v42_v25  ;;  %v6249_v25 = vld [vmem:[%s9989_s2 + $0x184] sm:$0xf] }
  0x12   :  { %v4412_v49 = vld [vmem:[%s9989_s2 + $0x160] sm:$0xf]  ;;  %v6247_v51 = vld [vmem:[%s9989_s2 + $0x16c] sm:$0xf0]  ;;  %v4285_v56 = vor.u32 %v6215_v48, %v4284_v47  ;;  %1288 = vmatpush.bf16.msra.mxu2 %v4557_v46  ;;  %v6261_v46 = vld [vmem:[%s9989_s2 + $0x1e4] sm:$0xf] }
  0x13   :  { %v4540_v52 = vld [vmem:[%s9989_s2 + $0x260] sm:$0xf]  ;;  %v6279_v53 = vld [vmem:[%s9989_s2 + $0x26c] sm:$0xf0]  ;;  %v4413_v57 = vor.u32 %v6247_v51, %v4412_v49  ;;  %1301 = vmatpush.bf16.msra.mxu3 %v4685_v50  ;;  %v4478_v47 = vld [vmem:[%s9989_s2 + $0x1f0] sm:$0xf0]  ;;  %v4353_v49 = vor.u32 %v6229_v34, %v4350_v35 }
  0x14   :  { %v4668_v54 = vld [vmem:[%s9989_s2 + $0x360] sm:$0xf]  ;;  %v6311_v55 = vld [vmem:[%s9989_s2 + $0x36c] sm:$0xf0]  ;;  %v4541_v58 = vor.u32 %v6279_v53, %v4540_v52  ;;  %1263 = vmatpush.bf16.msra.mxu0 %v4285_v56  ;;  %v7103_v53 = vpack.c.b16 %v257_v36, %v257_v36  ;;  %v4334_v56 = vld [vmem:[%s9989_s2 + $0xd0] sm:$0xf0] }
  0x15   :  { %v4268_v59 = vld [vmem:[%s9989_s2 + $0x40] sm:$0xf]  ;;  %v6211_v60 = vld [vmem:[%s9989_s2 + $0x4c] sm:$0xf0]  ;;  %v4669_v62 = vor.u32 %v6311_v55, %v4668_v54  ;;  %1276 = vmatpush.bf16.msra.mxu1 %v4413_v57  ;;  %v6225_v55 = vld [vmem:[%s9989_s2 + $0xc4] sm:$0xf] }
  0x16   :  { %v4396_v61 = vld [vmem:[%s9989_s2 + $0x140] sm:$0xf]  ;;  %v6243_v63 = vld [vmem:[%s9989_s2 + $0x14c] sm:$0xf0]  ;;  %v4269_v4 = vor.u32 %v6211_v60, %v4268_v59  ;;  %1289 = vmatpush.bf16.msra.mxu2 %v4541_v58  ;;  %v7116_v60 = vpack.c.b16 %v258_v42, %v258_v42  ;;  %v4286_v34 = vld [vmem:[%s9989_s2 + $0x70] sm:$0xf0] }
  0x17   :  { %v4524_v0 = vld [vmem:[%s9989_s2 + $0x240] sm:$0xf]  ;;  %v6275_v1 = vld [vmem:[%s9989_s2 + $0x24c] sm:$0xf0]  ;;  %v4397_v5 = vor.u32 %v6243_v63, %v4396_v61  ;;  %1302 = vmatpush.bf16.msra.mxu3 %v4669_v62  ;;  %v4481_v61 = vor.u32 %v6261_v46, %v4478_v47  ;;  %v6257_v63 = vld [vmem:[%s9989_s2 + $0x1c4] sm:$0xf] }
  0x18   :  { %v4652_v2 = vld [vmem:[%s9989_s2 + $0x340] sm:$0xf]  ;;  %v6307_v3 = vld [vmem:[%s9989_s2 + $0x34c] sm:$0xf0]  ;;  %v4525_v6 = vor.u32 %v6275_v1, %v4524_v0  ;;  %1264 = vmatpush.bf16.msra.mxu0 %v4269_v4  ;;  %v4462_v0 = vld [vmem:[%s9989_s2 + $0x1d0] sm:$0xf0] }
  0x19   :  { %v4252_v7 = vld [vmem:[%s9989_s2 + $0x20] sm:$0xf]  ;;  %v6207_v8 = vld [vmem:[%s9989_s2 + $0x2c] sm:$0xf0]  ;;  %v4653_v10 = vor.u32 %v6307_v3, %v4652_v2  ;;  %1277 = vmatpush.bf16.msra.mxu1 %v4397_v5  ;;  %v4337_v2 = vor.u32 %v6225_v55, %v4334_v56  ;;  %v6209_v46 = vld [vmem:[%s9989_s2 + $0x44] sm:$0xf] }
  0x1a   :  { %v4380_v9 = vld [vmem:[%s9989_s2 + $0x120] sm:$0xf]  ;;  %v6239_v11 = vld [vmem:[%s9989_s2 + $0x12c] sm:$0xf0]  ;;  %v4253_v17 = vor.u32 %v6207_v8, %v4252_v7  ;;  %1290 = vmatpush.bf16.msra.mxu2 %v4525_v6  ;;  %v6221_v7 = vld [vmem:[%s9989_s2 + $0xa4] sm:$0xf] }
  0x1b   :  { %v4508_v12 = vld [vmem:[%s9989_s2 + $0x220] sm:$0xf]  ;;  %v6271_v13 = vld [vmem:[%s9989_s2 + $0x22c] sm:$0xf0]  ;;  %v4381_v21 = vor.u32 %v6239_v11, %v4380_v9  ;;  %1303 = vmatpush.bf16.msra.mxu3 %v4653_v10  ;;  %v4318_v8 = vld [vmem:[%s9989_s2 + $0xb0] sm:$0xf0]  ;;  %v4465_v10 = vor.u32 %v6257_v63, %v4462_v0 }
  0x1c   :  { %v4636_v14 = vld [vmem:[%s9989_s2 + $0x320] sm:$0xf]  ;;  %v6303_v15 = vld [vmem:[%s9989_s2 + $0x32c] sm:$0xf0]  ;;  %v4509_v22 = vor.u32 %v6271_v13, %v4508_v12  ;;  %1265 = vmatpush.bf16.msra.mxu0 %v4253_v17  ;;  %v6253_v12 = vld [vmem:[%s9989_s2 + $0x1a4] sm:$0xf] }
  0x1d   :  { %v4236_v16 = vld [vmem:[%s9989_s2] sm:$0xf]  ;;  %v6203_v18 = vld [vmem:[%s9989_s2 + $0xc] sm:$0xf0]  ;;  %v4637_v26 = vor.u32 %v6303_v15, %v4636_v14  ;;  %1278 = vmatpush.bf16.msra.mxu1 %v4381_v21  ;;  %v4446_v13 = vld [vmem:[%s9989_s2 + $0x1b0] sm:$0xf0]  ;;  %v4321_v15 = vor.u32 %v6221_v7, %v4318_v8 }
  0x1e   :  { %v4364_v19 = vld [vmem:[%s9989_s2 + $0x100] sm:$0xf]  ;;  %v6235_v20 = vld [vmem:[%s9989_s2 + $0x10c] sm:$0xf0]  ;;  %v4237_v33 = vor.u32 %v6203_v18, %v4236_v16  ;;  %1291 = vmatpush.bf16.msra.mxu2 %v4509_v22  ;;  %v4302_v21 = vld [vmem:[%s9989_s2 + $0x90] sm:$0xf0] }
  0x1f   :  { %v4492_v23 = vld [vmem:[%s9989_s2 + $0x200] sm:$0xf]  ;;  %v6267_v24 = vld [vmem:[%s9989_s2 + $0x20c] sm:$0xf0]  ;;  %v4365_v38 = vor.u32 %v6235_v20, %v4364_v19  ;;  %1304 = vmatpush.bf16.msra.mxu3 %v4637_v26  ;;  %v6217_v20 = vld [vmem:[%s9989_s2 + $0x84] sm:$0xf] }
  0x20   :  { %v4620_v27 = vld [vmem:[%s9989_s2 + $0x300] sm:$0xf]  ;;  %v6299_v28 = vld [vmem:[%s9989_s2 + $0x30c] sm:$0xf0]  ;;  %v4493_v39 = vor.u32 %v6267_v24, %v4492_v23  ;;  %1266 = vmatpush.bf16.msra.mxu0 %v4237_v33  ;;  %v44_v22 = vld [vmem:[%s9987_s0 + $0x18] sm:$0xf]  ;;  %v4449_v23 = vor.u32 %v6253_v12, %v4446_v13 }
  0x21   :  { %v4860_v29 = vld [vmem:[%s9989_s2 + $0x4e0] sm:$0xf]  ;;  %v6359_v30 = vld [vmem:[%s9989_s2 + $0x4ec] sm:$0xf0]  ;;  %v4621_v43 = vor.u32 %v6299_v28, %v4620_v27  ;;  %1279 = vmatpush.bf16.msra.mxu1 %v4365_v38  ;;  %v4430_v26 = vld [vmem:[%s9989_s2 + $0x190] sm:$0xf0]  ;;  %v4305_v28 = vor.u32 %v6217_v20, %v4302_v21  ;;  %v261_v35 = vunpack.c.l.b16 %v44_v22 }
  0x22   :  { %v4988_v31 = vld [vmem:[%s9989_s2 + $0x5e0] sm:$0xf]  ;;  %v6391_v32 = vld [vmem:[%s9989_s2 + $0x5ec] sm:$0xf0]  ;;  %v4861_v44 = vor.u32 %v6359_v30, %v4860_v29  ;;  %1292 = vmatpush.bf16.msra.mxu2 %v4493_v39  ;;  %v6213_v33 = vld [vmem:[%s9989_s2 + $0x64] sm:$0xf]  ;;  %v4433_v36 = vor.u32 %v6249_v25, %v4430_v26 }
  0x23   :  { %v41_v37 = vld [vmem:[%s9987_s0] sm:$0xff]  ;;  %v6395_v45 = vld [vmem:[%s9989_s2 + $0x60c] sm:$0xf0]  ;;  %v4989_v48 = vor.u32 %v6391_v32, %v4988_v31  ;;  %1305 = vmatpush.bf16.msra.mxu3 %v4621_v43  ;;  %v4414_v39 = vld [vmem:[%s9989_s2 + $0x170] sm:$0xf0] }
  0x24   :  { %v5004_v40 = vld [vmem:[%s9989_s2 + $0x600] sm:$0xf]  ;;  %v255_v41 = vunpack.c.l.b16 %v41_v37  ;;  %v6355_v51 = vld [vmem:[%s9989_s2 + $0x4cc] sm:$0xf0]  ;;  %v256_v58 = vunpack.c.h.b16 %v41_v37  ;;  %1311 = vmatpush.bf16.msrb.mxu0 %v4861_v44  ;;  %v6245_v38 = vld [vmem:[%s9989_s2 + $0x164] sm:$0xf] }
  0x25   :  { %v4844_v50 = vld [vmem:[%s9989_s2 + $0x4c0] sm:$0xf]  ;;  %v6387_v54 = vld [vmem:[%s9989_s2 + $0x5cc] sm:$0xf0]  ;;  %v5005_v59 = vor.u32 %v6395_v45, %v5004_v40  ;;  %1324 = vmatpush.bf16.msrb.mxu1 %v4989_v48  ;;  %1293 = vmatmul.bf16.vlgmr.msra.gmra.mxu2 %v7103_v53  ;;  %v4270_v47 = vld [vmem:[%s9989_s2 + $0x50] sm:$0xf0]  ;;  %v7223_v48 = vpack.c.b16 %v261_v35, %v261_v35 }
  0x26   :  { %v4972_v52 = vld [vmem:[%s9989_s2 + $0x5c0] sm:$0xf]  ;;  %v7114_v57 = vpack.c.b16 %v255_v41, %v255_v41  ;;  %v4845_v62 = vor.u32 %v6355_v51, %v4844_v50  ;;  %v6351_v4 = vld [vmem:[%s9989_s2 + $0x4ac] sm:$0xf0]  ;;  %v7144_v9 = vpack.c.b16 %v256_v58, %v256_v58  ;;  %1306 = vmatmul.bf16.vlgmr.msra.gmra.mxu3 %v7116_v60  ;;  %v4289_v41 = vor.u32 %v6213_v33, %v4286_v34  ;;  %v6241_v51 = vld [vmem:[%s9989_s2 + $0x144] sm:$0xf] }
  0x27   :  { %1350 = vmatpush.bf16.msrb.mxu3 %v4353_v49  ;;  %v4973_v1 = vor.u32 %v6387_v54, %v4972_v52  ;;  %v4828_v3 = vld [vmem:[%s9989_s2 + $0x4a0] sm:$0xf]  ;;  %v6383_v6 = vld [vmem:[%s9989_s2 + $0x5ac] sm:$0xf0]  ;;  %1344 = vmatpush.bf16.msrb.mxu2 %v5005_v59  ;;  %v4417_v49 = vor.u32 %v6245_v38, %v4414_v39  ;;  %v4398_v52 = vld [vmem:[%s9989_s2 + $0x150] sm:$0xf0]  ;;  %v4273_v55 = vor.u32 %v6209_v46, %v4270_v47 }
  0x28   :  { %v4956_v5 = vld [vmem:[%s9989_s2 + $0x5a0] sm:$0xf]  ;;  %1267 = vmatmul.bf16.vlgmr.msra.gmra.mxu0 %v7114_v57  ;;  %v4829_v11 = vor.u32 %v6351_v4, %v4828_v3  ;;  %v6347_v17 = vld [vmem:[%s9989_s2 + $0x48c] sm:$0xf0]  ;;  %1280 = vmatmul.bf16.vlgmr.msra.gmra.mxu1 %v7144_v9  ;;  %v4254_v63 = vld [vmem:[%s9989_s2 + $0x30] sm:$0xf0] }
  0x29   :  { %1312 = vmatpush.bf16.msrb.mxu0 %v4845_v62  ;;  %1325 = vmatpush.bf16.msrb.mxu1 %v4973_v1  ;;  %v4957_v14 = vor.u32 %v6383_v6, %v4956_v5  ;;  %v4812_v16 = vld [vmem:[%s9989_s2 + $0x480] sm:$0xf]  ;;  %v6379_v19 = vld [vmem:[%s9989_s2 + $0x58c] sm:$0xf0]  ;;  %v6205_v62 = vld [vmem:[%s9989_s2 + $0x24] sm:$0xf]  ;;  %v4401_v1 = vor.u32 %v6241_v51, %v4398_v52 }
  0x2a   :  { %v4940_v18 = vld [vmem:[%s9989_s2 + $0x580] sm:$0xf]  ;;  %v4813_v24 = vor.u32 %v6347_v17, %v4812_v16  ;;  %v6343_v30 = vld [vmem:[%s9989_s2 + $0x46c] sm:$0xf0]  ;;  %v6237_v0 = vld [vmem:[%s9989_s2 + $0x124] sm:$0xf]  ;;  %v4257_v7 = vor.u32 %v6205_v62, %v4254_v63 }
  0x2b   :  { %1363 = vmatpush.bf16.msra.mxu2 %v4481_v61  ;;  %1351 = vmatpush.bf16.msrb.mxu3 %v4337_v2  ;;  %v4941_v27 = vor.u32 %v6379_v19, %v4940_v18  ;;  %v4796_v29 = vld [vmem:[%s9989_s2 + $0x460] sm:$0xf]  ;;  %v6375_v32 = vld [vmem:[%s9989_s2 + $0x56c] sm:$0xf0]  ;;  %v4382_v3 = vld [vmem:[%s9989_s2 + $0x130] sm:$0xf0] }
  0x2c   :  { %v4924_v31 = vld [vmem:[%s9989_s2 + $0x560] sm:$0xf]  ;;  %v4797_v37 = vor.u32 %v6343_v30, %v4796_v29  ;;  %v6339_v43 = vld [vmem:[%s9989_s2 + $0x44c] sm:$0xf0]  ;;  %v6201_v12 = vld [vmem:[%s9989_s2 + $0x4] sm:$0xf]  ;;  %v4385_v19 = vor.u32 %v6237_v0, %v4382_v3 }
  0x2d   :  { %1313 = vmatpush.bf16.msrb.mxu0 %v4829_v11  ;;  %1326 = vmatpush.bf16.msrb.mxu1 %v4957_v14  ;;  %v4925_v40 = vor.u32 %v6375_v32, %v4924_v31  ;;  %v4780_v42 = vld [vmem:[%s9989_s2 + $0x440] sm:$0xf]  ;;  %v6371_v45 = vld [vmem:[%s9989_s2 + $0x54c] sm:$0xf0]  ;;  %v4238_v13 = vld [vmem:[%s9989_s2 + $0x10] sm:$0xf0] }
  0x2e   :  { %v4908_v44 = vld [vmem:[%s9989_s2 + $0x540] sm:$0xf]  ;;  %v4781_v50 = vor.u32 %v6339_v43, %v4780_v42  ;;  %v6335_v58 = vld [vmem:[%s9989_s2 + $0x42c] sm:$0xf0]  ;;  %v6293_v14 = vld [vmem:[%s9989_s2 + $0x2e4] sm:$0xf]  ;;  %v4241_v25 = vor.u32 %v6201_v12, %v4238_v13 }
  0x2f   :  { %1364 = vmatpush.bf16.msra.mxu2 %v4465_v10  ;;  %1352 = vmatpush.bf16.msrb.mxu3 %v4321_v15  ;;  %v4909_v54 = vor.u32 %v6371_v45, %v4908_v44  ;;  %v4764_v56 = vld [vmem:[%s9989_s2 + $0x420] sm:$0xf]  ;;  %v6367_v61 = vld [vmem:[%s9989_s2 + $0x52c] sm:$0xf0]  ;;  %v4606_v15 = vld [vmem:[%s9989_s2 + $0x2f0] sm:$0xf0] }
  0x30   :  { %v4892_v59 = vld [vmem:[%s9989_s2 + $0x520] sm:$0xf]  ;;  %v4765_v2 = vor.u32 %v6335_v58, %v4764_v56  ;;  %v43_v5 = vld [vmem:[%s9987_s0 + $0x10] sm:$0xff]  ;;  %v6325_v16 = vld [vmem:[%s9989_s2 + $0x3e4] sm:$0xf] }
  0x31   :  { %1314 = vmatpush.bf16.msrb.mxu0 %v4813_v24  ;;  %1327 = vmatpush.bf16.msrb.mxu1 %v4941_v27  ;;  %v4748_v4 = vld [vmem:[%s9989_s2 + $0x400] sm:$0xf]  ;;  %v4893_v6 = vor.u32 %v6367_v61, %v4892_v59  ;;  %v6331_v8 = vld [vmem:[%s9989_s2 + $0x40c] sm:$0xf0]  ;;  %v4734_v17 = vld [vmem:[%s9989_s2 + $0x3f0] sm:$0xf0]  ;;  %v259_v18 = vunpack.c.l.b16 %v43_v5 }
  0x32   :  { %v4876_v10 = vld [vmem:[%s9989_s2 + $0x500] sm:$0xf]  ;;  %v6363_v11 = vld [vmem:[%s9989_s2 + $0x50c] sm:$0xf0]  ;;  %v4749_v20 = vor.u32 %v6331_v8, %v4748_v4  ;;  %v6357_v21 = vld [vmem:[%s9989_s2 + $0x4e4] sm:$0xf]  ;;  %v4737_v29 = vor.u32 %v6325_v16, %v4734_v17 }
  0x33   :  { %1365 = vmatpush.bf16.msra.mxu2 %v4449_v23  ;;  %1353 = vmatpush.bf16.msrb.mxu3 %v4305_v28  ;;  %v4862_v22 = vld [vmem:[%s9989_s2 + $0x4f0] sm:$0xf0]  ;;  %v260_v23 = vunpack.c.h.b16 %v43_v5  ;;  %v4877_v24 = vor.u32 %v6363_v11, %v4876_v10  ;;  %v6233_v26 = vld [vmem:[%s9989_s2 + $0x104] sm:$0xf]  ;;  %v4609_v28 = vor.u32 %v6293_v14, %v4606_v15  ;;  %v7311_v34 = vpack.c.b16 %v259_v18, %v259_v18 }
  0x34   :  { %v4366_v27 = vld [vmem:[%s9989_s2 + $0x110] sm:$0xf0]  ;;  %v6389_v30 = vld [vmem:[%s9989_s2 + $0x5e4] sm:$0xf]  ;;  %v4865_v33 = vor.u32 %v6357_v21, %v4862_v22 }
  0x35   :  { %1315 = vmatpush.bf16.msrb.mxu0 %v4797_v37  ;;  %1328 = vmatpush.bf16.msrb.mxu1 %v4925_v40  ;;  %v4990_v31 = vld [vmem:[%s9989_s2 + $0x5f0] sm:$0xf0]  ;;  %v6289_v32 = vld [vmem:[%s9989_s2 + $0x2c4] sm:$0xf]  ;;  %v4369_v38 = vor.u32 %v6233_v26, %v4366_v27  ;;  %v7322_v39 = vpack.c.b16 %v260_v23, %v260_v23 }
  0x36   :  { %5018 = vmatmul.msk.bf16.vlgmr.msrb.gmra.mxu2 %vm1255_vm0, %v7223_v48  ;;  %v4590_v35 = vld [vmem:[%s9989_s2 + $0x2d0] sm:$0xf0]  ;;  %v6353_v40 = vld [vmem:[%s9989_s2 + $0x4c4] sm:$0xf]  ;;  %v4993_v42 = vor.u32 %v6389_v30, %v4990_v31 }
  0x37   :  { %1366 = vmatpush.bf16.msra.mxu2 %v4433_v36  ;;  %1354 = vmatpush.bf16.msrb.mxu3 %v4289_v41  ;;  %v6321_v36 = vld [vmem:[%s9989_s2 + $0x3c4] sm:$0xf]  ;;  %v4718_v37 = vld [vmem:[%s9989_s2 + $0x3d0] sm:$0xf0]  ;;  %v4593_v43 = vor.u32 %v6289_v32, %v4590_v35 }
  0x38   :  { %v4846_v41 = vld [vmem:[%s9989_s2 + $0x4d0] sm:$0xf0]  ;;  %v4721_v44 = vor.u32 %v6321_v36, %v4718_v37  ;;  %v6385_v45 = vld [vmem:[%s9989_s2 + $0x5c4] sm:$0xf] }
  0x39   :  { %1316 = vmatpush.bf16.msrb.mxu0 %v4781_v50  ;;  %1329 = vmatpush.bf16.msrb.mxu1 %v4909_v54  ;;  %v4974_v46 = vld [vmem:[%s9989_s2 + $0x5d0] sm:$0xf0]  ;;  %v6285_v47 = vld [vmem:[%s9989_s2 + $0x2a4] sm:$0xf] }
  0x3a   :  { %v4574_v50 = vld [vmem:[%s9989_s2 + $0x2b0] sm:$0xf0]  ;;  %v6317_v51 = vld [vmem:[%s9989_s2 + $0x3a4] sm:$0xf]  ;;  %v4977_v56 = vor.u32 %v6385_v45, %v4974_v46 }
  0x3b   :  { %1367 = vmatpush.bf16.msra.mxu2 %v4417_v49  ;;  %1355 = vmatpush.bf16.msrb.mxu3 %v4273_v55  ;;  %v4849_v49 = vor.u32 %v6353_v40, %v4846_v41  ;;  %v4702_v52 = vld [vmem:[%s9989_s2 + $0x3b0] sm:$0xf0]  ;;  %v6349_v54 = vld [vmem:[%s9989_s2 + $0x4a4] sm:$0xf]  ;;  %v4577_v58 = vor.u32 %v6285_v47, %v4574_v50 }
  0x3c   :  { %v4830_v55 = vld [vmem:[%s9989_s2 + $0x4b0] sm:$0xf0]  ;;  %v4705_v59 = vor.u32 %v6317_v51, %v4702_v52  ;;  %v6381_v61 = vld [vmem:[%s9989_s2 + $0x5a4] sm:$0xf] }
  0x3d   :  { %1317 = vmatpush.bf16.msrb.mxu0 %v4765_v2  ;;  %1330 = vmatpush.bf16.msrb.mxu1 %v4893_v6  ;;  %v4958_v62 = vld [vmem:[%s9989_s2 + $0x5b0] sm:$0xf0]  ;;  %v6281_v63 = vld [vmem:[%s9989_s2 + $0x284] sm:$0xf]  ;;  %v4833_v0 = vor.u32 %v6349_v54, %v4830_v55 }
  0x3e   :  { %v6313_v2 = vld [vmem:[%s9989_s2 + $0x384] sm:$0xf]  ;;  %v4686_v3 = vld [vmem:[%s9989_s2 + $0x390] sm:$0xf0]  ;;  %v4961_v6 = vor.u32 %v6381_v61, %v4958_v62 }
  0x3f   :  { %1368 = vmatpush.bf16.msra.mxu2 %v4401_v1  ;;  %1356 = vmatpush.bf16.msrb.mxu3 %v4257_v7  ;;  %v4558_v1 = vld [vmem:[%s9989_s2 + $0x290] sm:$0xf0]  ;;  %v6345_v4 = vld [vmem:[%s9989_s2 + $0x484] sm:$0xf]  ;;  %v4689_v8 = vor.u32 %v6313_v2, %v4686_v3 }
  0x40   :  { %v4814_v5 = vld [vmem:[%s9989_s2 + $0x490] sm:$0xf0]  ;;  %v4561_v7 = vor.u32 %v6281_v63, %v4558_v1  ;;  %v6377_v10 = vld [vmem:[%s9989_s2 + $0x584] sm:$0xf] }
  0x41   :  { %1318 = vmatpush.bf16.msrb.mxu0 %v4749_v20  ;;  %1331 = vmatpush.bf16.msrb.mxu1 %v4877_v24  ;;  %v4942_v11 = vld [vmem:[%s9989_s2 + $0x590] sm:$0xf0]  ;;  %v6277_v12 = vld [vmem:[%s9989_s2 + $0x264] sm:$0xf]  ;;  %v4817_v13 = vor.u32 %v6345_v4, %v4814_v5 }
  0x42   :  { %v4542_v14 = vld [vmem:[%s9989_s2 + $0x270] sm:$0xf0]  ;;  %v6309_v15 = vld [vmem:[%s9989_s2 + $0x364] sm:$0xf] }
  0x43   :  { %1369 = vmatpush.bf16.msra.mxu2 %v4385_v19  ;;  %1357 = vmatpush.bf16.msrb.mxu3 %v4241_v25  ;;  %v4670_v16 = vld [vmem:[%s9989_s2 + $0x370] sm:$0xf0]  ;;  %v6341_v17 = vld [vmem:[%s9989_s2 + $0x464] sm:$0xf]  ;;  %v4945_v19 = vor.u32 %v6377_v10, %v4942_v11  ;;  %v4545_v20 = vor.u32 %v6277_v12, %v4542_v14 }
  0x44   :  { %1319 = vmatmul.bf16.vlgmr.msrb.gmra.mxu0 %v7311_v34  ;;  %1332 = vmatmul.bf16.vlgmr.msrb.gmra.mxu1 %v7322_v39  ;;  %v4798_v18 = vld [vmem:[%s9989_s2 + $0x470] sm:$0xf0]  ;;  %v4673_v21 = vor.u32 %v6309_v15, %v4670_v16  ;;  %v6373_v22 = vld [vmem:[%s9989_s2 + $0x564] sm:$0xf] }
  0x45   :  { %1376 = vmatpush.bf16.msra.mxu0 %v4609_v28  ;;  %1389 = vmatpush.bf16.msra.mxu1 %v4737_v29  ;;  %v4926_v23 = vld [vmem:[%s9989_s2 + $0x570] sm:$0xf0]  ;;  %v6273_v24 = vld [vmem:[%s9989_s2 + $0x244] sm:$0xf]  ;;  %v4801_v25 = vor.u32 %v6341_v17, %v4798_v18 }
  0x46   :  { %1358 = vmatmul.bf16.vlgmr.msrb.gmra.mxu3 %v7114_v57  ;;  %v4526_v26 = vld [vmem:[%s9989_s2 + $0x250] sm:$0xf0]  ;;  %v6305_v27 = vld [vmem:[%s9989_s2 + $0x344] sm:$0xf]  ;;  %v4929_v31 = vor.u32 %v6373_v22, %v4926_v23 }
  0x47   :  { %1402 = vmatpush.bf16.msra.mxu3 %v4865_v33  ;;  %1370 = vmatpush.bf16.msra.mxu2 %v4369_v38  ;;  %v4654_v28 = vld [vmem:[%s9989_s2 + $0x350] sm:$0xf0]  ;;  %v6337_v29 = vld [vmem:[%s9989_s2 + $0x444] sm:$0xf]  ;;  %v4529_v32 = vor.u32 %v6273_v24, %v4526_v26 }
  0x48   :  { %v4782_v30 = vld [vmem:[%s9989_s2 + $0x450] sm:$0xf0]  ;;  %v4657_v33 = vor.u32 %v6305_v27, %v4654_v28  ;;  %v6369_v35 = vld [vmem:[%s9989_s2 + $0x544] sm:$0xf] }
  0x49   :  { %1377 = vmatpush.bf16.msra.mxu0 %v4593_v43  ;;  %1390 = vmatpush.bf16.msra.mxu1 %v4721_v44  ;;  %v4910_v36 = vld [vmem:[%s9989_s2 + $0x550] sm:$0xf0]  ;;  %v6269_v37 = vld [vmem:[%s9989_s2 + $0x224] sm:$0xf]  ;;  %v4785_v38 = vor.u32 %v6337_v29, %v4782_v30 }
  0x4a   :  { %1371 = vmatmul.bf16.vlgmr.msra.gmra.mxu2 %v7144_v9  ;;  %v4510_v40 = vld [vmem:[%s9989_s2 + $0x230] sm:$0xf0]  ;;  %v6301_v41 = vld [vmem:[%s9989_s2 + $0x324] sm:$0xf]  ;;  %v4913_v45 = vor.u32 %v6369_v35, %v4910_v36 }
  0x4b   :  { %1415 = vmatpush.bf16.msrb.mxu2 %v4993_v42  ;;  %1403 = vmatpush.bf16.msra.mxu3 %v4849_v49  ;;  %v4638_v42 = vld [vmem:[%s9989_s2 + $0x330] sm:$0xf0]  ;;  %v6333_v43 = vld [vmem:[%s9989_s2 + $0x424] sm:$0xf]  ;;  %v4513_v50 = vor.u32 %v6269_v37, %v4510_v40 }
  0x4c   :  { %v4766_v44 = vld [vmem:[%s9989_s2 + $0x430] sm:$0xf0]  ;;  %v6365_v46 = vld [vmem:[%s9989_s2 + $0x524] sm:$0xf]  ;;  %v4641_v51 = vor.u32 %v6301_v41, %v4638_v42 }
  0x4d   :  { %1378 = vmatpush.bf16.msra.mxu0 %v4577_v58  ;;  %1391 = vmatpush.bf16.msra.mxu1 %v4705_v59  ;;  %v4894_v47 = vld [vmem:[%s9989_s2 + $0x530] sm:$0xf0]  ;;  %v6265_v49 = vld [vmem:[%s9989_s2 + $0x204] sm:$0xf] }
  0x4e   :  { %v4494_v52 = vld [vmem:[%s9989_s2 + $0x210] sm:$0xf0]  ;;  %v6297_v54 = vld [vmem:[%s9989_s2 + $0x304] sm:$0xf] }
  0x4f   :  { %1416 = vmatpush.bf16.msrb.mxu2 %v4977_v56  ;;  %1404 = vmatpush.bf16.msra.mxu3 %v4833_v0  ;;  %v4622_v55 = vld [vmem:[%s9989_s2 + $0x310] sm:$0xf0]  ;;  %v4769_v56 = vor.u32 %v6333_v43, %v4766_v44  ;;  %v6329_v58 = vld [vmem:[%s9989_s2 + $0x404] sm:$0xf] }
  0x50   :  { %v4750_v59 = vld [vmem:[%s9989_s2 + $0x410] sm:$0xf0] }
  0x51   :  { %1379 = vmatpush.bf16.msra.mxu0 %v4561_v7  ;;  %1392 = vmatpush.bf16.msra.mxu1 %v4689_v8 }
  0x53   :  { %1417 = vmatpush.bf16.msrb.mxu2 %v4961_v6  ;;  %1405 = vmatpush.bf16.msra.mxu3 %v4817_v13 }
  0x55   :  { %1380 = vmatpush.bf16.msra.mxu0 %v4545_v20  ;;  %1393 = vmatpush.bf16.msra.mxu1 %v4673_v21 }
  0x57   :  { %1418 = vmatpush.bf16.msrb.mxu2 %v4945_v19  ;;  %1406 = vmatpush.bf16.msra.mxu3 %v4801_v25 }
  0x59   :  { %1381 = vmatpush.bf16.msra.mxu0 %v4529_v32  ;;  %1394 = vmatpush.bf16.msra.mxu1 %v4657_v33 }
  0x5b   :  { %1419 = vmatpush.bf16.msrb.mxu2 %v4929_v31  ;;  %1407 = vmatpush.bf16.msra.mxu3 %v4785_v38 }
  0x5c   :  { %19 = vsyncpa [#allocation5], 0  ;;  %v4356_v61 = vld [vmem:[%s9989_s2 + $0xe8] sm:$0xf]  ;;  %v6232_v62 = vld [vmem:[%s9989_s2 + $0xf4] sm:$0xf0]  ;;  %v4897_v0 = vor.u32 %v6365_v46, %v4894_v47  ;;  %v4497_v4 = vor.u32 %v6265_v49, %v4494_v52  ;;  %v4625_v5 = vor.u32 %v6297_v54, %v4622_v55  ;;  %v4753_v10 = vor.u32 %v6329_v58, %v4750_v59 }
  0x5d   :  { %v4484_v63 = vld [vmem:[%s9989_s2 + $0x1e8] sm:$0xf]  ;;  %v6264_v1 = vld [vmem:[%s9989_s2 + $0x1f4] sm:$0xf0]  ;;  %v6393_v2 = vld [vmem:[%s9989_s2 + $0x604] sm:$0xf]  ;;  %1382 = vmatpush.bf16.msra.mxu0 %v4513_v50  ;;  %1395 = vmatpush.bf16.msra.mxu1 %v4641_v51  ;;  %v4357_v11 = vor.u32 %v6232_v62, %v4356_v61 }
  0x5e   :  { %v5006_v3 = vld [vmem:[%s9989_s2 + $0x610] sm:$0xf0]  ;;  %v6361_v6 = vld [vmem:[%s9989_s2 + $0x504] sm:$0xf]  ;;  %v4612_v8 = vld [vmem:[%s9989_s2 + $0x2e8] sm:$0xf]  ;;  %v4485_v15 = vor.u32 %v6264_v1, %v4484_v63 }
  0x5f   :  { %1420 = vmatpush.bf16.msrb.mxu2 %v4913_v45  ;;  %v4878_v7 = vld [vmem:[%s9989_s2 + $0x510] sm:$0xf0]  ;;  %1408 = vmatpush.bf16.msra.mxu3 %v4769_v56  ;;  %v6296_v12 = vld [vmem:[%s9989_s2 + $0x2f4] sm:$0xf0]  ;;  %v4740_v13 = vld [vmem:[%s9989_s2 + $0x3e8] sm:$0xf]  ;;  %v5009_v16 = vor.u32 %v6393_v2, %v5006_v3 }
  0x60   :  { %v6328_v14 = vld [vmem:[%s9989_s2 + $0x3f4] sm:$0xf0]  ;;  %v4340_v17 = vld [vmem:[%s9989_s2 + $0xc8] sm:$0xf]  ;;  %v4881_v19 = vor.u32 %v6361_v6, %v4878_v7  ;;  %v4613_v22 = vor.u32 %v6296_v12, %v4612_v8  ;;  %vm2182_vm1 = vcmask 1041408   ;;  %vm2178_vm2 = vcmask 162816  }
  0x61   :  { %v6228_v18 = vld [vmem:[%s9989_s2 + $0xd4] sm:$0xf0]  ;;  %v4468_v20 = vld [vmem:[%s9989_s2 + $0x1c8] sm:$0xf]  ;;  %1383 = vmatpush.bf16.msra.mxu0 %v4497_v4  ;;  %1396 = vmatpush.bf16.msra.mxu1 %v4625_v5  ;;  %v4741_v23 = vor.u32 %v6328_v14, %v4740_v13  ;;  %s4205_s14 = sshll.u32 %s9998_s11, 4  ;;  %s6798_s15 = smov [#allocation4]   ;;  %s4206_s14 = int_to_ptr.hbm [resolvable:$true] %s4205_s14 }
  0x62   :  { %v6260_v21 = vld [vmem:[%s9989_s2 + $0x1d4] sm:$0xf0]  ;;  %v4596_v24 = vld [vmem:[%s9989_s2 + $0x2c8] sm:$0xf]  ;;  %v4341_v25 = vor.u32 %v6228_v18, %v4340_v17  ;;  %s4216_s18 = sshll.u32 %s9999_s12, 4  ;;  %s6800_s11 = smov [#allocation2]   ;;  %s4217_s18 = int_to_ptr.hbm [resolvable:$true] %s4216_s18 }
  0x63   :  { %1421 = vmatpush.bf16.msrb.mxu2 %v4897_v0  ;;  %1409 = vmatpush.bf16.msra.mxu3 %v4753_v10  ;;  %v6292_v26 = vld [vmem:[%s9989_s2 + $0x2d4] sm:$0xf0]  ;;  %v4724_v27 = vld [vmem:[%s9989_s2 + $0x3c8] sm:$0xf]  ;;  %v4469_v29 = vor.u32 %v6260_v21, %v4468_v20  ;;  %s4192_s12 = sshll.u32 %s6800_s11, 4  ;;  %s4194_s21 = sshll.u32 %s9997_s10, 4  ;;  %s4193_s12 = int_to_ptr.vmem [resolvable:$true] %s4192_s12  ;;  %s4195_s21 = int_to_ptr.hbm [resolvable:$true] %s4194_s21 }
  0x64   :  { %v6324_v28 = vld [vmem:[%s9989_s2 + $0x3d4] sm:$0xf0]  ;;  %v4324_v30 = vld [vmem:[%s9989_s2 + $0xa8] sm:$0xf]  ;;  %1384 = vmatmul.bf16.vlgmr.msra.gmra.mxu0 %v7103_v53  ;;  %v4597_v35 = vor.u32 %v6292_v26, %v4596_v24  ;;  %1397 = vmatmul.bf16.vlgmr.msra.gmra.mxu1 %v7116_v60 }
  0x65   :  { %1441 = vmatpush.bf16.msrb.mxu1 %v4357_v11  ;;  %1435 = vmatpush.bf16.msrb.mxu0 %v5009_v16  ;;  %v6224_v31 = vld [vmem:[%s9989_s2 + $0xb4] sm:$0xf0]  ;;  %v4452_v32 = vld [vmem:[%s9989_s2 + $0x1a8] sm:$0xf]  ;;  %v4725_v36 = vor.u32 %v6324_v28, %v4724_v27 }
  0x66   :  { %v6256_v33 = vld [vmem:[%s9989_s2 + $0x1b4] sm:$0xf0]  ;;  %v4580_v37 = vld [vmem:[%s9989_s2 + $0x2a8] sm:$0xf]  ;;  %1410 = vmatmul.bf16.vlgmr.msra.gmra.mxu3 %v7311_v34  ;;  %v4325_v38 = vor.u32 %v6224_v31, %v4324_v30 }
  0x67   :  { %1454 = vmatpush.bf16.msrb.mxu3 %v4485_v15  ;;  %1422 = vmatpush.bf16.msrb.mxu2 %v4881_v19  ;;  %v6288_v40 = vld [vmem:[%s9989_s2 + $0x2b4] sm:$0xf0]  ;;  %v4708_v41 = vld [vmem:[%s9989_s2 + $0x3a8] sm:$0xf]  ;;  %v4453_v43 = vor.u32 %v6256_v33, %v4452_v32 }
  0x68   :  { %v6320_v42 = vld [vmem:[%s9989_s2 + $0x3b4] sm:$0xf0]  ;;  %v4308_v44 = vld [vmem:[%s9989_s2 + $0x88] sm:$0xf]  ;;  %v4581_v49 = vor.u32 %v6288_v40, %v4580_v37 }
  0x69   :  { %1467 = vmatpush.bf16.msra.mxu0 %v4613_v22  ;;  %1442 = vmatpush.bf16.msrb.mxu1 %v4341_v25  ;;  %v6220_v45 = vld [vmem:[%s9989_s2 + $0x94] sm:$0xf0]  ;;  %v4436_v46 = vld [vmem:[%s9989_s2 + $0x188] sm:$0xf]  ;;  %v4709_v50 = vor.u32 %v6320_v42, %v4708_v41 }
  0x6a   :  { %1423 = vmatmul.bf16.vlgmr.msrb.gmra.mxu2 %v7322_v39  ;;  %v6252_v47 = vld [vmem:[%s9989_s2 + $0x194] sm:$0xf0]  ;;  %v4564_v51 = vld [vmem:[%s9989_s2 + $0x288] sm:$0xf]  ;;  %v4309_v52 = vor.u32 %v6220_v45, %v4308_v44 }
  0x6b   :  { %1480 = vmatpush.bf16.msra.mxu2 %v4741_v23  ;;  %1455 = vmatpush.bf16.msrb.mxu3 %v4469_v29  ;;  %v6284_v54 = vld [vmem:[%s9989_s2 + $0x294] sm:$0xf0]  ;;  %v4692_v55 = vld [vmem:[%s9989_s2 + $0x388] sm:$0xf]  ;;  %v4437_v58 = vor.u32 %v6252_v47, %v4436_v46 }
  0x6c   :  { %v6316_v56 = vld [vmem:[%s9989_s2 + $0x394] sm:$0xf0]  ;;  %v4292_v59 = vld [vmem:[%s9989_s2 + $0x68] sm:$0xf]  ;;  %v4565_v0 = vor.u32 %v6284_v54, %v4564_v51  ;;  %v6230_v51 = vld [vmem:[%s9989_s2 + $0xec] sm:$0xf] }
  0x6d   :  { %1468 = vmatpush.bf16.msra.mxu0 %v4597_v35  ;;  %1443 = vmatpush.bf16.msrb.mxu1 %v4325_v38  ;;  %v6216_v61 = vld [vmem:[%s9989_s2 + $0x74] sm:$0xf0]  ;;  %v4420_v62 = vld [vmem:[%s9989_s2 + $0x168] sm:$0xf]  ;;  %v4693_v1 = vor.u32 %v6316_v56, %v4692_v55  ;;  %v4358_v55 = vld [vmem:[%s9989_s2 + $0xf8] sm:$0xf0] }
  0x6e   :  { %v6248_v63 = vld [vmem:[%s9989_s2 + $0x174] sm:$0xf0]  ;;  %v4548_v2 = vld [vmem:[%s9989_s2 + $0x268] sm:$0xf]  ;;  %v4293_v3 = vor.u32 %v6216_v61, %v4292_v59 }
  0x6f   :  { %1481 = vmatpush.bf16.msra.mxu2 %v4725_v36  ;;  %1456 = vmatpush.bf16.msrb.mxu3 %v4453_v43  ;;  %v6280_v4 = vld [vmem:[%s9989_s2 + $0x274] sm:$0xf0]  ;;  %v4676_v5 = vld [vmem:[%s9989_s2 + $0x368] sm:$0xf]  ;;  %v4421_v7 = vor.u32 %v6248_v63, %v4420_v62 }
  0x70   :  { %v6312_v6 = vld [vmem:[%s9989_s2 + $0x374] sm:$0xf0]  ;;  %v4276_v8 = vld [vmem:[%s9989_s2 + $0x48] sm:$0xf]  ;;  %v4549_v13 = vor.u32 %v6280_v4, %v4548_v2 }
  0x71   :  { %1469 = vmatpush.bf16.msra.mxu0 %v4581_v49  ;;  %1444 = vmatpush.bf16.msrb.mxu1 %v4309_v52  ;;  %v6212_v10 = vld [vmem:[%s9989_s2 + $0x54] sm:$0xf0]  ;;  %v4404_v11 = vld [vmem:[%s9989_s2 + $0x148] sm:$0xf]  ;;  %v4677_v14 = vor.u32 %v6312_v6, %v4676_v5  ;;  %v6262_v5 = vld [vmem:[%s9989_s2 + $0x1ec] sm:$0xf] }
  0x72   :  { %v6244_v12 = vld [vmem:[%s9989_s2 + $0x154] sm:$0xf0]  ;;  %v4532_v15 = vld [vmem:[%s9989_s2 + $0x248] sm:$0xf]  ;;  %v4277_v16 = vor.u32 %v6212_v10, %v4276_v8  ;;  %v4486_v6 = vld [vmem:[%s9989_s2 + $0x1f8] sm:$0xf0] }
  0x73   :  { %1482 = vmatpush.bf16.msra.mxu2 %v4709_v50  ;;  %1457 = vmatpush.bf16.msrb.mxu3 %v4437_v58  ;;  %v6276_v17 = vld [vmem:[%s9989_s2 + $0x254] sm:$0xf0]  ;;  %v4660_v18 = vld [vmem:[%s9989_s2 + $0x348] sm:$0xf]  ;;  %v4405_v20 = vor.u32 %v6244_v12, %v4404_v11  ;;  %v6226_v8 = vld [vmem:[%s9989_s2 + $0xcc] sm:$0xf] }
  0x74   :  { %v6308_v19 = vld [vmem:[%s9989_s2 + $0x354] sm:$0xf0]  ;;  %v4260_v21 = vld [vmem:[%s9989_s2 + $0x28] sm:$0xf]  ;;  %5019 = vmatmul.msk.bf16.vlgmr.msrb.gmra.mxu0 %vm1255_vm0, %v7223_v48  ;;  %v4533_v25 = vor.u32 %v6276_v17, %v4532_v15  ;;  %v4342_v10 = vld [vmem:[%s9989_s2 + $0xd8] sm:$0xf0] }
  0x75   :  { %1470 = vmatpush.bf16.msra.mxu0 %v4565_v0  ;;  %1445 = vmatpush.bf16.msrb.mxu1 %v4293_v3  ;;  %v6208_v22 = vld [vmem:[%s9989_s2 + $0x34] sm:$0xf0]  ;;  %v4388_v23 = vld [vmem:[%s9989_s2 + $0x128] sm:$0xf]  ;;  %v4661_v26 = vor.u32 %v6308_v19, %v4660_v18  ;;  %v4361_v3 = vor.u32 %v6230_v51, %v4358_v55  ;;  %v4345_v17 = vor.u32 %v6226_v8, %v4342_v10  ;;  %v6258_v18 = vld [vmem:[%s9989_s2 + $0x1cc] sm:$0xf] }
  0x76   :  { %v6240_v24 = vld [vmem:[%s9989_s2 + $0x134] sm:$0xf0]  ;;  %v4516_v27 = vld [vmem:[%s9989_s2 + $0x228] sm:$0xf]  ;;  %v4261_v29 = vor.u32 %v6208_v22, %v4260_v21  ;;  %v4470_v19 = vld [vmem:[%s9989_s2 + $0x1d8] sm:$0xf0] }
  0x77   :  { %1483 = vmatpush.bf16.msra.mxu2 %v4693_v1  ;;  %1458 = vmatpush.bf16.msrb.mxu3 %v4421_v7  ;;  %v6272_v28 = vld [vmem:[%s9989_s2 + $0x234] sm:$0xf0]  ;;  %v4644_v30 = vld [vmem:[%s9989_s2 + $0x328] sm:$0xf]  ;;  %v4389_v33 = vor.u32 %v6240_v24, %v4388_v23  ;;  %v6222_v21 = vld [vmem:[%s9989_s2 + $0xac] sm:$0xf] }
  0x78   :  { %v6304_v31 = vld [vmem:[%s9989_s2 + $0x334] sm:$0xf0]  ;;  %v4244_v32 = vld [vmem:[%s9989_s2 + $0x8] sm:$0xf]  ;;  %v4517_v42 = vor.u32 %v6272_v28, %v4516_v27  ;;  %v4326_v22 = vld [vmem:[%s9989_s2 + $0xb8] sm:$0xf0] }
  0x79   :  { %1471 = vmatpush.bf16.msra.mxu0 %v4549_v13  ;;  %1446 = vmatpush.bf16.msrb.mxu1 %v4277_v16  ;;  %v6204_v35 = vld [vmem:[%s9989_s2 + $0x14] sm:$0xf0]  ;;  %v4372_v36 = vld [vmem:[%s9989_s2 + $0x108] sm:$0xf]  ;;  %v4645_v43 = vor.u32 %v6304_v31, %v4644_v30  ;;  %v6254_v30 = vld [vmem:[%s9989_s2 + $0x1ac] sm:$0xf] }
  0x7a   :  { %v6236_v37 = vld [vmem:[%s9989_s2 + $0x114] sm:$0xf0]  ;;  %v4868_v38 = vld [vmem:[%s9989_s2 + $0x4e8] sm:$0xf]  ;;  %v4245_v47 = vor.u32 %v6204_v35, %v4244_v32  ;;  %v4454_v31 = vld [vmem:[%s9989_s2 + $0x1b8] sm:$0xf0] }
  0x7b   :  { %1484 = vmatpush.bf16.msra.mxu2 %v4677_v14  ;;  %1459 = vmatpush.bf16.msrb.mxu3 %v4405_v20  ;;  %v6360_v40 = vld [vmem:[%s9989_s2 + $0x4f4] sm:$0xf0]  ;;  %v4996_v41 = vld [vmem:[%s9989_s2 + $0x5e8] sm:$0xf]  ;;  %v4373_v52 = vor.u32 %v6236_v37, %v4372_v36  ;;  %v4489_v14 = vor.u32 %v6262_v5, %v4486_v6  ;;  %v4310_v35 = vld [vmem:[%s9989_s2 + $0x98] sm:$0xf0] }
  0x7c   :  { %v6392_v44 = vld [vmem:[%s9989_s2 + $0x5f4] sm:$0xf0]  ;;  %v4500_v45 = vld [vmem:[%s9989_s2 + $0x208] sm:$0xf]  ;;  %v4869_v54 = vor.u32 %v6360_v40, %v4868_v38  ;;  %v4457_v40 = vor.u32 %v6254_v30, %v4454_v31  ;;  %v6242_v8 = vld [vmem:[%s9989_s2 + $0x14c] sm:$0xf] }
  0x7d   :  { %1472 = vmatpush.bf16.msra.mxu0 %v4533_v25  ;;  %v6268_v46 = vld [vmem:[%s9989_s2 + $0x214] sm:$0xf0]  ;;  %1447 = vmatpush.bf16.msrb.mxu1 %v4261_v29  ;;  %v4628_v49 = vld [vmem:[%s9989_s2 + $0x308] sm:$0xf]  ;;  %v4997_v59 = vor.u32 %v6392_v44, %v4996_v41  ;;  %v4329_v29 = vor.u32 %v6222_v21, %v4326_v22  ;;  %v6250_v44 = vld [vmem:[%s9989_s2 + $0x18c] sm:$0xf] }
  0x7e   :  { %v6300_v50 = vld [vmem:[%s9989_s2 + $0x314] sm:$0xf0]  ;;  %v5012_v56 = vld [vmem:[%s9989_s2 + $0x608] sm:$0xf]  ;;  %v4501_v63 = vor.u32 %v6268_v46, %v4500_v45  ;;  %v4438_v45 = vld [vmem:[%s9989_s2 + $0x198] sm:$0xf0] }
  0x7f   :  { %1485 = vmatpush.bf16.msra.mxu2 %v4661_v26  ;;  %1460 = vmatpush.bf16.msrb.mxu3 %v4389_v33  ;;  %v6396_v58 = vld [vmem:[%s9989_s2 + $0x614] sm:$0xf0]  ;;  %v4852_v61 = vld [vmem:[%s9989_s2 + $0x4c8] sm:$0xf]  ;;  %v4629_v0 = vor.u32 %v6300_v50, %v4628_v49  ;;  %v4473_v26 = vor.u32 %v6258_v18, %v4470_v19  ;;  %v6218_v33 = vld [vmem:[%s9989_s2 + $0x8c] sm:$0xf] }
  0x80   :  { %v6356_v62 = vld [vmem:[%s9989_s2 + $0x4d4] sm:$0xf0]  ;;  %v4980_v1 = vld [vmem:[%s9989_s2 + $0x5c8] sm:$0xf]  ;;  %v5013_v4 = vor.u32 %v6396_v58, %v5012_v56  ;;  %v4294_v49 = vld [vmem:[%s9989_s2 + $0x78] sm:$0xf0] }
  0x81   :  { %1473 = vmatpush.bf16.msra.mxu0 %v4517_v42  ;;  %v6388_v2 = vld [vmem:[%s9989_s2 + $0x5d4] sm:$0xf0]  ;;  %1448 = vmatpush.bf16.msrb.mxu1 %v4245_v47  ;;  %v4853_v7 = vor.u32 %v6356_v62, %v4852_v61  ;;  %v4836_v12 = vld [vmem:[%s9989_s2 + $0x4a8] sm:$0xf]  ;;  %v6214_v47 = vld [vmem:[%s9989_s2 + $0x6c] sm:$0xf] }
  0x82   :  { %v4981_v11 = vor.u32 %v6388_v2, %v4980_v1  ;;  %v6352_v13 = vld [vmem:[%s9989_s2 + $0x4b4] sm:$0xf0]  ;;  %v4964_v15 = vld [vmem:[%s9989_s2 + $0x5a8] sm:$0xf]  ;;  %v4297_v58 = vor.u32 %v6214_v47, %v4294_v49  ;;  %v4422_v61 = vld [vmem:[%s9989_s2 + $0x178] sm:$0xf0] }
  0x83   :  { %1486 = vmatpush.bf16.msra.mxu2 %v4645_v43  ;;  %1461 = vmatpush.bf16.msrb.mxu3 %v4373_v52  ;;  %v6384_v16 = vld [vmem:[%s9989_s2 + $0x5b4] sm:$0xf0]  ;;  %v4837_v20 = vor.u32 %v6352_v13, %v4836_v12  ;;  %v4820_v24 = vld [vmem:[%s9989_s2 + $0x488] sm:$0xf]  ;;  %v4313_v43 = vor.u32 %v6218_v33, %v4310_v35  ;;  %v4406_v10 = vld [vmem:[%s9989_s2 + $0x158] sm:$0xf0] }
  0x84   :  { %v4965_v23 = vor.u32 %v6384_v16, %v4964_v15  ;;  %v6348_v25 = vld [vmem:[%s9989_s2 + $0x494] sm:$0xf0]  ;;  %1449 = vmatmul.bf16.vlgmr.msrb.gmra.mxu1 %v7114_v57  ;;  %v4948_v27 = vld [vmem:[%s9989_s2 + $0x588] sm:$0xf]  ;;  %v6206_v12 = vld [vmem:[%s9989_s2 + $0x2c] sm:$0xf]  ;;  %v4409_v19 = vor.u32 %v6242_v8, %v4406_v10 }
  0x85   :  { %1493 = vmatpush.bf16.msra.mxu1 %v4869_v54  ;;  %1474 = vmatpush.bf16.msra.mxu0 %v4501_v63  ;;  %v6380_v28 = vld [vmem:[%s9989_s2 + $0x594] sm:$0xf0]  ;;  %v4821_v32 = vor.u32 %v6348_v25, %v4820_v24  ;;  %v4804_v37 = vld [vmem:[%s9989_s2 + $0x468] sm:$0xf]  ;;  %v4441_v54 = vor.u32 %v6250_v44, %v4438_v45  ;;  %v6210_v63 = vld [vmem:[%s9989_s2 + $0x4c] sm:$0xf] }
  0x86   :  { %1462 = vmatmul.bf16.vlgmr.msrb.gmra.mxu3 %v7144_v9  ;;  %v4949_v36 = vor.u32 %v6380_v28, %v4948_v27  ;;  %v6344_v38 = vld [vmem:[%s9989_s2 + $0x474] sm:$0xf0]  ;;  %v4932_v41 = vld [vmem:[%s9989_s2 + $0x568] sm:$0xf]  ;;  %v4262_v13 = vld [vmem:[%s9989_s2 + $0x38] sm:$0xf0] }
  0x87   :  { %1506 = vmatpush.bf16.msra.mxu3 %v4997_v59  ;;  %1487 = vmatpush.bf16.msra.mxu2 %v4629_v0  ;;  %v6376_v42 = vld [vmem:[%s9989_s2 + $0x574] sm:$0xf0]  ;;  %v4805_v46 = vor.u32 %v6344_v38, %v4804_v37  ;;  %v4788_v51 = vld [vmem:[%s9989_s2 + $0x448] sm:$0xf]  ;;  %v6246_v59 = vld [vmem:[%s9989_s2 + $0x16c] sm:$0xf] }
  0x88   :  { %1475 = vmatmul.bf16.vlgmr.msra.gmra.mxu0 %v7103_v53  ;;  %v4933_v50 = vor.u32 %v6376_v42, %v4932_v41  ;;  %v6340_v52 = vld [vmem:[%s9989_s2 + $0x454] sm:$0xf0]  ;;  %v4916_v55 = vld [vmem:[%s9989_s2 + $0x548] sm:$0xf]  ;;  %v4278_v0 = vld [vmem:[%s9989_s2 + $0x58] sm:$0xf0] }
  0x89   :  { %1526 = vmatpush.bf16.msrb.mxu0 %v5013_v4  ;;  %1494 = vmatpush.bf16.msra.mxu1 %v4853_v7  ;;  %v6372_v56 = vld [vmem:[%s9989_s2 + $0x554] sm:$0xf0]  ;;  %v4789_v62 = vor.u32 %v6340_v52, %v4788_v51  ;;  %v4772_v2 = vld [vmem:[%s9989_s2 + $0x428] sm:$0xf]  ;;  %v4425_v4 = vor.u32 %v6246_v59, %v4422_v61  ;;  %v4281_v7 = vor.u32 %v6210_v63, %v4278_v0  ;;  %v4614_v21 = vld [vmem:[%s9989_s2 + $0x2f8] sm:$0xf0] }
  0x8a   :  { %1488 = vmatmul.bf16.vlgmr.msra.gmra.mxu2 %v7116_v60  ;;  %v4917_v1 = vor.u32 %v6372_v56, %v4916_v55  ;;  %v4900_v5 = vld [vmem:[%s9989_s2 + $0x528] sm:$0xf]  ;;  %v6368_v6 = vld [vmem:[%s9989_s2 + $0x534] sm:$0xf0]  ;;  %v6326_v22 = vld [vmem:[%s9989_s2 + $0x3ec] sm:$0xf] }
  0x8b   :  { %1532 = vmatpush.bf16.msrb.mxu2 %v4361_v3  ;;  %1507 = vmatpush.bf16.msra.mxu3 %v4981_v11  ;;  %v6336_v3 = vld [vmem:[%s9989_s2 + $0x434] sm:$0xf0]  ;;  %v4901_v15 = vor.u32 %v6368_v6, %v4900_v5  ;;  %v4742_v24 = vld [vmem:[%s9989_s2 + $0x3f8] sm:$0xf0]  ;;  %v6238_v25 = vld [vmem:[%s9989_s2 + $0x12c] sm:$0xf] }
  0x8c   :  { %v4773_v11 = vor.u32 %v6336_v3, %v4772_v2  ;;  %v6332_v16 = vld [vmem:[%s9989_s2 + $0x414] sm:$0xf0]  ;;  %v6202_v28 = vld [vmem:[%s9989_s2 + $0xc] sm:$0xf]  ;;  %v4870_v33 = vld [vmem:[%s9989_s2 + $0x4f8] sm:$0xf0]  ;;  %v4745_v35 = vor.u32 %v6326_v22, %v4742_v24 }
  0x8d   :  { %1545 = vmatpush.bf16.msra.mxu0 %v4489_v14  ;;  %1495 = vmatpush.bf16.msra.mxu1 %v4837_v20  ;;  %v4756_v14 = vld [vmem:[%s9989_s2 + $0x408] sm:$0xf]  ;;  %v6364_v18 = vld [vmem:[%s9989_s2 + $0x514] sm:$0xf0]  ;;  %v6294_v20 = vld [vmem:[%s9989_s2 + $0x2ec] sm:$0xf] }
  0x8e   :  { %v4757_v27 = vor.u32 %v6332_v16, %v4756_v14  ;;  %v4617_v31 = vor.u32 %v6294_v20, %v4614_v21  ;;  %v6290_v37 = vld [vmem:[%s9989_s2 + $0x2cc] sm:$0xf]  ;;  %v4598_v38 = vld [vmem:[%s9989_s2 + $0x2d8] sm:$0xf0] }
  0x8f   :  { %1533 = vmatpush.bf16.msrb.mxu2 %v4345_v17  ;;  %1508 = vmatpush.bf16.msra.mxu3 %v4965_v23  ;;  %v4884_v17 = vld [vmem:[%s9989_s2 + $0x508] sm:$0xf]  ;;  %v4265_v23 = vor.u32 %v6206_v12, %v4262_v13  ;;  %v4726_v42 = vld [vmem:[%s9989_s2 + $0x3d8] sm:$0xf0]  ;;  %v4601_v49 = vor.u32 %v6290_v37, %v4598_v38  ;;  %v6286_v55 = vld [vmem:[%s9989_s2 + $0x2ac] sm:$0xf] }
  0x90   :  { %v4885_v30 = vor.u32 %v6364_v18, %v4884_v17  ;;  %v4374_v44 = vld [vmem:[%s9989_s2 + $0x118] sm:$0xf0]  ;;  %v6318_v59 = vld [vmem:[%s9989_s2 + $0x3ac] sm:$0xf] }
  0x91   :  { %1546 = vmatpush.bf16.msra.mxu0 %v4473_v26  ;;  %1496 = vmatpush.bf16.msra.mxu1 %v4821_v32  ;;  %v4390_v26 = vld [vmem:[%s9989_s2 + $0x138] sm:$0xf0]  ;;  %v6358_v32 = vld [vmem:[%s9989_s2 + $0x4ec] sm:$0xf] }
  0x92   :  { %v4873_v45 = vor.u32 %v6358_v32, %v4870_v33  ;;  %v4998_v47 = vld [vmem:[%s9989_s2 + $0x5f8] sm:$0xf0]  ;;  %v6386_v63 = vld [vmem:[%s9989_s2 + $0x5cc] sm:$0xf] }
  0x93   :  { %1534 = vmatpush.bf16.msrb.mxu2 %v4329_v29  ;;  %1509 = vmatpush.bf16.msra.mxu3 %v4949_v36  ;;  %v4246_v29 = vld [vmem:[%s9989_s2 + $0x18] sm:$0xf0]  ;;  %v4393_v36 = vor.u32 %v6238_v25, %v4390_v26  ;;  %v6350_v2 = vld [vmem:[%s9989_s2 + $0x4ac] sm:$0xf] }
  0x94   :  { %v4249_v41 = vor.u32 %v6202_v28, %v4246_v29  ;;  %v4854_v51 = vld [vmem:[%s9989_s2 + $0x4d8] sm:$0xf0]  ;;  %v6282_v5 = vld [vmem:[%s9989_s2 + $0x28c] sm:$0xf] }
  0x95   :  { %1547 = vmatpush.bf16.msra.mxu0 %v4457_v40  ;;  %1497 = vmatpush.bf16.msra.mxu1 %v4805_v46  ;;  %v6322_v40 = vld [vmem:[%s9989_s2 + $0x3cc] sm:$0xf]  ;;  %v4582_v56 = vld [vmem:[%s9989_s2 + $0x2b8] sm:$0xf0] }
  0x96   :  { %v6390_v46 = vld [vmem:[%s9989_s2 + $0x5ec] sm:$0xf]  ;;  %v4729_v52 = vor.u32 %v6322_v40, %v4726_v42  ;;  %v4710_v61 = vld [vmem:[%s9989_s2 + $0x3b8] sm:$0xf0] }
  0x97   :  { %1535 = vmatpush.bf16.msrb.mxu2 %v4313_v43  ;;  %1510 = vmatpush.bf16.msra.mxu3 %v4933_v50  ;;  %v6234_v43 = vld [vmem:[%s9989_s2 + $0x10c] sm:$0xf]  ;;  %v4982_v0 = vld [vmem:[%s9989_s2 + $0x5d8] sm:$0xf0] }
  0x98   :  { %5020 = vmatmul.msk.bf16.vlgmr.msrb.gmra.mxu0 %vm1255_vm0, %v7223_v48  ;;  %v6354_v50 = vld [vmem:[%s9989_s2 + $0x4cc] sm:$0xf]  ;;  %v4838_v3 = vld [vmem:[%s9989_s2 + $0x4b8] sm:$0xf0] }
  0x99   :  { %1548 = vmatpush.bf16.msra.mxu0 %v4441_v54  ;;  %1498 = vmatpush.bf16.msra.mxu1 %v4789_v62  ;;  %v4377_v54 = vor.u32 %v6234_v43, %v4374_v44  ;;  %v4857_v62 = vor.u32 %v6354_v50, %v4854_v51  ;;  %v4566_v6 = vld [vmem:[%s9989_s2 + $0x298] sm:$0xf0]  ;;  %v6314_v8 = vld [vmem:[%s9989_s2 + $0x38c] sm:$0xf] }
  0x9a   :  { %v4694_v10 = vld [vmem:[%s9989_s2 + $0x398] sm:$0xf0]  ;;  %v6382_v12 = vld [vmem:[%s9989_s2 + $0x5ac] sm:$0xf]  ;;  %v4569_v14 = vor.u32 %v6282_v5, %v4566_v6  ;;  %v5080_v5 = vld [vmem:[%s9991_s4 + $0x70] sm:$0xf] }
  0x9b   :  { %1536 = vmatpush.bf16.msrb.mxu2 %v4297_v58  ;;  %1511 = vmatpush.bf16.msra.mxu3 %v4917_v1  ;;  %v5001_v58 = vor.u32 %v6390_v46, %v4998_v47  ;;  %v4585_v1 = vor.u32 %v6286_v55, %v4582_v56  ;;  %v4966_v13 = vld [vmem:[%s9989_s2 + $0x5b8] sm:$0xf0]  ;;  %v4697_v16 = vor.u32 %v6314_v8, %v4694_v10  ;;  %v6278_v17 = vld [vmem:[%s9989_s2 + $0x26c] sm:$0xf] }
  0x9c   :  { %v4550_v18 = vld [vmem:[%s9989_s2 + $0x278] sm:$0xf0]  ;;  %v6310_v20 = vld [vmem:[%s9989_s2 + $0x36c] sm:$0xf] }
  0x9d   :  { %1549 = vmatpush.bf16.msra.mxu0 %v4425_v4  ;;  %1499 = vmatpush.bf16.msra.mxu1 %v4773_v11  ;;  %v4713_v4 = vor.u32 %v6318_v59, %v4710_v61  ;;  %v4841_v11 = vor.u32 %v6350_v2, %v4838_v3  ;;  %v4950_v24 = vld [vmem:[%s9989_s2 + $0x598] sm:$0xf0]  ;;  %v4553_v25 = vor.u32 %v6278_v17, %v4550_v18  ;;  %v6342_v26 = vld [vmem:[%s9989_s2 + $0x46c] sm:$0xf] }
  0x9e   :  { %v6274_v29 = vld [vmem:[%s9989_s2 + $0x24c] sm:$0xf]  ;;  %v4934_v38 = vld [vmem:[%s9989_s2 + $0x578] sm:$0xf0] }
  0x9f   :  { %1537 = vmatpush.bf16.msrb.mxu2 %v4281_v7  ;;  %1512 = vmatpush.bf16.msra.mxu3 %v4901_v15  ;;  %v4985_v7 = vor.u32 %v6386_v63, %v4982_v0  ;;  %v6346_v15 = vld [vmem:[%s9989_s2 + $0x48c] sm:$0xf]  ;;  %v4790_v43 = vld [vmem:[%s9989_s2 + $0x458] sm:$0xf0] }
  0xa0   :  { %v6306_v33 = vld [vmem:[%s9989_s2 + $0x34c] sm:$0xf]  ;;  %v4518_v47 = vld [vmem:[%s9989_s2 + $0x238] sm:$0xf0] }
  0xa1   :  { %1550 = vmatpush.bf16.msra.mxu0 %v4409_v19  ;;  %1500 = vmatpush.bf16.msra.mxu1 %v4757_v27  ;;  %v4969_v19 = vor.u32 %v6382_v12, %v4966_v13  ;;  %v4806_v27 = vld [vmem:[%s9989_s2 + $0x478] sm:$0xf0]  ;;  %v6374_v37 = vld [vmem:[%s9989_s2 + $0x56c] sm:$0xf] }
  0xa2   :  { %v6338_v42 = vld [vmem:[%s9989_s2 + $0x44c] sm:$0xf]  ;;  %v4646_v51 = vld [vmem:[%s9989_s2 + $0x338] sm:$0xf0] }
  0xa3   :  { %1538 = vmatpush.bf16.msrb.mxu2 %v4265_v23  ;;  %1513 = vmatpush.bf16.msra.mxu3 %v4885_v30  ;;  %v6378_v23 = vld [vmem:[%s9989_s2 + $0x58c] sm:$0xf]  ;;  %v4534_v30 = vld [vmem:[%s9989_s2 + $0x258] sm:$0xf0] }
  0xa4   :  { %1501 = vmatmul.bf16.vlgmr.msra.gmra.mxu1 %v7311_v34  ;;  %v6270_v46 = vld [vmem:[%s9989_s2 + $0x22c] sm:$0xf]  ;;  %v4918_v56 = vld [vmem:[%s9989_s2 + $0x558] sm:$0xf0] }
  0xa5   :  { %1558 = vmatpush.bf16.msrb.mxu1 %v4617_v31  ;;  %1551 = vmatpush.bf16.msra.mxu0 %v4393_v36  ;;  %v7998_v21 = vpop.f32.mrf.mxu0  ;;  %v4953_v31 = vor.u32 %v6378_v23, %v4950_v24  ;;  %v8018_v32 = vpop.f32.mrf.mxu1  ;;  %v4809_v36 = vor.u32 %v6342_v26, %v4806_v27  ;;  %v6302_v50 = vld [vmem:[%s9989_s2 + $0x32c] sm:$0xf]  ;;  %v4521_v59 = vor.u32 %v6270_v46, %v4518_v47  ;;  %v4630_v3 = vld [vmem:[%s9989_s2 + $0x318] sm:$0xf0]  ;;  %v5072_v26 = vld [vmem:[%s9991_s4 + $0x60] sm:$0xf] }
  0xa6   :  { %1514 = vmatmul.bf16.vlgmr.msra.gmra.mxu3 %v7322_v39  ;;  %v6370_v55 = vld [vmem:[%s9989_s2 + $0x54c] sm:$0xf]  ;;  %v4649_v0 = vor.u32 %v6302_v50, %v4646_v51  ;;  %v5014_v8 = vld [vmem:[%s9989_s2 + $0x618] sm:$0xf0]  ;;  %v6410_v27 = vld [vmem:[%s9991_s4 + $0x64] sm:$0xf0] }
  0xa7   :  { %1571 = vmatpush.bf16.msrb.mxu3 %v4745_v35  ;;  %1539 = vmatpush.bf16.msrb.mxu2 %v4249_v41  ;;  %v4662_v35 = vld [vmem:[%s9989_s2 + $0x358] sm:$0xf0]  ;;  %v4537_v41 = vor.u32 %v6274_v29, %v4534_v30  ;;  %v6334_v61 = vld [vmem:[%s9989_s2 + $0x42c] sm:$0xf]  ;;  %v5120_v50 = vld [vmem:[%s9991_s4 + $0xc0] sm:$0xf] }
  0xa8   :  { %v8032_v40 = vpop.f32.mrf.mxu2  ;;  %v4665_v44 = vor.u32 %v6306_v33, %v4662_v35  ;;  %v6266_v63 = vld [vmem:[%s9989_s2 + $0x20c] sm:$0xf]  ;;  %v4902_v13 = vld [vmem:[%s9989_s2 + $0x538] sm:$0xf0]  ;;  %v5136_v33 = vld [vmem:[%s9991_s4 + $0xe0] sm:$0xf] }
  0xa9   :  { %1559 = vmatpush.bf16.msrb.mxu1 %v4601_v49  ;;  %1552 = vmatpush.bf16.msra.mxu0 %v4377_v54  ;;  %v4937_v49 = vor.u32 %v6374_v37, %v4934_v38  ;;  %v4793_v54 = vor.u32 %v6338_v42, %v4790_v43  ;;  %v6298_v2 = vld [vmem:[%s9989_s2 + $0x30c] sm:$0xf]  ;;  %v4886_v29 = vld [vmem:[%s9989_s2 + $0x518] sm:$0xf0]  ;;  %v6426_v35 = vld [vmem:[%s9991_s4 + $0xe4] sm:$0xf0] }
  0xaa   :  { %1540 = vmatmul.bf16.vlgmr.msrb.gmra.mxu2 %v7114_v57  ;;  %v4822_v57 = vld [vmem:[%s9989_s2 + $0x498] sm:$0xf0]  ;;  %v6366_v12 = vld [vmem:[%s9989_s2 + $0x52c] sm:$0xf]  ;;  %v4633_v18 = vor.u32 %v6298_v2, %v4630_v3  ;;  %v6408_v38 = vld [vmem:[%s9991_s4 + $0x54] sm:$0xf0]  ;;  %v5137_v42 = vor.u32 %v6426_v35, %v5136_v33 }
  0xab   :  { %1584 = vmatpush.bf16.msra.mxu2 %v4873_v45  ;;  %1572 = vmatpush.bf16.msrb.mxu3 %v4729_v52  ;;  %v4825_v22 = vor.u32 %v6346_v15, %v4822_v57  ;;  %v8040_v45 = vpop.f32.mrf.mxu3  ;;  %v6330_v57 = vld [vmem:[%s9989_s2 + $0x40c] sm:$0xf]  ;;  %v4905_v24 = vor.u32 %v6366_v12, %v4902_v13  ;;  %v6402_v2 = vld [vmem:[%s9991_s4 + $0x24] sm:$0xf0]  ;;  %v5104_v3 = vld [vmem:[%s9991_s4 + $0xa0] sm:$0xf] }
  0xac   :  { %1553 = vmatmul.bf16.vlgmr.msra.gmra.mxu0 %v7144_v9  ;;  %v4678_v9 = vld [vmem:[%s9989_s2 + $0x378] sm:$0xf0] }
  0xad   :  { %1597 = vmatpush.bf16.msrb.mxu0 %v5001_v58  ;;  %1560 = vmatpush.bf16.msrb.mxu1 %v4585_v1  ;;  %v4681_v28 = vor.u32 %v6310_v20, %v4678_v9  ;;  %v1270_v52 = vpop.f32.mrf.mxu0  ;;  %v8063_v58 = vld [vmem:[%s9990_s3] sm:$0xf]  ;;  %v4502_v1 = vld [vmem:[%s9989_s2 + $0x218] sm:$0xf0]  ;;  %v1283_v6 = vpop.f32.mrf.mxu1  ;;  %v5144_v9 = vld [vmem:[%s9991_s4 + $0xf0] sm:$0xf] }
  0xae   :  { %v4505_v15 = vor.u32 %v6266_v63, %v4502_v1  ;;  %v243_v17 = vperm.slane %v8063_v58, 0  ;;  %v5040_v1 = vld [vmem:[%s9991_s4 + $0x20] sm:$0xf] }
  0xaf   :  { %1585 = vmatpush.bf16.msra.mxu2 %v4857_v62  ;;  %1573 = vmatpush.bf16.msrb.mxu3 %v4713_v4  ;;  %v4774_v62 = vld [vmem:[%s9989_s2 + $0x438] sm:$0xf0]  ;;  %v4921_v4 = vor.u32 %v6370_v55, %v4918_v56 }
  0xb0   :  { %v4777_v10 = vor.u32 %v6334_v61, %v4774_v62  ;;  %v6420_v62 = vld [vmem:[%s9991_s4 + $0xb4] sm:$0xf0] }
  0xb1   :  { %1598 = vmatpush.bf16.msrb.mxu0 %v4985_v7  ;;  %1561 = vmatpush.bf16.msrb.mxu1 %v4569_v14  ;;  %v6394_v7 = vld [vmem:[%s9989_s2 + $0x60c] sm:$0xf]  ;;  %v1296_v14 = vpop.f32.mrf.mxu2 }
  0xb3   :  { %1586 = vmatpush.bf16.msra.mxu2 %v4841_v11  ;;  %1574 = vmatpush.bf16.msrb.mxu3 %v4697_v16  ;;  %v6412_v11 = vld [vmem:[%s9991_s4 + $0x74] sm:$0xf0]  ;;  %v4758_v16 = vld [vmem:[%s9989_s2 + $0x418] sm:$0xf0]  ;;  %v1309_v20 = vpop.f32.mrf.mxu3 }
  0xb4   :  { %v5081_v23 = vor.u32 %v6412_v11, %v5080_v5  ;;  %v5041_v5 = vor.u32 %v6402_v2, %v5040_v1  ;;  %v5082_v20 = vld [vmem:[%s9991_s4 + $0x78] sm:$0xf0] }
  0xb5   :  { %1599 = vmatpush.bf16.msrb.mxu0 %v4969_v19  ;;  %1562 = vmatpush.bf16.msrb.mxu1 %v4553_v25  ;;  %v5017_v19 = vor.u32 %v6394_v7, %v5014_v8  ;;  %v4761_v25 = vor.u32 %v6330_v57, %v4758_v16  ;;  %v5032_v7 = vld [vmem:[%s9991_s4 + $0x10] sm:$0xf]  ;;  %v6400_v8 = vld [vmem:[%s9991_s4 + $0x14] sm:$0xf0] }
  0xb6   :  { %v5033_v57 = vor.u32 %v6400_v8, %v5032_v7  ;;  %v6440_v7 = vld [vmem:[%s9991_s4 + $0x154] sm:$0xf0]  ;;  %v6401_v8 = vld [vmem:[%s9991_s4 + $0x24] sm:$0xf] }
  0xb7   :  { %1587 = vmatpush.bf16.msra.mxu2 %v4825_v22  ;;  %1575 = vmatpush.bf16.msrb.mxu3 %v4681_v28  ;;  %v6428_v22 = vld [vmem:[%s9991_s4 + $0xf4] sm:$0xf0]  ;;  %v6362_v28 = vld [vmem:[%s9989_s2 + $0x50c] sm:$0xf] }
  0xb8   :  { %v5145_v30 = vor.u32 %v6428_v22, %v5144_v9  ;;  %v4889_v37 = vor.u32 %v6362_v28, %v4886_v29  ;;  %v5088_v22 = vld [vmem:[%s9991_s4 + $0x80] sm:$0xf] }
  0xb9   :  { %1600 = vmatpush.bf16.msrb.mxu0 %v4953_v31  ;;  %1563 = vmatpush.bf16.msrb.mxu1 %v4537_v41  ;;  %v1269_v31 = vadd.f32 %v7998_v21, %v243_v17  ;;  %v5064_v21 = vld [vmem:[%s9991_s4 + $0x50] sm:$0xf]  ;;  %v1346_v41 = vpop.f32.mrf.mxu2  ;;  %v5024_v17 = vld [vmem:[%s9991_s4] sm:$0xf] }
  0xba   :  { %v5065_v46 = vor.u32 %v6408_v38, %v5064_v21  ;;  %v6425_v21 = vld [vmem:[%s9991_s4 + $0xe4] sm:$0xf]  ;;  %v5138_v38 = vld [vmem:[%s9991_s4 + $0xe8] sm:$0xf0] }
  0xbb   :  { %1588 = vmatpush.bf16.msra.mxu2 %v4809_v36  ;;  %1576 = vmatpush.bf16.msrb.mxu3 %v4665_v44  ;;  %v5073_v36 = vor.u32 %v6410_v27, %v5072_v26  ;;  %v1282_v43 = vadd.f32 %v8018_v32, %v1269_v31  ;;  %v6424_v44 = vld [vmem:[%s9991_s4 + $0xd4] sm:$0xf0]  ;;  %v6406_v32 = vld [vmem:[%s9991_s4 + $0x44] sm:$0xf0]  ;;  %v5146_v26 = vld [vmem:[%s9991_s4 + $0xf8] sm:$0xf0] }
  0xbc   :  { %v5074_v31 = vld [vmem:[%s9991_s4 + $0x68] sm:$0xf0] }
  0xbd   :  { %1601 = vmatpush.bf16.msrb.mxu0 %v4937_v49  ;;  %1564 = vmatpush.bf16.msrb.mxu1 %v4521_v59  ;;  %v1295_v49 = vadd.f32 %v8032_v40, %v1282_v43  ;;  %v6404_v40 = vld [vmem:[%s9991_s4 + $0x34] sm:$0xf0]  ;;  %v6407_v43 = vld [vmem:[%s9991_s4 + $0x54] sm:$0xf] }
  0xbf   :  { %1589 = vmatpush.bf16.msra.mxu2 %v4793_v54  ;;  %1577 = vmatpush.bf16.msrb.mxu3 %v4649_v0  ;;  %v5048_v54 = vld [vmem:[%s9991_s4 + $0x30] sm:$0xf]  ;;  %v1308_v61 = vadd.f32 %v8040_v45, %v1295_v49  ;;  %v6444_v49 = vld [vmem:[%s9991_s4 + $0x174] sm:$0xf0] }
  0xc0   :  { %v5049_v63 = vor.u32 %v6404_v40, %v5048_v54 }
  0xc1   :  { %1602 = vmatpush.bf16.msrb.mxu0 %v4921_v4  ;;  %1565 = vmatpush.bf16.msrb.mxu1 %v4505_v15  ;;  %v1320_v52 = vpop.f32.mrf.mxu0  ;;  %v1333_v55 = vpop.f32.mrf.mxu1  ;;  %v6418_v4 = vld [vmem:[%s9991_s4 + $0xa4] sm:$0xf0]  ;;  %v5096_v15 = vld [vmem:[%s9991_s4 + $0x90] sm:$0xf] }
  0xc2   :  { %v1348_v56 = vpop.f32.mrf.mxu2  ;;  %v1321_v0 = vadd.f32 %v1320_v52, %v1308_v61  ;;  %v5105_v13 = vor.u32 %v6418_v4, %v5104_v3  ;;  %v5058_v52 = vld [vmem:[%s9991_s4 + $0x48] sm:$0xf0]  ;;  %v6403_v61 = vld [vmem:[%s9991_s4 + $0x34] sm:$0xf]  ;;  %v5114_v4 = vld [vmem:[%s9991_s4 + $0xb8] sm:$0xf0] }
  0xc3   :  { %1590 = vmatpush.bf16.msra.mxu2 %v4777_v10  ;;  %1578 = vmatpush.bf16.msrb.mxu3 %v4633_v18  ;;  %v6398_v18 = vld [vmem:[%s9991_s4 + $0x4] sm:$0xf0]  ;;  %v5122_v56 = vld [vmem:[%s9991_s4 + $0xc8] sm:$0xf0]  ;;  %v6419_v3 = vld [vmem:[%s9991_s4 + $0xb4] sm:$0xf] }
  0xc4   :  { %1566 = vmatmul.bf16.vlgmr.msrb.gmra.mxu1 %v7103_v53  ;;  %v5128_v53 = vld [vmem:[%s9991_s4 + $0xd0] sm:$0xf]  ;;  %v1334_v6 = vadd.f32 %v1333_v55, %v1321_v0  ;;  %v6421_v55 = vld [vmem:[%s9991_s4 + $0xc4] sm:$0xf] }
  0xc5   :  { %1617 = vmatpush.bf16.msra.mxu1 %v5017_v19  ;;  %1603 = vmatpush.bf16.msrb.mxu0 %v4905_v24  ;;  %v5129_v47 = vor.u32 %v6424_v44, %v5128_v53  ;;  %v6411_v19 = vld [vmem:[%s9991_s4 + $0x74] sm:$0xf]  ;;  %v5025_v24 = vor.u32 %v6398_v18, %v5024_v17  ;;  %v5066_v53 = vld [vmem:[%s9991_s4 + $0x58] sm:$0xf0]  ;;  %v5141_v44 = vor.u32 %v6425_v21, %v5138_v38  ;;  %v5184_v18 = vld [vmem:[%s9991_s4 + $0x140] sm:$0xf] }
  0xc6   :  { %1579 = vmatmul.bf16.vlgmr.msrb.gmra.mxu3 %v7116_v60  ;;  %v5056_v60 = vld [vmem:[%s9991_s4 + $0x40] sm:$0xf]  ;;  %v1347_v16 = vadd.f32 %v1346_v41, %v1334_v6  ;;  %v5085_v28 = vor.u32 %v6411_v19, %v5082_v20  ;;  %v5125_v1 = vor.u32 %v6421_v55, %v5122_v56  ;;  %v5192_v6 = vld [vmem:[%s9991_s4 + $0x150] sm:$0xf]  ;;  %v5034_v17 = vld [vmem:[%s9991_s4 + $0x18] sm:$0xf0] }
  0xc7   :  { %2021 = vmatpush.bf16.msra.mxu3 %v5081_v23  ;;  %1591 = vmatpush.bf16.msra.mxu2 %v4761_v25  ;;  %v5057_v51 = vor.u32 %v6406_v32, %v5056_v60  ;;  %v6414_v23 = vld [vmem:[%s9991_s4 + $0x84] sm:$0xf0]  ;;  %v6427_v25 = vld [vmem:[%s9991_s4 + $0xf4] sm:$0xf] }
  0xc8   :  { %v1623_v27 = vmax.f32 %v1347_v16, 0.0  ;;  %v5089_v33 = vor.u32 %v6414_v23, %v5088_v22  ;;  %v6423_v32 = vld [vmem:[%s9991_s4 + $0xd4] sm:$0xf]  ;;  %v6438_v19 = vld [vmem:[%s9991_s4 + $0x144] sm:$0xf0] }
  0xc9   :  { %2034 = vmatpush.bf16.msrb.mxu1 %v5145_v30  ;;  %1604 = vmatpush.bf16.msrb.mxu0 %v4889_v37  ;;  %v1322_v10 = vpop.f32.mrf.mxu0  ;;  %v1359_v11 = vpop.f32.mrf.mxu3  ;;  %v6409_v30 = vld [vmem:[%s9991_s4 + $0x64] sm:$0xf]  ;;  %v244_v37 = vperm.slane %v8063_v58, 1  ;;  %v6399_v16 = vld [vmem:[%s9991_s4 + $0x14] sm:$0xf]  ;;  %v5185_v23 = vor.u32 %v6438_v19, %v5184_v18 }
  0xca   :  { %1592 = vmatmul.bf16.vlgmr.msra.gmra.mxu2 %v7311_v34  ;;  %v6422_v34 = vld [vmem:[%s9991_s4 + $0xc4] sm:$0xf0]  ;;  %v1335_v12 = vpop.f32.mrf.mxu1  ;;  %v8239_v41 = vpack.c.bf16 %v1623_v27, %v1623_v27  ;;  %v5042_v10 = vld [vmem:[%s9991_s4 + $0x28] sm:$0xf0]  ;;  %v5098_v27 = vld [vmem:[%s9991_s4 + $0x98] sm:$0xf0] }
  0xcb   :  { %2022 = vmatpush.bf16.msra.mxu3 %v5073_v36  ;;  %v5121_v59 = vor.u32 %v6422_v34, %v5120_v50  ;;  %v5149_v36 = vor.u32 %v6427_v25, %v5146_v26  ;;  %v1360_v60 = vadd.f32 %v1359_v11, %v244_v37  ;;  %v5069_v50 = vor.u32 %v6407_v43, %v5066_v53  ;;  %v6415_v26 = vld [vmem:[%s9991_s4 + $0x94] sm:$0xf]  ;;  %v6434_v37 = vld [vmem:[%s9991_s4 + $0x124] sm:$0xf0]  ;;  %v6413_v43 = vld [vmem:[%s9991_s4 + $0x84] sm:$0xf] }
  0xcc   :  { %1605 = vmatmul.bf16.vlgmr.msrb.gmra.mxu0 %v7322_v39  ;;  %v5112_v39 = vld [vmem:[%s9991_s4 + $0xb0] sm:$0xf]  ;;  %v5193_v11 = vor.u32 %v6440_v7, %v5192_v6  ;;  %v5101_v38 = vor.u32 %v6415_v26, %v5098_v27  ;;  %v5090_v53 = vld [vmem:[%s9991_s4 + $0x88] sm:$0xf0]  ;;  %v6430_v55 = vld [vmem:[%s9991_s4 + $0x104] sm:$0xf0] }
  0xcd   :  { %2035 = vmatpush.bf16.msrb.mxu1 %v5137_v42  ;;  %v5113_v45 = vor.u32 %v6420_v62, %v5112_v39  ;;  %v1372_v14 = vpop.f32.mrf.mxu2  ;;  %v5077_v42 = vor.u32 %v6409_v30, %v5074_v31  ;;  %v5050_v39 = vld [vmem:[%s9991_s4 + $0x38] sm:$0xf0]  ;;  %v5200_v62 = vld [vmem:[%s9991_s4 + $0x160] sm:$0xf]  ;;  %v5176_v30 = vld [vmem:[%s9991_s4 + $0x130] sm:$0xf] }
  0xce   :  { %v1373_v40 = vadd.f32 %v1372_v14, %v1360_v60  ;;  %v6436_v31 = vld [vmem:[%s9991_s4 + $0x134] sm:$0xf0]  ;;  %v5160_v60 = vld [vmem:[%s9991_s4 + $0x110] sm:$0xf]  ;;  %v5194_v7 = vld [vmem:[%s9991_s4 + $0x158] sm:$0xf0] }
  0xcf   :  { %2023 = vmatpush.bf16.msra.mxu3 %v5065_v46  ;;  %v5208_v46 = vld [vmem:[%s9991_s4 + $0x170] sm:$0xf]  ;;  %v6435_v18 = vld [vmem:[%s9991_s4 + $0x134] sm:$0xf]  ;;  %v6433_v27 = vld [vmem:[%s9991_s4 + $0x124] sm:$0xf] }
  0xd0   :  { %v5209_v34 = vor.u32 %v6444_v49, %v5208_v46 }
  0xd1   :  { %2036 = vmatpush.bf16.msrb.mxu1 %v5129_v47  ;;  %v1361_v29 = vpop.f32.mrf.mxu3  ;;  %v5130_v47 = vld [vmem:[%s9991_s4 + $0xd8] sm:$0xf0] }
  0xd2   :  { %v5133_v54 = vor.u32 %v6423_v32, %v5130_v47  ;;  %2047 = vmatpush.bf16.msrb.mxu2 %v5209_v34  ;;  %v6397_v29 = vld [vmem:[%s9991_s4 + $0x4] sm:$0xf]  ;;  %v6432_v32 = vld [vmem:[%s9991_s4 + $0x114] sm:$0xf0] }
  0xd3   :  { %2024 = vmatpush.bf16.msra.mxu3 %v5057_v51  ;;  %v6405_v51 = vld [vmem:[%s9991_s4 + $0x44] sm:$0xf] }
  0xd4   :  { %5021 = vmatmul.msk.bf16.vlgmr.msra.gmra.mxu1 %vm1255_vm0, %v7223_v48  ;;  %v6416_v48 = vld [vmem:[%s9991_s4 + $0x94] sm:$0xf0] }
  0xd5   :  { %2037 = vmatpush.bf16.msrb.mxu1 %v5121_v59  ;;  %v5097_v9 = vor.u32 %v6416_v48, %v5096_v15  ;;  %v1374_v35 = vpop.f32.mrf.mxu2  ;;  %v5061_v59 = vor.u32 %v6405_v51, %v5058_v52  ;;  %v6417_v15 = vld [vmem:[%s9991_s4 + $0xa4] sm:$0xf]  ;;  %v5106_v48 = vld [vmem:[%s9991_s4 + $0xa8] sm:$0xf0]  ;;  %v5161_v52 = vor.u32 %v6432_v32, %v5160_v60 }
  0xd6   :  { %v5109_v22 = vor.u32 %v6417_v15, %v5106_v48  ;;  %v5177_v35 = vor.u32 %v6436_v31, %v5176_v30  ;;  %v5186_v15 = vld [vmem:[%s9991_s4 + $0x148] sm:$0xf0]  ;;  %v5240_v30 = vld [vmem:[%s9991_s4 + $0x1b0] sm:$0xf]  ;;  %v6452_v31 = vld [vmem:[%s9991_s4 + $0x1b4] sm:$0xf0] }
  0xd7   :  { %2025 = vmatpush.bf16.msra.mxu3 %v5049_v63  ;;  %v6442_v63 = vld [vmem:[%s9991_s4 + $0x164] sm:$0xf0]  ;;  %v5154_v60 = vld [vmem:[%s9991_s4 + $0x108] sm:$0xf0] }
  0xd8   :  { %v5201_v2 = vor.u32 %v6442_v63, %v5200_v62  ;;  %v5210_v62 = vld [vmem:[%s9991_s4 + $0x178] sm:$0xf0] }
  0xd9   :  { %2038 = vmatpush.bf16.msrb.mxu1 %v5113_v45 }
  0xda   :  { %2048 = vmatpush.bf16.msrb.mxu2 %v5201_v2 }
  0xdb   :  { %2026 = vmatpush.bf16.msra.mxu3 %v5041_v5  ;;  %v5053_v5 = vor.u32 %v6403_v61, %v5050_v39  ;;  %v6443_v39 = vld [vmem:[%s9991_s4 + $0x174] sm:$0xf] }
  0xdc   :  { %v5213_v63 = vor.u32 %v6443_v39, %v5210_v62  ;;  %v6459_v39 = vld [vmem:[%s9991_s4 + $0x1f4] sm:$0xf]  ;;  %v5274_v62 = vld [vmem:[%s9991_s4 + $0x1f8] sm:$0xf0] }
  0xdd   :  { %2039 = vmatpush.bf16.msrb.mxu1 %v5105_v13  ;;  %v5117_v13 = vor.u32 %v6419_v3, %v5114_v4  ;;  %v6460_v3 = vld [vmem:[%s9991_s4 + $0x1f4] sm:$0xf0]  ;;  %v6439_v4 = vld [vmem:[%s9991_s4 + $0x154] sm:$0xf] }
  0xde   :  { %2049 = vmatpush.bf16.msrb.mxu2 %v5193_v11  ;;  %v6458_v11 = vld [vmem:[%s9991_s4 + $0x1e4] sm:$0xf0] }
  0xdf   :  { %2027 = vmatpush.bf16.msra.mxu3 %v5033_v57  ;;  %v5045_v57 = vor.u32 %v6401_v8, %v5042_v10  ;;  %v5197_v8 = vor.u32 %v6439_v4, %v5194_v7  ;;  %v5264_v10 = vld [vmem:[%s9991_s4 + $0x1e0] sm:$0xf] }
  0xe1   :  { %2040 = vmatpush.bf16.msrb.mxu1 %v5097_v9  ;;  %v1385_v0 = vpop.f32.mrf.mxu0  ;;  %v1398_v12 = vpop.f32.mrf.mxu1 }
  0xe2   :  { %v1386_v45 = vadd.f32 %v1385_v0, %v1373_v40  ;;  %2050 = vmatpush.bf16.msrb.mxu2 %v5185_v23  ;;  %v5152_v40 = vld [vmem:[%s9991_s4 + $0x100] sm:$0xf]  ;;  %v6441_v0 = vld [vmem:[%s9991_s4 + $0x164] sm:$0xf] }
  0xe3   :  { %2028 = vmatpush.bf16.msra.mxu3 %v5025_v24 }
  0xe4   :  { %v1399_v14 = vadd.f32 %v1398_v12, %v1386_v45  ;;  %v5272_v45 = vld [vmem:[%s9991_s4 + $0x1f0] sm:$0xf]  ;;  %v6437_v12 = vld [vmem:[%s9991_s4 + $0x144] sm:$0xf] }
  0xe5   :  { %2041 = vmatpush.bf16.msrb.mxu1 %v5089_v33  ;;  %v5026_v33 = vld [vmem:[%s9991_s4 + $0x8] sm:$0xf0]  ;;  %v5273_v6 = vor.u32 %v6460_v3, %v5272_v45  ;;  %v5189_v48 = vor.u32 %v6437_v12, %v5186_v15  ;;  %v6457_v45 = vld [vmem:[%s9991_s4 + $0x1e4] sm:$0xf] }
  0xe6   :  { %2029 = vmatmul.bf16.vlgmr.msra.gmra.mxu3 %v8239_v41  ;;  %2051 = vmatpush.bf16.msrb.mxu2 %v5177_v35  ;;  %v6431_v35 = vld [vmem:[%s9991_s4 + $0x114] sm:$0xf]  ;;  %v5266_v3 = vld [vmem:[%s9991_s4 + $0x1e8] sm:$0xf0] }
  0xe7   :  { %2073 = vmatpush.bf16.msrb.mxu3 %v5085_v28  ;;  %v5037_v28 = vor.u32 %v6399_v16, %v5034_v17  ;;  %2060 = vmatpush.bf16.msra.mxu0 %v5273_v6  ;;  %v5256_v16 = vld [vmem:[%s9991_s4 + $0x1d0] sm:$0xf]  ;;  %v6456_v17 = vld [vmem:[%s9991_s4 + $0x1d4] sm:$0xf0]  ;;  %v5269_v6 = vor.u32 %v6457_v45, %v5266_v3 }
  0xe9   :  { %2086 = vmatpush.bf16.msra.mxu1 %v5149_v36  ;;  %v1387_v20 = vpop.f32.mrf.mxu0  ;;  %v1411_v9 = vpop.f32.mrf.mxu3  ;;  %v5168_v36 = vld [vmem:[%s9991_s4 + $0x120] sm:$0xf] }
  0xea   :  { %v1412_v24 = vadd.f32 %v1411_v9, %v1399_v14  ;;  %v1400_v21 = vpop.f32.mrf.mxu1  ;;  %v5169_v46 = vor.u32 %v6434_v37, %v5168_v36  ;;  %v5265_v14 = vor.u32 %v6458_v11, %v5264_v10  ;;  %v5257_v9 = vor.u32 %v6456_v17, %v5256_v16  ;;  %v5162_v36 = vld [vmem:[%s9991_s4 + $0x118] sm:$0xf0]  ;;  %v6455_v10 = vld [vmem:[%s9991_s4 + $0x1d4] sm:$0xf]  ;;  %v5250_v16 = vld [vmem:[%s9991_s4 + $0x1c8] sm:$0xf0] }
  0xeb   :  { %2074 = vmatpush.bf16.msrb.mxu3 %v5077_v42  ;;  %v245_v37 = vperm.slane %v8063_v58, 2  ;;  %v5241_v21 = vor.u32 %v6452_v31, %v5240_v30  ;;  %v5258_v11 = vld [vmem:[%s9991_s4 + $0x1d8] sm:$0xf0] }
  0xec   :  { %2052 = vmatpush.bf16.msrb.mxu2 %v5169_v46  ;;  %2061 = vmatpush.bf16.msra.mxu0 %v5265_v14  ;;  %v6429_v46 = vld [vmem:[%s9991_s4 + $0x104] sm:$0xf] }
  0xed   :  { %2087 = vmatpush.bf16.msra.mxu1 %v5141_v44  ;;  %v1424_v25 = vpop.f32.mrf.mxu2  ;;  %v5029_v44 = vor.u32 %v6397_v29, %v5026_v33 }
  0xee   :  { %v1425_v42 = vadd.f32 %v1424_v25, %v1412_v24  ;;  %v5248_v24 = vld [vmem:[%s9991_s4 + $0x1c0] sm:$0xf]  ;;  %v6454_v25 = vld [vmem:[%s9991_s4 + $0x1c4] sm:$0xf0] }
  0xef   :  { %2075 = vmatpush.bf16.msrb.mxu3 %v5069_v50  ;;  %v5093_v50 = vor.u32 %v6413_v43, %v5090_v53  ;;  %v5249_v26 = vor.u32 %v6454_v25, %v5248_v24  ;;  %v5232_v43 = vld [vmem:[%s9991_s4 + $0x1a0] sm:$0xf]  ;;  %v6450_v53 = vld [vmem:[%s9991_s4 + $0x1a4] sm:$0xf0]  ;;  %v246_v25 = vperm.slane %v8063_v58, 3 }
  0xf0   :  { %2053 = vmatpush.bf16.msrb.mxu2 %v5161_v52  ;;  %2062 = vmatpush.bf16.msra.mxu0 %v5257_v9  ;;  %v6448_v52 = vld [vmem:[%s9991_s4 + $0x194] sm:$0xf0]  ;;  %v5218_v58 = vld [vmem:[%s9991_s4 + $0x188] sm:$0xf0] }
  0xf1   :  { %2088 = vmatpush.bf16.msra.mxu1 %v5133_v54  ;;  %v1437_v47 = vpop.f32.mrf.mxu0  ;;  %v1413_v49 = vpop.f32.mrf.mxu3 }
  0xf2   :  { %v1438_v34 = vadd.f32 %v1437_v47, %v1425_v42  ;;  %v5165_v42 = vor.u32 %v6431_v35, %v5162_v36  ;;  %v5233_v47 = vor.u32 %v6450_v53, %v5232_v43  ;;  %v5157_v49 = vor.u32 %v6429_v46, %v5154_v60 }
  0xf3   :  { %2076 = vmatpush.bf16.msrb.mxu3 %v5061_v59  ;;  %v5153_v59 = vor.u32 %v6430_v55, %v5152_v40 }
  0xf4   :  { %v1624_v54 = vmax.f32 %v1438_v34, 0.0  ;;  %2063 = vmatpush.bf16.msra.mxu0 %v5249_v26  ;;  %v6447_v26 = vld [vmem:[%s9991_s4 + $0x194] sm:$0xf] }
  0xf5   :  { %2089 = vmatpush.bf16.msra.mxu1 %v5125_v1  ;;  %v1426_v51 = vpop.f32.mrf.mxu2  ;;  %2054 = vmatpush.bf16.msrb.mxu2 %v5153_v59  ;;  %v6446_v59 = vld [vmem:[%s9991_s4 + $0x184] sm:$0xf0] }
  0xf6   :  { %v1628_v56 = vpack.c.bf16 %v1624_v54, %v1624_v54  ;;  %v5224_v51 = vld [vmem:[%s9991_s4 + $0x190] sm:$0xf] }
  0xf7   :  { %2077 = vmatpush.bf16.msrb.mxu3 %v5053_v5  ;;  %v5225_v54 = vor.u32 %v6448_v52, %v5224_v51 }
  0xf8   :  { %2042 = vmatmul.bf16.vlgmr.msrb.gmra.mxu1 %v1628_v56  ;;  %2064 = vmatpush.bf16.msra.mxu0 %v5241_v21 }
  0xf9   :  { %2090 = vmatpush.bf16.msra.mxu1 %v5117_v13  ;;  %v1439_v61 = vpop.f32.mrf.mxu0  ;;  %2099 = vmatpush.bf16.msra.mxu2 %v5213_v63 }
  0xfb   :  { %2078 = vmatpush.bf16.msrb.mxu3 %v5045_v57 }
  0xfc   :  { %2065 = vmatpush.bf16.msra.mxu0 %v5233_v47 }
  0xfd   :  { %2091 = vmatpush.bf16.msra.mxu1 %v5109_v22  ;;  %v5178_v22 = vld [vmem:[%s9991_s4 + $0x138] sm:$0xf0] }
  0xfe   :  { %v5181_v23 = vor.u32 %v6435_v18, %v5178_v22  ;;  %v6449_v22 = vld [vmem:[%s9991_s4 + $0x1a4] sm:$0xf] }
  0xff   :  { %2079 = vmatpush.bf16.msrb.mxu3 %v5037_v28  ;;  %v5170_v28 = vld [vmem:[%s9991_s4 + $0x128] sm:$0xf0] }
 0x100   :  { %v5173_v29 = vor.u32 %v6433_v27, %v5170_v28  ;;  %2066 = vmatpush.bf16.msra.mxu0 %v5225_v54  ;;  %v5226_v27 = vld [vmem:[%s9991_s4 + $0x198] sm:$0xf0] }
 0x101   :  { %2092 = vmatpush.bf16.msra.mxu1 %v5101_v38  ;;  %v1450_v5 = vpop.f32.mrf.mxu1  ;;  %v5229_v28 = vor.u32 %v6447_v26, %v5226_v27 }
 0x102   :  { %v1451_v32 = vadd.f32 %v1450_v5, %v245_v37 }
 0x103   :  { %2080 = vmatpush.bf16.msrb.mxu3 %v5029_v44 }
 0x105   :  { %2093 = vmatpush.bf16.msra.mxu1 %v5093_v50  ;;  %v8375_v2 = vpop.f32.mrf.mxu0 }
 0x106   :  { %2081 = vmatmul.bf16.vlgmr.msrb.gmra.mxu3 %v8239_v41  ;;  %v5202_v41 = vld [vmem:[%s9991_s4 + $0x168] sm:$0xf0] }
 0x107   :  { %v5205_v1 = vor.u32 %v6441_v0, %v5202_v41  ;;  %v5277_v0 = vor.u32 %v6459_v39, %v5274_v62 }
 0x108   :  { %2094 = vmatmul.bf16.vlgmr.msra.gmra.mxu1 %v1628_v56  ;;  %v5216_v56 = vld [vmem:[%s9991_s4 + $0x180] sm:$0xf] }
 0x109   :  { %2100 = vmatpush.bf16.msra.mxu2 %v5205_v1  ;;  %v1463_v13 = vpop.f32.mrf.mxu3  ;;  %v1452_v20 = vpop.f32.mrf.mxu1  ;;  %v5217_v61 = vor.u32 %v6446_v59, %v5216_v56 }
 0x10a   :  { %v1464_v50 = vadd.f32 %v1463_v13, %v1451_v32  ;;  %v5261_v13 = vor.u32 %v6455_v10, %v5258_v11  ;;  %v5242_v20 = vld [vmem:[%s9991_s4 + $0x1b8] sm:$0xf0] }
 0x10b   :  { %2067 = vmatpush.bf16.msra.mxu0 %v5217_v61 }
 0x10c   :  { %v1477_v40 = vadd.f32 %v8375_v2, %v1464_v50 }
 0x10d   :  { %2101 = vmatpush.bf16.msra.mxu2 %v5197_v8  ;;  %v1478_v57 = vpop.f32.mrf.mxu0  ;;  %v1489_v19 = vpop.f32.mrf.mxu2 }
 0x10e   :  { %v1490_v63 = vadd.f32 %v1489_v19, %v1477_v40  ;;  %v6453_v57 = vld [vmem:[%s9991_s4 + $0x1c4] sm:$0xf]  ;;  %v6451_v19 = vld [vmem:[%s9991_s4 + $0x1b4] sm:$0xf]  ;;  %v1695_v40 = vld [vmem:[%s9992_s5] sm:$0x3] }
 0x10f   :  { %2112 = vmatpush.bf16.msrb.mxu0 %v5277_v0  ;;  %v5253_v17 = vor.u32 %v6453_v57, %v5250_v16  ;;  %v5245_v9 = vor.u32 %v6451_v19, %v5242_v20  ;;  %v6461_v19 = vld [vmem:[%s9993_s6 + $0x4] sm:$0xf] }
 0x111   :  { %2102 = vmatpush.bf16.msra.mxu2 %v5189_v48  ;;  %v1465_v33 = vpop.f32.mrf.mxu3 }
 0x112   :  { %v6445_v33 = vld [vmem:[%s9991_s4 + $0x184] sm:$0xf] }
 0x113   :  { %2113 = vmatpush.bf16.msrb.mxu0 %v5269_v6  ;;  %v5221_v35 = vor.u32 %v6445_v33, %v5218_v58  ;;  %v2136_v6 = vld [vmem:[%s9993_s6 + $0x20] sm:$0x33]  ;;  %v5290_v33 = vld [vmem:[%s9993_s6 + $0x18] sm:$0xf0] }
 0x114   :  { %v2163_v10 = vunpack.c.h.b16 %v2136_v6 }
 0x115   :  { %2103 = vmatpush.bf16.msra.mxu2 %v5181_v23  ;;  %v1528_v38 = vpop.f32.mrf.mxu0  ;;  %v1491_v44 = vpop.f32.mrf.mxu2  ;;  %v5234_v23 = vld [vmem:[%s9991_s4 + $0x1a8] sm:$0xf0] }
 0x116   :  { %v5237_v24 = vor.u32 %v6449_v22, %v5234_v23  ;;  %v5282_v22 = vld [vmem:[%s9993_s6 + $0x10] sm:$0xf0]  ;;  %v5288_v23 = vld [vmem:[%s9993_s6 + $0x8] sm:$0xf] }
 0x117   :  { %2114 = vmatpush.bf16.msrb.mxu0 %v5261_v13  ;;  %v5285_v26 = vor.u32 %v6461_v19, %v5282_v22  ;;  %v6545_v19 = vld [vmem:[%s9995_s8 + $0x280] sm:$0xf0] }
 0x119   :  { %2104 = vmatpush.bf16.msra.mxu2 %v5173_v29 }
 0x11b   :  { %2115 = vmatpush.bf16.msrb.mxu0 %v5253_v17  ;;  %v5280_v17 = vld [vmem:[%s9993_s6] sm:$0xf] }
 0x11d   :  { %2105 = vmatpush.bf16.msra.mxu2 %v5165_v42  ;;  %v1530_v34 = vpop.f32.mrf.mxu0 }
 0x11f   :  { %2116 = vmatpush.bf16.msrb.mxu0 %v5245_v9 }
 0x121   :  { %2106 = vmatpush.bf16.msra.mxu2 %v5157_v49  ;;  %v1502_v55 = vpop.f32.mrf.mxu1 }
 0x122   :  { %v1503_v41 = vadd.f32 %v1502_v55, %v1490_v63  ;;  %v1697_v55 = vperm.slane %v1695_v40, 0  ;;  %v1698_v63 = vperm.slane %v1695_v40, 1  ;;  %v5664_v40 = vld [vmem:[%s9995_s8 + $0x2d8] sm:$0xf] }
 0x123   :  { %2117 = vmatpush.bf16.msrb.mxu0 %v5237_v24  ;;  %v6464_v24 = vld [vmem:[%s9993_s6 + $0x14] sm:$0xf0] }
 0x124   :  { %v5289_v27 = vor.u32 %v6464_v24, %v5288_v23  ;;  %v5384_v23 = vld [vmem:[%s9995_s8 + $0xa8] sm:$0xf]  ;;  %v6489_v24 = vld [vmem:[%s9995_s8 + $0xc0] sm:$0xf0] }
 0x127   :  { %2118 = vmatpush.bf16.msrb.mxu0 %v5229_v28 }
 0x129   :  { %v1554_v1 = vpop.f32.mrf.mxu0  ;;  %v1515_v2 = vpop.f32.mrf.mxu3 }
 0x12a   :  { %v1516_v4 = vadd.f32 %v1515_v2, %v1503_v41  ;;  %v1504_v5 = vpop.f32.mrf.mxu1 }
 0x12b   :  { %2119 = vmatpush.bf16.msrb.mxu0 %v5221_v35 }
 0x12c   :  { %v1529_v7 = vadd.f32 %v1528_v38, %v1516_v4 }
 0x12d   :  { %v1541_v8 = vpop.f32.mrf.mxu2 }
 0x12e   :  { %v1625_v12 = vmax.f32 %v1529_v7, 0.0  ;;  %v1542_v29 = vadd.f32 %v1541_v8, %v246_v25  ;;  %v2137_v7 = vld [vmem:[%s9993_s6 + $0x28] sm:$0x33]  ;;  %v2162_v8 = vunpack.c.l.b16 %v2136_v6  ;;  %v6552_v6 = vld [vmem:[%s9995_s8 + $0x2b8] sm:$0xf0] }
 0x12f   :  { %v2164_v11 = vunpack.c.l.b16 %v2137_v7 }
 0x130   :  { %v1629_v14 = vpack.c.bf16 %v1625_v12, %v1625_v12  ;;  %v1555_v31 = vadd.f32 %v1554_v1, %v1542_v29  ;;  %v2170_v13 = vpack.c.b16 %v2162_v8, %v2162_v8  ;;  %v2165_v29 = vunpack.c.h.b16 %v2137_v7 }
 0x131   :  { %v1556_v15 = vpop.f32.mrf.mxu0  ;;  %v1517_v48 = vpop.f32.mrf.mxu3 }
 0x132   :  { %2055 = vmatmul.bf16.vlgmr.msrb.gmra.mxu2 %v1629_v14  ;;  %v2172_v15 = vpack.c.b16 %v2164_v11, %v2164_v11  ;;  %v2184_v48 = vsel %vm2182_vm1, %v2170_v13, 0  ;;  %v6496_v13 = vld [vmem:[%s9995_s8 + $0xf8] sm:$0xf0] }
 0x133   :  { %2201 = vmatpush.bf16.msra.mxu3 %v2184_v48  ;;  %v6608_v48 = vld [vmem:[%s9995_s8 + $0x478] sm:$0xf0] }
 0x134   :  { %v2190_v16 = vsel %vm2182_vm1, %v2172_v15, 0 }
 0x135   :  { %v1543_v18 = vpop.f32.mrf.mxu2  ;;  %2227 = vmatpush.bf16.msrb.mxu2 %v2190_v16  ;;  %v6685_v16 = vld [vmem:[%s9995_s8 + $0x6e0] sm:$0xf0] }
 0x136   :  { %v6463_v18 = vld [vmem:[%s9993_s6 + $0xc] sm:$0xf0] }
 0x137   :  { %v5281_v9 = vor.u32 %v6463_v18, %v5280_v17  ;;  %v5608_v18 = vld [vmem:[%s9995_s8 + $0x268] sm:$0xf] }
 0x139   :  { %2202 = vmatpush.bf16.msra.mxu3 %v5281_v9  ;;  %2228 = vmatpush.bf16.msrb.mxu2 %v5289_v27  ;;  %v5609_v27 = vor.u32 %v6545_v19, %v5608_v18  ;;  %v5470_v18 = vld [vmem:[%s9995_s8 + $0x16c] sm:$0xf0]  ;;  %v6619_v19 = vld [vmem:[%s9995_s8 + $0x4d4] sm:$0xf] }
 0x141   :  { %v1567_v30 = vpop.f32.mrf.mxu1 }
 0x142   :  { %2107 = vmatmul.bf16.vlgmr.msra.gmra.mxu2 %v1629_v14  ;;  %v1568_v36 = vadd.f32 %v1567_v30, %v1555_v31  ;;  %v2171_v14 = vpack.c.b16 %v2163_v10, %v2163_v10  ;;  %v2173_v30 = vpack.c.b16 %v2165_v29, %v2165_v29  ;;  %v6462_v31 = vld [vmem:[%s9993_s6 + $0xc] sm:$0xf]  ;;  %v6140_v29 = vld [vmem:[%s9995_s8 + $0x690] sm:$0xf]  ;;  %s6799_s6 = smov [#allocation6]  }
 0x143   :  { %s4214_s16 = sshll.u32 %s6799_s6, 4  ;;  %s4215_s16 = int_to_ptr.vmem [resolvable:$true] %s4214_s16 }
 0x144   :  { %v2187_v57 = vsel %vm2182_vm1, %v2171_v14, 0  ;;  %v2193_v35 = vsel %vm2182_vm1, %v2173_v30, 0  ;;  %v5860_v14 = vld [vmem:[%s9995_s8 + $0x460] sm:$0xf]  ;;  %v6678_v30 = vld [vmem:[%s9995_s8 + $0x6a8] sm:$0xf0] }
 0x145   :  { %2214 = vmatpush.bf16.msrb.mxu1 %v2187_v57  ;;  %2240 = vmatpush.bf16.msrb.mxu3 %v2193_v35  ;;  %v6168_v57 = vld [vmem:[%s9995_s8 + $0x6c8] sm:$0xf]  ;;  %v5861_v22 = vor.u32 %v6608_v48, %v5860_v14 }
 0x149   :  { %v1580_v37 = vpop.f32.mrf.mxu3  ;;  %v1606_v21 = vpop.f32.mrf.mxu0  ;;  %2215 = vmatpush.bf16.msrb.mxu1 %v5285_v26  ;;  %v6169_v26 = vor.u32 %v6685_v16, %v6168_v57 }
 0x14a   :  { %v1581_v38 = vadd.f32 %v1580_v37, %v1568_v36  ;;  %v1569_v42 = vpop.f32.mrf.mxu1  ;;  %v5293_v36 = vor.u32 %v6462_v31, %v5290_v33  ;;  %v5580_v31 = vld [vmem:[%s9995_s8 + $0x230] sm:$0xf]  ;;  %v6538_v33 = vld [vmem:[%s9995_s8 + $0x248] sm:$0xf0] }
 0x14c   :  { %2241 = vmatpush.bf16.msrb.mxu3 %v5293_v36  ;;  %v5356_v36 = vld [vmem:[%s9995_s8 + $0x70] sm:$0xf] }
 0x14d   :  { %v1593_v43 = vpop.f32.mrf.mxu2 }
 0x14e   :  { %v1594_v53 = vadd.f32 %v1593_v43, %v1581_v38  ;;  %v5720_v43 = vld [vmem:[%s9995_s8 + $0x348] sm:$0xf] }
 0x150   :  { %v1607_v60 = vadd.f32 %v1606_v21, %v1594_v53  ;;  %v6573_v53 = vld [vmem:[%s9995_s8 + $0x360] sm:$0xf0] }
 0x151   :  { %v1582_v44 = vpop.f32.mrf.mxu3  ;;  %v1608_v46 = vpop.f32.mrf.mxu0 }
 0x152   :  { %v1619_v32 = vpop.f32.mrf.mxu1  ;;  %v5692_v44 = vld [vmem:[%s9995_s8 + $0x310] sm:$0xf] }
 0x153   :  { %v1620_v47 = vadd.f32 %v1619_v32, %v1607_v60  ;;  %v5721_v60 = vor.u32 %v6573_v53, %v5720_v43  ;;  %v6566_v32 = vld [vmem:[%s9995_s8 + $0x328] sm:$0xf0]  ;;  %v6112_v53 = vld [vmem:[%s9995_s8 + $0x658] sm:$0xf] }
 0x154   :  { %v6594_v43 = vld [vmem:[%s9995_s8 + $0x408] sm:$0xf0] }
 0x155   :  { %v1595_v49 = vpop.f32.mrf.mxu2  ;;  %v1626_v50 = vmax.f32 %v1620_v47, 0.0  ;;  %v5496_v47 = vld [vmem:[%s9995_s8 + $0x188] sm:$0xf]  ;;  %3692 = vmatpush.bf16.msra.mxu1 %v5721_v60  ;;  %v6531_v60 = vld [vmem:[%s9995_s8 + $0x210] sm:$0xf0] }
 0x156   :  { %v6517_v49 = vld [vmem:[%s9995_s8 + $0x1a0] sm:$0xf0] }
 0x157   :  { %v1630_v34 = vpack.c.bf16 %v1626_v50, %v1626_v50  ;;  %v5944_v50 = vld [vmem:[%s9995_s8 + $0x508] sm:$0xf] }
 0x159   :  { %2068 = vmatmul.bf16.vlgmr.msra.gmra.mxu0 %v1630_v34 }
 0x15a   :  { %v1621_v51 = vpop.f32.mrf.mxu1 }
 0x15b   :  { %v5693_v51 = vor.u32 %v6566_v32, %v5692_v44  ;;  %v6671_v44 = vld [vmem:[%s9995_s8 + $0x670] sm:$0xf0] }
 0x15d   :  { %3693 = vmatpush.bf16.msra.mxu1 %v5693_v51  ;;  %v6113_v51 = vor.u32 %v6671_v44, %v6112_v53  ;;  %v6493_v53 = vld [vmem:[%s9995_s8 + $0xe4] sm:$0xf]  ;;  %v5414_v44 = vld [vmem:[%s9995_s8 + $0xfc] sm:$0xf0] }
 0x169   :  { %v2030_v52 = vpop.f32.mrf.mxu3  ;;  %2120 = vmatmul.bf16.vlgmr.msrb.gmra.mxu0 %v1630_v34  ;;  %v6629_v34 = vld [vmem:[%s9995_s8 + $0x520] sm:$0xf0] }
 0x16a   :  { %v2031_v56 = vadd.f32 %v2030_v52, %v1697_v55  ;;  %v5497_v52 = vor.u32 %v6517_v49, %v5496_v47  ;;  %v6559_v55 = vld [vmem:[%s9995_s8 + $0x2f0] sm:$0xf0]  ;;  %v5328_v49 = vld [vmem:[%s9995_s8 + $0x38] sm:$0xf] }
 0x16c   :  { %3679 = vmatpush.bf16.msra.mxu0 %v5497_v52 }
 0x171   :  { %v2032_v54 = vpop.f32.mrf.mxu3 }
 0x172   :  { %v5945_v54 = vor.u32 %v6629_v34, %v5944_v50  ;;  %v6475_v50 = vld [vmem:[%s9995_s8 + $0x50] sm:$0xf0]  ;;  %v5776_v34 = vld [vmem:[%s9995_s8 + $0x3b8] sm:$0xf] }
 0x174   :  { %3705 = vmatpush.bf16.msra.mxu2 %v5945_v54  ;;  %v6587_v54 = vld [vmem:[%s9995_s8 + $0x3d0] sm:$0xf0] }
 0x175   :  { %v2043_v59 = vpop.f32.mrf.mxu1 }
 0x176   :  { %v2044_v61 = vadd.f32 %v2043_v59, %v2031_v56  ;;  %v5468_v56 = vld [vmem:[%s9995_s8 + $0x150] sm:$0xf] }
 0x17d   :  { %v2045_v62 = vpop.f32.mrf.mxu1 }
 0x17e   :  { %v6622_v62 = vld [vmem:[%s9995_s8 + $0x4e8] sm:$0xf0] }
 0x185   :  { %v2095_v1 = vpop.f32.mrf.mxu1 }
 0x189   :  { %v2082_v39 = vpop.f32.mrf.mxu3 }
 0x18a   :  { %v2083_v41 = vadd.f32 %v2082_v39, %v1698_v63  ;;  %v5916_v39 = vld [vmem:[%s9995_s8 + $0x4d0] sm:$0xf] }
 0x18c   :  { %v2096_v2 = vadd.f32 %v2095_v1, %v2083_v41  ;;  %v5440_v41 = vld [vmem:[%s9995_s8 + $0x118] sm:$0xf]  ;;  %v6503_v1 = vld [vmem:[%s9995_s8 + $0x130] sm:$0xf0] }
 0x18d   :  { %v2097_v45 = vpop.f32.mrf.mxu1  ;;  %v5441_v8 = vor.u32 %v6503_v1, %v5440_v41  ;;  %v6468_v41 = vld [vmem:[%s9995_s8 + $0x18] sm:$0xf0]  ;;  %v5748_v1 = vld [vmem:[%s9995_s8 + $0x380] sm:$0xf] }
 0x18e   :  { %v6615_v45 = vld [vmem:[%s9995_s8 + $0x4b0] sm:$0xf0] }
 0x191   :  { %v2084_v0 = vpop.f32.mrf.mxu3 }
 0x192   :  { %v5917_v0 = vor.u32 %v6622_v62, %v5916_v39  ;;  %v5722_v39 = vld [vmem:[%s9995_s8 + $0x364] sm:$0xf0]  ;;  %v5329_v62 = vor.u32 %v6475_v50, %v5328_v49  ;;  %v6636_v49 = vld [vmem:[%s9995_s8 + $0x558] sm:$0xf0]  ;;  %v6542_v50 = vld [vmem:[%s9995_s8 + $0x26c] sm:$0xf] }
 0x194   :  { %3706 = vmatpush.bf16.msra.mxu2 %v5917_v0  ;;  %v5777_v0 = vor.u32 %v6587_v54, %v5776_v34  ;;  %v5610_v34 = vld [vmem:[%s9995_s8 + $0x284] sm:$0xf0] }
 0x1b5   :  { %v2056_v3 = vpop.f32.mrf.mxu2 }
 0x1b6   :  { %v2057_v20 = vadd.f32 %v2056_v3, %v2044_v61  ;;  %v6510_v61 = vld [vmem:[%s9995_s8 + $0x168] sm:$0xf0]  ;;  %v2125_v3 = vld [vmem:[%s9988_s1] sm:$0xff] }
 0x1b7   :  { %v5469_v63 = vor.u32 %v6510_v61, %v5468_v56  ;;  %v5524_v56 = vld [vmem:[%s9995_s8 + $0x1c0] sm:$0xf]  ;;  %v6570_v61 = vld [vmem:[%s9995_s8 + $0x34c] sm:$0xf] }
 0x1b9   :  { %3680 = vmatpush.bf16.msra.mxu0 %v5469_v63  ;;  %v5300_v63 = vld [vmem:[%s9995_s8] sm:$0xf] }
 0x1ba   :  { %v5301_v14 = vor.u32 %v6468_v41, %v5300_v63  ;;  %v6682_v41 = vld [vmem:[%s9995_s8 + $0x6cc] sm:$0xf] }
 0x1bd   :  { %v2058_v4 = vpop.f32.mrf.mxu2  ;;  %3681 = vmatpush.bf16.msra.mxu0 %v5441_v8  ;;  %v5946_v8 = vld [vmem:[%s9995_s8 + $0x524] sm:$0xf0] }
 0x1be   :  { %v5665_v4 = vor.u32 %v6559_v55, %v5664_v40  ;;  %v6084_v40 = vld [vmem:[%s9995_s8 + $0x620] sm:$0xf]  ;;  %v6664_v55 = vld [vmem:[%s9995_s8 + $0x638] sm:$0xf0] }
 0x1c0   :  { %3694 = vmatpush.bf16.msra.mxu1 %v5665_v4  ;;  %v6514_v4 = vld [vmem:[%s9995_s8 + $0x18c] sm:$0xf] }
 0x1c5   :  { %v2108_v5 = vpop.f32.mrf.mxu2 }
 0x1c6   :  { %v2109_v37 = vadd.f32 %v2108_v5, %v2096_v2  ;;  %v5888_v2 = vld [vmem:[%s9995_s8 + $0x498] sm:$0xf]  ;;  %v5636_v5 = vld [vmem:[%s9995_s8 + $0x2a0] sm:$0xf] }
 0x1c7   :  { %v5889_v10 = vor.u32 %v6615_v45, %v5888_v2  ;;  %v5637_v15 = vor.u32 %v6552_v6, %v5636_v5  ;;  %v6580_v2 = vld [vmem:[%s9995_s8 + $0x398] sm:$0xf0]  ;;  %v6085_v45 = vor.u32 %v6664_v55, %v6084_v40  ;;  %v5498_v5 = vld [vmem:[%s9995_s8 + $0x1a4] sm:$0xf0]  ;;  %v6626_v6 = vld [vmem:[%s9995_s8 + $0x50c] sm:$0xf]  ;;  %v5613_v40 = vor.u32 %v6542_v50, %v5610_v34 }
 0x1c8   :  { %v5501_v48 = vor.u32 %v6514_v4, %v5498_v5  ;;  %v5949_v57 = vor.u32 %v6626_v6, %v5946_v8  ;;  %v6535_v55 = vld [vmem:[%s9995_s8 + $0x234] sm:$0xf]  ;;  %v5554_v4 = vld [vmem:[%s9995_s8 + $0x214] sm:$0xf0] }
 0x1c9   :  { %3707 = vmatpush.bf16.msra.mxu2 %v5889_v10  ;;  %3695 = vmatpush.bf16.msra.mxu1 %v5637_v15  ;;  %v6056_v10 = vld [vmem:[%s9995_s8 + $0x5e8] sm:$0xf]  ;;  %v5749_v15 = vor.u32 %v6580_v2, %v5748_v1  ;;  %v6479_v6 = vld [vmem:[%s9995_s8 + $0x74] sm:$0xf] }
 0x1ca   :  { %v6170_v1 = vld [vmem:[%s9995_s8 + $0x6e4] sm:$0xf0]  ;;  %v6591_v8 = vld [vmem:[%s9995_s8 + $0x3f4] sm:$0xf] }
 0x1cd   :  { %v2110_v12 = vpop.f32.mrf.mxu2  ;;  %3708 = vmatpush.bf16.msra.mxu2 %v5861_v22  ;;  %3696 = vmatpush.bf16.msra.mxu1 %v5609_v27  ;;  %v5918_v22 = vld [vmem:[%s9995_s8 + $0x4ec] sm:$0xf0] }
 0x1ce   :  { %v5412_v12 = vld [vmem:[%s9995_s8 + $0xe0] sm:$0xf]  ;;  %v5921_v27 = vor.u32 %v6619_v19, %v5918_v22  ;;  %v5778_v22 = vld [vmem:[%s9995_s8 + $0x3d4] sm:$0xf0] }
 0x1d6   :  { %v2069_v25 = vpop.f32.mrf.mxu0 }
 0x1d7   :  { %v8542_v28 = vadd.f32 %v2069_v25, %v2057_v20  ;;  %v5413_v20 = vor.u32 %v6496_v13, %v5412_v12  ;;  %v5832_v25 = vld [vmem:[%s9995_s8 + $0x428] sm:$0xf]  ;;  %v6563_v12 = vld [vmem:[%s9995_s8 + $0x314] sm:$0xf]  ;;  %v5694_v13 = vld [vmem:[%s9995_s8 + $0x32c] sm:$0xf0] }
 0x1d9   :  { %4185 = vst.msk [vmem:[#allocation4] sm:$0xff] %vm2178_vm2, %v8542_v28  ;;  %3682 = vmatpush.bf16.msra.mxu0 %v5413_v20  ;;  %v5697_v20 = vor.u32 %v6563_v12, %v5694_v13  ;;  %v6675_v12 = vld [vmem:[%s9995_s8 + $0x694] sm:$0xf]  ;;  %v6142_v13 = vld [vmem:[%s9995_s8 + $0x6ac] sm:$0xf0] }
 0x1de   :  { %v2071_v58 = vpop.f32.mrf.mxu0 }
 0x1df   :  { %v5385_v58 = vor.u32 %v6489_v24, %v5384_v23  ;;  %v6028_v23 = vld [vmem:[%s9995_s8 + $0x5b0] sm:$0xf]  ;;  %v6650_v24 = vld [vmem:[%s9995_s8 + $0x5c8] sm:$0xf0] }
 0x1e1   :  { %3683 = vmatpush.bf16.msra.mxu0 %v5385_v58  ;;  %v5890_v58 = vld [vmem:[%s9995_s8 + $0x4b4] sm:$0xf0] }
 0x1e6   :  { %v2121_v21 = vpop.f32.mrf.mxu0 }
 0x1e7   :  { %v2122_v38 = vadd.f32 %v2121_v21, %v2109_v37  ;;  %v6482_v37 = vld [vmem:[%s9995_s8 + $0x88] sm:$0xf0]  ;;  %v5804_v21 = vld [vmem:[%s9995_s8 + $0x3f0] sm:$0xf] }
 0x1e8   :  { %v5357_v32 = vor.u32 %v6482_v37, %v5356_v36  ;;  %v5805_v47 = vor.u32 %v6594_v43, %v5804_v21  ;;  %v6643_v36 = vld [vmem:[%s9995_s8 + $0x590] sm:$0xf0]  ;;  %v6549_v37 = vld [vmem:[%s9995_s8 + $0x2a4] sm:$0xf]  ;;  %v5638_v21 = vld [vmem:[%s9995_s8 + $0x2bc] sm:$0xf0] }
 0x1e9   :  { %v2126_v42 = vmul.f32 0.5, %v2122_v38  ;;  %4186 = vst.msk [vmem:[#allocation6] sm:$0xff] %vm2178_vm2, %v2122_v38  ;;  %v6141_v38 = vor.u32 %v6678_v30, %v6140_v29  ;;  %v6500_v29 = vld [vmem:[%s9995_s8 + $0x11c] sm:$0xf]  ;;  %v5442_v30 = vld [vmem:[%s9995_s8 + $0x134] sm:$0xf0] }
 0x1ea   :  { %3684 = vmatpush.bf16.msra.mxu0 %v5357_v32  ;;  %v5862_v32 = vld [vmem:[%s9995_s8 + $0x47c] sm:$0xf0] }
 0x1eb   :  { %v2127_v46 = vmul.f32 1.442695, %v2126_v42  ;;  %v5581_v42 = vor.u32 %v6538_v33, %v5580_v31  ;;  %v6612_v31 = vld [vmem:[%s9995_s8 + $0x49c] sm:$0xf] }
 0x1ed   :  { %6692 = vpow2.f32 %v2127_v46  ;;  %v5552_v46 = vld [vmem:[%s9995_s8 + $0x1f8] sm:$0xf]  ;;  %3697 = vmatpush.bf16.msra.mxu1 %v5581_v42  ;;  %v5893_v42 = vor.u32 %v6612_v31, %v5890_v58  ;;  %v6661_v31 = vld [vmem:[%s9995_s8 + $0x624] sm:$0xf] }
 0x1ee   :  { %v2123_v59 = vpop.f32.mrf.mxu0  ;;  %v5553_v52 = vor.u32 %v6531_v60, %v5552_v46  ;;  %3685 = vmatpush.bf16.msra.mxu0 %v5329_v62  ;;  %v6605_v46 = vld [vmem:[%s9995_s8 + $0x464] sm:$0xf]  ;;  %v5641_v60 = vor.u32 %v6549_v37, %v5638_v21  ;;  %v6598_v62 = vld [vmem:[%s9995_s8 + $0x42c] sm:$0xf]  ;;  %v6058_v37 = vld [vmem:[%s9995_s8 + $0x604] sm:$0xf0] }
 0x1ef   :  { %v6524_v59 = vld [vmem:[%s9995_s8 + $0x1d8] sm:$0xf0] }
 0x1f1   :  { %3698 = vmatpush.bf16.msra.mxu1 %v5553_v52  ;;  %v5865_v52 = vor.u32 %v6605_v46, %v5862_v32  ;;  %v6633_v32 = vld [vmem:[%s9995_s8 + $0x544] sm:$0xf] }
 0x1f2   :  { %3686 = vmatpush.bf16.msra.mxu0 %v5301_v14 }
 0x1f3   :  { %v6693_v7 = vpop.eup %6692 }
 0x1f4   :  { %v2129_v11 = vmul.f32 %v6693_v7, %v2125_v3  ;;  %v5525_v3 = vor.u32 %v6524_v59, %v5524_v56  ;;  %v5725_v7 = vor.u32 %v6570_v61, %v5722_v39  ;;  %v5582_v56 = vld [vmem:[%s9995_s8 + $0x24c] sm:$0xf0]  ;;  %v6486_v61 = vld [vmem:[%s9995_s8 + $0xac] sm:$0xf]  ;;  %v5386_v39 = vld [vmem:[%s9995_s8 + $0xc4] sm:$0xf0] }
 0x1f5   :  { %v5585_v59 = vor.u32 %v6535_v55, %v5582_v56  ;;  %v5389_v63 = vor.u32 %v6486_v61, %v5386_v39  ;;  %v5700_v39 = vld [vmem:[%s9995_s8 + $0x318] sm:$0xf] }
 0x1f6   :  { %v2130_v17 = vadd.f32 %v2129_v11, %v8542_v28  ;;  %v6601_v28 = vld [vmem:[%s9995_s8 + $0x440] sm:$0xf0]  ;;  %3699 = vmatpush.bf16.msra.mxu1 %v5525_v3  ;;  %3731 = vmatpush.bf16.msrb.mxu0 %v5501_v48  ;;  %v6528_v3 = vld [vmem:[%s9995_s8 + $0x1fc] sm:$0xf] }
 0x1f7   :  { %v5833_v35 = vor.u32 %v6601_v28, %v5832_v25  ;;  %v6657_v11 = vld [vmem:[%s9995_s8 + $0x600] sm:$0xf0]  ;;  %v6556_v25 = vld [vmem:[%s9995_s8 + $0x2dc] sm:$0xf]  ;;  %v6029_v28 = vor.u32 %v6650_v24, %v6028_v23  ;;  %v5557_v5 = vor.u32 %v6528_v3, %v5554_v4 }
 0x1f8   :  { %v8642_v9 = vpack.c.bf16 %v2130_v17, %v2130_v17  ;;  %v6057_v16 = vor.u32 %v6657_v11, %v6056_v10  ;;  %v6507_v17 = vld [vmem:[%s9995_s8 + $0x154] sm:$0xf]  ;;  %v5806_v11 = vld [vmem:[%s9995_s8 + $0x40c] sm:$0xf0]  ;;  %v6521_v48 = vld [vmem:[%s9995_s8 + $0x1c4] sm:$0xf] }
 0x1f9   :  { %3709 = vmatpush.bf16.msra.mxu2 %v5833_v35  ;;  %v6000_v35 = vld [vmem:[%s9995_s8 + $0x578] sm:$0xf]  ;;  %v5809_v14 = vor.u32 %v6591_v8, %v5806_v11  ;;  %v6668_v23 = vld [vmem:[%s9995_s8 + $0x65c] sm:$0xf]  ;;  %v5672_v8 = vld [vmem:[%s9995_s8 + $0x2e0] sm:$0xf] }
 0x1fa   :  { %5294 = vmatmul.msk.bf16.vlgmr.msra.gmra.mxu3 %vm2178_vm2, %v8642_v9  ;;  %5295 = vmatmul.msk.bf16.vlgmr.msrb.gmra.mxu1 %vm2178_vm2, %v8642_v9  ;;  %v6001_v43 = vor.u32 %v6643_v36, %v6000_v35  ;;  %v6654_v36 = vld [vmem:[%s9995_s8 + $0x5ec] sm:$0xf] }
 0x1fb   :  { %5296 = vmatmul.msk.bf16.vlgmr.msrb.gmra.mxu2 %vm2178_vm2, %v8642_v9  ;;  %3718 = vmatpush.bf16.msra.mxu3 %v6169_v26  ;;  %v5473_v26 = vor.u32 %v6507_v17, %v5470_v18  ;;  %v6472_v17 = vld [vmem:[%s9995_s8 + $0x3c] sm:$0xf]  ;;  %v5330_v18 = vld [vmem:[%s9995_s8 + $0x54] sm:$0xf0]  ;;  %v6061_v21 = vor.u32 %v6654_v36, %v6058_v37  ;;  %v5420_v36 = vld [vmem:[%s9995_s8 + $0xe8] sm:$0xf] }
 0x1fc   :  { %3744 = vmatpush.bf16.msrb.mxu1 %v5725_v7  ;;  %v5358_v7 = vld [vmem:[%s9995_s8 + $0x8c] sm:$0xf0]  ;;  %v5333_v19 = vor.u32 %v6472_v17, %v5330_v18  ;;  %v5924_v17 = vld [vmem:[%s9995_s8 + $0x4d8] sm:$0xf]  ;;  %v6623_v18 = vld [vmem:[%s9995_s8 + $0x4f0] sm:$0xf0] }
 0x1fd   :  { %3710 = vmatpush.bf16.msra.mxu2 %v5805_v47  ;;  %3732 = vmatpush.bf16.msrb.mxu0 %v5473_v26  ;;  %v5972_v47 = vld [vmem:[%s9995_s8 + $0x540] sm:$0xf]  ;;  %v5361_v10 = vor.u32 %v6479_v6, %v5358_v7  ;;  %v6465_v26 = vld [vmem:[%s9995_s8 + $0x4] sm:$0xf]  ;;  %v6630_v6 = vld [vmem:[%s9995_s8 + $0x528] sm:$0xf0] }
 0x1fe   :  { %v5973_v54 = vor.u32 %v6636_v49, %v5972_v47  ;;  %v5974_v47 = vld [vmem:[%s9995_s8 + $0x55c] sm:$0xf0]  ;;  %v6497_v37 = vld [vmem:[%s9995_s8 + $0x100] sm:$0xf0] }
 0x1ff   :  { %3719 = vmatpush.bf16.msra.mxu3 %v6141_v38  ;;  %v5445_v38 = vor.u32 %v6500_v29, %v5442_v30  ;;  %v5750_v30 = vld [vmem:[%s9995_s8 + $0x39c] sm:$0xf0]  ;;  %v5977_v49 = vor.u32 %v6633_v32, %v5974_v47  ;;  %v5392_v47 = vld [vmem:[%s9995_s8 + $0xb0] sm:$0xf] }
 0x200   :  { %3745 = vmatpush.bf16.msrb.mxu1 %v5697_v20  ;;  %v6584_v20 = vld [vmem:[%s9995_s8 + $0x3bc] sm:$0xf] }
 0x201   :  { %3711 = vmatpush.bf16.msra.mxu2 %v5777_v0  ;;  %3733 = vmatpush.bf16.msrb.mxu0 %v5445_v38  ;;  %v5834_v0 = vld [vmem:[%s9995_s8 + $0x444] sm:$0xf0]  ;;  %v5781_v24 = vor.u32 %v6584_v20, %v5778_v22  ;;  %v6647_v38 = vld [vmem:[%s9995_s8 + $0x5b4] sm:$0xf]  ;;  %v6553_v20 = vld [vmem:[%s9995_s8 + $0x2c0] sm:$0xf0] }
 0x202   :  { %v5837_v2 = vor.u32 %v6598_v62, %v5834_v0  ;;  %v6567_v62 = vld [vmem:[%s9995_s8 + $0x330] sm:$0xf0] }
 0x203   :  { %3720 = vmatpush.bf16.msra.mxu3 %v6113_v51  ;;  %v5417_v51 = vor.u32 %v6493_v53, %v5414_v44  ;;  %v6640_v53 = vld [vmem:[%s9995_s8 + $0x57c] sm:$0xf]  ;;  %v6002_v44 = vld [vmem:[%s9995_s8 + $0x594] sm:$0xf0]  ;;  %v5701_v4 = vor.u32 %v6567_v62, %v5700_v39 }
 0x204   :  { %v6005_v46 = vor.u32 %v6640_v53, %v6002_v44  ;;  %v6539_v53 = vld [vmem:[%s9995_s8 + $0x250] sm:$0xf0] }
 0x205   :  { %3712 = vmatpush.bf16.msra.mxu2 %v5749_v15  ;;  %3734 = vmatpush.bf16.msrb.mxu0 %v5417_v51  ;;  %v6145_v15 = vor.u32 %v6675_v12, %v6142_v13 }
 0x207   :  { %3721 = vmatpush.bf16.msra.mxu3 %v6085_v45  ;;  %v6173_v45 = vor.u32 %v6682_v41, %v6170_v1  ;;  %v5504_v1 = vld [vmem:[%s9995_s8 + $0x190] sm:$0xf] }
 0x209   :  { %3757 = vmatpush.bf16.msrb.mxu2 %v5949_v57  ;;  %3735 = vmatpush.bf16.msrb.mxu0 %v5389_v63  ;;  %v5526_v57 = vld [vmem:[%s9995_s8 + $0x1dc] sm:$0xf0] }
 0x20a   :  { %5297 = vmatmul.msk.bf16.vlgmr.msrb.gmra.mxu3 %vm2178_vm2, %v8642_v9  ;;  %v5666_v9 = vld [vmem:[%s9995_s8 + $0x2f4] sm:$0xf0] }
 0x20b   :  { %3722 = vmatpush.bf16.msra.mxu3 %v6057_v16  ;;  %v5669_v33 = vor.u32 %v6556_v25, %v5666_v9  ;;  %v5529_v16 = vor.u32 %v6521_v48, %v5526_v57  ;;  %v6114_v25 = vld [vmem:[%s9995_s8 + $0x674] sm:$0xf0]  ;;  %v6511_v48 = vld [vmem:[%s9995_s8 + $0x170] sm:$0xf0] }
 0x20c   :  { %v6117_v9 = vor.u32 %v6668_v23, %v6114_v25  ;;  %v5925_v25 = vor.u32 %v6623_v18, %v5924_v17  ;;  %v6588_v18 = vld [vmem:[%s9995_s8 + $0x3d8] sm:$0xf0] }
 0x20d   :  { %3758 = vmatpush.bf16.msrb.mxu2 %v5921_v27  ;;  %3746 = vmatpush.bf16.msrb.mxu1 %v5669_v33  ;;  %v5302_v27 = vld [vmem:[%s9995_s8 + $0x1c] sm:$0xf0] }
 0x20e   :  { %3736 = vmatpush.bf16.msrb.mxu0 %v5361_v10  ;;  %v5305_v29 = vor.u32 %v6465_v26, %v5302_v27  ;;  %v6086_v33 = vld [vmem:[%s9995_s8 + $0x63c] sm:$0xf0]  ;;  %v6560_v10 = vld [vmem:[%s9995_s8 + $0x2f8] sm:$0xf0] }
 0x20f   :  { %3723 = vmatpush.bf16.msra.mxu3 %v6029_v28  ;;  %v6577_v28 = vld [vmem:[%s9995_s8 + $0x384] sm:$0xf]  ;;  %v6089_v35 = vor.u32 %v6661_v31, %v6086_v33  ;;  %v6504_v26 = vld [vmem:[%s9995_s8 + $0x138] sm:$0xf0]  ;;  %v6546_v31 = vld [vmem:[%s9995_s8 + $0x288] sm:$0xf0] }
 0x210   :  { %v5753_v58 = vor.u32 %v6577_v28, %v5750_v30  ;;  %v5896_v28 = vld [vmem:[%s9995_s8 + $0x4a0] sm:$0xf]  ;;  %v5616_v30 = vld [vmem:[%s9995_s8 + $0x270] sm:$0xf] }
 0x211   :  { %3759 = vmatpush.bf16.msrb.mxu2 %v5893_v42  ;;  %3747 = vmatpush.bf16.msrb.mxu1 %v5641_v60  ;;  %v6030_v42 = vld [vmem:[%s9995_s8 + $0x5cc] sm:$0xf0]  ;;  %v8949_v60 = vld [vmem:[%s9994_s7] sm:$0xf] }
 0x212   :  { %3737 = vmatpush.bf16.msrb.mxu0 %v5333_v19  ;;  %v2141_v50 = vperm.slane %v8949_v60, 1  ;;  %v2140_v55 = vperm.slane %v8949_v60, 0  ;;  %v2142_v56 = vperm.slane %v8949_v60, 2  ;;  %v5644_v19 = vld [vmem:[%s9995_s8 + $0x2a8] sm:$0xf] }
 0x213   :  { %3724 = vmatpush.bf16.msra.mxu3 %v6001_v43  ;;  %v6033_v43 = vor.u32 %v6647_v38, %v6030_v42  ;;  %v5645_v27 = vor.u32 %v6553_v20, %v5644_v19  ;;  %v5868_v38 = vld [vmem:[%s9995_s8 + $0x468] sm:$0xf]  ;;  %v6609_v42 = vld [vmem:[%s9995_s8 + $0x480] sm:$0xf0]  ;;  %v6120_v19 = vld [vmem:[%s9995_s8 + $0x660] sm:$0xf] }
 0x214   :  { %v5869_v32 = vor.u32 %v6609_v42, %v5868_v38  ;;  %v6672_v20 = vld [vmem:[%s9995_s8 + $0x678] sm:$0xf0]  ;;  %v6557_v42 = vld [vmem:[%s9995_s8 + $0x2e4] sm:$0xf] }
 0x215   :  { %3760 = vmatpush.bf16.msrb.mxu2 %v5865_v52  ;;  %3748 = vmatpush.bf16.msrb.mxu1 %v5613_v40  ;;  %v5728_v52 = vld [vmem:[%s9995_s8 + $0x350] sm:$0xf] }
 0x216   :  { %3738 = vmatpush.bf16.msrb.mxu0 %v5305_v29  ;;  %v6616_v29 = vld [vmem:[%s9995_s8 + $0x4b8] sm:$0xf0] }
 0x217   :  { %3725 = vmatpush.bf16.msra.mxu3 %v5973_v54  ;;  %v6574_v54 = vld [vmem:[%s9995_s8 + $0x368] sm:$0xf0] }
 0x219   :  { %3749 = vmatpush.bf16.msrb.mxu1 %v5585_v59  ;;  %3761 = vmatpush.bf16.msrb.mxu2 %v5837_v2  ;;  %v5729_v59 = vor.u32 %v6574_v54, %v5728_v52  ;;  %v6518_v2 = vld [vmem:[%s9995_s8 + $0x1a8] sm:$0xf0]  ;;  %v6176_v52 = vld [vmem:[%s9995_s8 + $0x6d0] sm:$0xf] }
 0x21a   :  { %v5505_v12 = vor.u32 %v6518_v2, %v5504_v1  ;;  %v6686_v54 = vld [vmem:[%s9995_s8 + $0x6e8] sm:$0xf0]  ;;  %v5812_v1 = vld [vmem:[%s9995_s8 + $0x3f8] sm:$0xf] }
 0x21b   :  { %3770 = vmatpush.bf16.msrb.mxu3 %v6173_v45 }
 0x21d   :  { %3750 = vmatpush.bf16.msrb.mxu1 %v5557_v5  ;;  %3762 = vmatpush.bf16.msrb.mxu2 %v5809_v14  ;;  %v5952_v5 = vld [vmem:[%s9995_s8 + $0x510] sm:$0xf] }
 0x21e   :  { %v5953_v14 = vor.u32 %v6630_v6, %v5952_v5  ;;  %v5532_v5 = vld [vmem:[%s9995_s8 + $0x1c8] sm:$0xf]  ;;  %v6525_v6 = vld [vmem:[%s9995_s8 + $0x1e0] sm:$0xf0] }
 0x21f   :  { %3771 = vmatpush.bf16.msrb.mxu3 %v6145_v15  ;;  %v5476_v15 = vld [vmem:[%s9995_s8 + $0x158] sm:$0xf]  ;;  %v5533_v17 = vor.u32 %v6525_v6, %v5532_v5 }
 0x220   :  { %v5477_v23 = vor.u32 %v6511_v48, %v5476_v15  ;;  %v5336_v15 = vld [vmem:[%s9995_s8 + $0x40] sm:$0xf]  ;;  %v6476_v48 = vld [vmem:[%s9995_s8 + $0x58] sm:$0xf0] }
 0x221   :  { %3751 = vmatpush.bf16.msrb.mxu1 %v5529_v16  ;;  %3763 = vmatpush.bf16.msrb.mxu2 %v5781_v24  ;;  %v5673_v16 = vor.u32 %v6560_v10, %v5672_v8  ;;  %v6571_v10 = vld [vmem:[%s9995_s8 + $0x354] sm:$0xf] }
 0x223   :  { %3772 = vmatpush.bf16.msrb.mxu3 %v6117_v9  ;;  %v5448_v9 = vld [vmem:[%s9995_s8 + $0x120] sm:$0xf] }
 0x224   :  { %v5449_v33 = vor.u32 %v6504_v26, %v5448_v9  ;;  %v5308_v9 = vld [vmem:[%s9995_s8 + $0x8] sm:$0xf] }
 0x225   :  { %3764 = vmatpush.bf16.msrb.mxu2 %v5753_v58  ;;  %v5897_v58 = vor.u32 %v6616_v29, %v5896_v28  ;;  %v6469_v28 = vld [vmem:[%s9995_s8 + $0x20] sm:$0xf0]  ;;  %v5756_v29 = vld [vmem:[%s9995_s8 + $0x388] sm:$0xf] }
 0x226   :  { %v5309_v38 = vor.u32 %v6469_v28, %v5308_v9  ;;  %v6683_v28 = vld [vmem:[%s9995_s8 + $0x6d4] sm:$0xf] }
 0x227   :  { %3773 = vmatpush.bf16.msrb.mxu3 %v6089_v35  ;;  %v2143_v35 = vperm.slane %v8949_v60, 3 }
 0x22b   :  { %3774 = vmatpush.bf16.msrb.mxu3 %v6061_v21  ;;  %v5617_v21 = vor.u32 %v6546_v31, %v5616_v30  ;;  %v6581_v30 = vld [vmem:[%s9995_s8 + $0x3a0] sm:$0xf0]  ;;  %v6092_v31 = vld [vmem:[%s9995_s8 + $0x628] sm:$0xf] }
 0x22f   :  { %3775 = vmatpush.bf16.msrb.mxu3 %v6033_v43  ;;  %v5588_v43 = vld [vmem:[%s9995_s8 + $0x238] sm:$0xf] }
 0x233   :  { %3776 = vmatpush.bf16.msrb.mxu3 %v6005_v46  ;;  %v5421_v46 = vor.u32 %v6497_v37, %v5420_v36  ;;  %v5506_v36 = vld [vmem:[%s9995_s8 + $0x1ac] sm:$0xf0]  ;;  %v6627_v37 = vld [vmem:[%s9995_s8 + $0x514] sm:$0xf] }
 0x237   :  { %3777 = vmatpush.bf16.msrb.mxu3 %v5977_v49  ;;  %v6490_v49 = vld [vmem:[%s9995_s8 + $0xc8] sm:$0xf0] }
 0x277   :  { %v2217_v34 = vpop.f32.mrf.mxu1 }
 0x278   :  { %v2218_v51 = vadd.f32 %v2217_v34, %v2141_v50  ;;  %v5840_v50 = vld [vmem:[%s9995_s8 + $0x430] sm:$0xf]  ;;  %v5589_v34 = vor.u32 %v6539_v53, %v5588_v43  ;;  %v5674_v43 = vld [vmem:[%s9995_s8 + $0x2fc] sm:$0xf0]  ;;  %v5757_v53 = vor.u32 %v6581_v30, %v5756_v29  ;;  %v6529_v30 = vld [vmem:[%s9995_s8 + $0x204] sm:$0xf] }
 0x279   :  { %v6178_v29 = vld [vmem:[%s9995_s8 + $0x6ec] sm:$0xf0] }
 0x27a   :  { %v2248_v40 = vmax.f32 %v2218_v51, 0.0  ;;  %v6602_v51 = vld [vmem:[%s9995_s8 + $0x448] sm:$0xf0] }
 0x27b   :  { %v5841_v62 = vor.u32 %v6602_v51, %v5840_v50  ;;  %v5677_v50 = vor.u32 %v6557_v42, %v5674_v43  ;;  %v6620_v51 = vld [vmem:[%s9995_s8 + $0x4dc] sm:$0xf]  ;;  %v5814_v43 = vld [vmem:[%s9995_s8 + $0x414] sm:$0xf0] }
 0x27c   :  { %v8966_v61 = vpack.c.bf16 %v2248_v40, %v2248_v40  ;;  %v6592_v42 = vld [vmem:[%s9995_s8 + $0x3fc] sm:$0xf] }
 0x27d   :  { %v2204_v63 = vpop.f32.mrf.mxu3 }
 0x27e   :  { %v2205_v0 = vadd.f32 %v2204_v63, %v2140_v55  ;;  %v2230_v41 = vpop.f32.mrf.mxu2  ;;  %3700 = vmatmul.bf16.vlgmr.msra.gmra.mxu1 %v8966_v61  ;;  %v5560_v55 = vld [vmem:[%s9995_s8 + $0x200] sm:$0xf]  ;;  %v6177_v63 = vor.u32 %v6686_v54, %v6176_v52  ;;  %v5926_v52 = vld [vmem:[%s9995_s8 + $0x4f4] sm:$0xf0]  ;;  %v6550_v54 = vld [vmem:[%s9995_s8 + $0x2ac] sm:$0xf] }
 0x27f   :  { %v2231_v45 = vadd.f32 %v2230_v41, %v2142_v56  ;;  %3796 = vmatpush.bf16.msra.mxu1 %v5729_v59  ;;  %v2219_v3 = vpop.f32.mrf.mxu1  ;;  %v6532_v56 = vld [vmem:[%s9995_s8 + $0x218] sm:$0xf0]  ;;  %v5393_v59 = vor.u32 %v6490_v49, %v5392_v47  ;;  %v6483_v41 = vld [vmem:[%s9995_s8 + $0x90] sm:$0xf0]  ;;  %v6658_v47 = vld [vmem:[%s9995_s8 + $0x608] sm:$0xf0] }
 0x280   :  { %v2247_v7 = vmax.f32 %v2205_v0, 0.0  ;;  %v5364_v0 = vld [vmem:[%s9995_s8 + $0x78] sm:$0xf]  ;;  %v5561_v2 = vor.u32 %v6532_v56, %v5560_v55  ;;  %v6508_v49 = vld [vmem:[%s9995_s8 + $0x15c] sm:$0xf] }
 0x281   :  { %v2249_v11 = vmax.f32 %v2231_v45, 0.0  ;;  %v6595_v45 = vld [vmem:[%s9995_s8 + $0x410] sm:$0xf0]  ;;  %v6148_v3 = vld [vmem:[%s9995_s8 + $0x698] sm:$0xf]  ;;  %v5365_v8 = vor.u32 %v6483_v41, %v5364_v0 }
 0x282   :  { %v8993_v13 = vpack.c.bf16 %v2247_v7, %v2247_v7  ;;  %v6501_v0 = vld [vmem:[%s9995_s8 + $0x124] sm:$0xf] }
 0x283   :  { %v9001_v57 = vpack.c.bf16 %v2249_v11, %v2249_v11  ;;  %3797 = vmatpush.bf16.msra.mxu1 %v5701_v4  ;;  %v6679_v4 = vld [vmem:[%s9995_s8 + $0x6b0] sm:$0xf0]  ;;  %v5730_v11 = vld [vmem:[%s9995_s8 + $0x36c] sm:$0xf0] }
 0x284   :  { %3687 = vmatmul.bf16.vlgmr.msra.gmra.mxu0 %v8993_v13 }
 0x285   :  { %3713 = vmatmul.bf16.vlgmr.msra.gmra.mxu2 %v9001_v57  ;;  %3783 = vmatpush.bf16.msra.mxu0 %v5505_v12  ;;  %v2206_v22 = vpop.f32.mrf.mxu3  ;;  %v5813_v12 = vor.u32 %v6595_v45, %v5812_v1  ;;  %v5450_v1 = vld [vmem:[%s9995_s8 + $0x13c] sm:$0xf0] }
 0x286   :  { %3809 = vmatpush.bf16.msra.mxu2 %v5953_v14  ;;  %v2232_v24 = vpop.f32.mrf.mxu2  ;;  %v6149_v14 = vor.u32 %v6679_v4, %v6148_v3  ;;  %v5733_v22 = vor.u32 %v6571_v10, %v5730_v11  ;;  %v5898_v45 = vld [vmem:[%s9995_s8 + $0x4bc] sm:$0xf0]  ;;  %v6543_v3 = vld [vmem:[%s9995_s8 + $0x274] sm:$0xf]  ;;  %v5618_v4 = vld [vmem:[%s9995_s8 + $0x28c] sm:$0xf0]  ;;  %v5453_v6 = vor.u32 %v6501_v0, %v5450_v1 }
 0x287   :  { %3798 = vmatpush.bf16.msra.mxu1 %v5673_v16  ;;  %v5784_v16 = vld [vmem:[%s9995_s8 + $0x3c0] sm:$0xf]  ;;  %v6564_v24 = vld [vmem:[%s9995_s8 + $0x31c] sm:$0xf]  ;;  %v6494_v11 = vld [vmem:[%s9995_s8 + $0xec] sm:$0xf] }
 0x288   :  { %v5785_v26 = vor.u32 %v6588_v18, %v5784_v16  ;;  %v6644_v10 = vld [vmem:[%s9995_s8 + $0x598] sm:$0xf0] }
 0x289   :  { %3784 = vmatpush.bf16.msra.mxu0 %v5477_v23  ;;  %v5337_v23 = vor.u32 %v6476_v48, %v5336_v15  ;;  %v6606_v15 = vld [vmem:[%s9995_s8 + $0x46c] sm:$0xf]  ;;  %v5870_v48 = vld [vmem:[%s9995_s8 + $0x484] sm:$0xf0]  ;;  %v6536_v16 = vld [vmem:[%s9995_s8 + $0x23c] sm:$0xf] }
 0x28a   :  { %3810 = vmatpush.bf16.msra.mxu2 %v5925_v25  ;;  %v5702_v25 = vld [vmem:[%s9995_s8 + $0x334] sm:$0xf0]  ;;  %v6568_v0 = vld [vmem:[%s9995_s8 + $0x338] sm:$0xf0] }
 0x28b   :  { %3799 = vmatpush.bf16.msra.mxu1 %v5645_v27  ;;  %v6121_v27 = vor.u32 %v6672_v20, %v6120_v19  ;;  %v5980_v19 = vld [vmem:[%s9995_s8 + $0x548] sm:$0xf] }
 0x28d   :  { %3785 = vmatpush.bf16.msra.mxu0 %v5449_v33  ;;  %v2243_v44 = vpop.f32.mrf.mxu3  ;;  %v6665_v33 = vld [vmem:[%s9995_s8 + $0x640] sm:$0xf0] }
 0x28e   :  { %3811 = vmatpush.bf16.msra.mxu2 %v5897_v58  ;;  %v2244_v60 = vadd.f32 %v2243_v44, %v2143_v35  ;;  %3752 = vmatmul.bf16.vlgmr.msrb.gmra.mxu1 %v8966_v61  ;;  %v6515_v58 = vld [vmem:[%s9995_s8 + $0x194] sm:$0xf]  ;;  %v5705_v35 = vor.u32 %v6564_v24, %v5702_v25  ;;  %v6093_v44 = vor.u32 %v6665_v33, %v6092_v31  ;;  %v5394_v25 = vld [vmem:[%s9995_s8 + $0xcc] sm:$0xf0]  ;;  %v5562_v31 = vld [vmem:[%s9995_s8 + $0x21c] sm:$0xf0] }
 0x28f   :  { %3800 = vmatpush.bf16.msra.mxu1 %v5617_v21  ;;  %v5954_v21 = vld [vmem:[%s9995_s8 + $0x52c] sm:$0xf0]  ;;  %v6487_v24 = vld [vmem:[%s9995_s8 + $0xb4] sm:$0xf] }
 0x290   :  { %v2250_v40 = vmax.f32 %v2244_v60, 0.0  ;;  %v5957_v60 = vor.u32 %v6627_v37, %v5954_v21  ;;  %v5366_v37 = vld [vmem:[%s9995_s8 + $0x94] sm:$0xf0]  ;;  %v6181_v21 = vor.u32 %v6683_v28, %v6178_v29  ;;  %v5652_v28 = vld [vmem:[%s9995_s8 + $0x2b0] sm:$0xf] }
 0x291   :  { %3786 = vmatpush.bf16.msra.mxu0 %v5421_v46  ;;  %v5509_v46 = vor.u32 %v6515_v58, %v5506_v36  ;;  %v5397_v58 = vor.u32 %v6487_v24, %v5394_v25  ;;  %v6480_v36 = vld [vmem:[%s9995_s8 + $0x7c] sm:$0xf]  ;;  %v5484_v25 = vld [vmem:[%s9995_s8 + $0x160] sm:$0xf]  ;;  %v6554_v29 = vld [vmem:[%s9995_s8 + $0x2c8] sm:$0xf0] }
 0x292   :  { %v9079_v39 = vpack.c.bf16 %v2250_v40, %v2250_v40  ;;  %3812 = vmatpush.bf16.msra.mxu2 %v5869_v32  ;;  %v6064_v32 = vld [vmem:[%s9995_s8 + $0x5f0] sm:$0xf]  ;;  %v5646_v40 = vld [vmem:[%s9995_s8 + $0x2c4] sm:$0xf0] }
 0x293   :  { %3801 = vmatpush.bf16.msra.mxu1 %v5589_v34  ;;  %v5478_v34 = vld [vmem:[%s9995_s8 + $0x174] sm:$0xf0]  ;;  %v6065_v55 = vor.u32 %v6658_v47, %v6064_v32  ;;  %v5649_v41 = vor.u32 %v6550_v54, %v5646_v40  ;;  %v6575_v47 = vld [vmem:[%s9995_s8 + $0x370] sm:$0xf0]  ;;  %v5338_v54 = vld [vmem:[%s9995_s8 + $0x5c] sm:$0xf0] }
 0x294   :  { %3726 = vmatmul.bf16.vlgmr.msra.gmra.mxu3 %v9079_v39  ;;  %3739 = vmatmul.bf16.vlgmr.msrb.gmra.mxu0 %v8993_v13  ;;  %v5481_v56 = vor.u32 %v6508_v49, %v5478_v34  ;;  %v5736_v32 = vld [vmem:[%s9995_s8 + $0x358] sm:$0xf]  ;;  %v5369_v49 = vor.u32 %v6480_v36, %v5366_v37  ;;  %v6473_v34 = vld [vmem:[%s9995_s8 + $0x44] sm:$0xf]  ;;  %v5653_v36 = vor.u32 %v6554_v29, %v5652_v28  ;;  %v5456_v37 = vld [vmem:[%s9995_s8 + $0x128] sm:$0xf] }
 0x295   :  { %3765 = vmatmul.bf16.vlgmr.msrb.gmra.mxu2 %v9001_v57  ;;  %3787 = vmatpush.bf16.msra.mxu0 %v5393_v59  ;;  %v2245_v7 = vpop.f32.mrf.mxu3  ;;  %v5929_v59 = vor.u32 %v6620_v51, %v5926_v52  ;;  %v6585_v40 = vld [vmem:[%s9995_s8 + $0x3c4] sm:$0xf]  ;;  %v5792_v28 = vld [vmem:[%s9995_s8 + $0x3c8] sm:$0xf] }
 0x296   :  { %3813 = vmatpush.bf16.msra.mxu2 %v5841_v62  ;;  %3822 = vmatpush.bf16.msra.mxu3 %v6177_v63  ;;  %v6036_v62 = vld [vmem:[%s9995_s8 + $0x5b8] sm:$0xf]  ;;  %v6651_v63 = vld [vmem:[%s9995_s8 + $0x5d0] sm:$0xf0] }
 0x297   :  { %3802 = vmatpush.bf16.msra.mxu1 %v5561_v2  ;;  %v6613_v2 = vld [vmem:[%s9995_s8 + $0x4a4] sm:$0xf]  ;;  %v6037_v5 = vor.u32 %v6651_v63, %v6036_v62  ;;  %v6122_v62 = vld [vmem:[%s9995_s8 + $0x67c] sm:$0xf0] }
 0x298   :  { %v5901_v7 = vor.u32 %v6613_v2, %v5898_v45  ;;  %v5708_v63 = vld [vmem:[%s9995_s8 + $0x320] sm:$0xf]  ;;  %v6466_v2 = vld [vmem:[%s9995_s8 + $0xc] sm:$0xf]  ;;  %v5310_v45 = vld [vmem:[%s9995_s8 + $0x24] sm:$0xf0] }
 0x299   :  { %3788 = vmatpush.bf16.msra.mxu0 %v5365_v8  ;;  %v6008_v8 = vld [vmem:[%s9995_s8 + $0x580] sm:$0xf] }
 0x29a   :  { %3814 = vmatpush.bf16.msra.mxu2 %v5813_v12  ;;  %3823 = vmatpush.bf16.msra.mxu3 %v6149_v14  ;;  %v5621_v12 = vor.u32 %v6543_v3, %v5618_v4  ;;  %v5422_v14 = vld [vmem:[%s9995_s8 + $0x104] sm:$0xf0]  ;;  %v6009_v18 = vor.u32 %v6644_v10, %v6008_v8  ;;  %v6578_v3 = vld [vmem:[%s9995_s8 + $0x38c] sm:$0xf]  ;;  %v5709_v8 = vor.u32 %v6568_v0, %v5708_v63  ;;  %v5512_v10 = vld [vmem:[%s9995_s8 + $0x198] sm:$0xf] }
 0x29b   :  { %3803 = vmatpush.bf16.msra.mxu1 %v5533_v17  ;;  %v5590_v17 = vld [vmem:[%s9995_s8 + $0x254] sm:$0xf0]  ;;  %v5425_v20 = vor.u32 %v6494_v11, %v5422_v14  ;;  %v6519_v11 = vld [vmem:[%s9995_s8 + $0x1b0] sm:$0xf0] }
 0x29c   :  { %v5593_v9 = vor.u32 %v6536_v16, %v5590_v17  ;;  %v6631_v14 = vld [vmem:[%s9995_s8 + $0x530] sm:$0xf0]  ;;  %v5313_v16 = vor.u32 %v6466_v2, %v5310_v45  ;;  %v5848_v2 = vld [vmem:[%s9995_s8 + $0x438] sm:$0xf] }
 0x29d   :  { %3789 = vmatpush.bf16.msra.mxu0 %v5337_v23  ;;  %v6637_v23 = vld [vmem:[%s9995_s8 + $0x560] sm:$0xf0]  ;;  %v6603_v45 = vld [vmem:[%s9995_s8 + $0x450] sm:$0xf0] }
 0x29e   :  { %3815 = vmatpush.bf16.msra.mxu2 %v5785_v26  ;;  %3824 = vmatpush.bf16.msra.mxu3 %v6121_v27  ;;  %v6599_v26 = vld [vmem:[%s9995_s8 + $0x434] sm:$0xf]  ;;  %v5842_v27 = vld [vmem:[%s9995_s8 + $0x44c] sm:$0xf0]  ;;  %v5981_v33 = vor.u32 %v6637_v23, %v5980_v19  ;;  %v5513_v19 = vor.u32 %v6519_v11, %v5512_v10  ;;  %v5849_v10 = vor.u32 %v6603_v45, %v5848_v2  ;;  %v6621_v2 = vld [vmem:[%s9995_s8 + $0x4e4] sm:$0xf] }
 0x29f   :  { %3848 = vmatpush.bf16.msrb.mxu1 %v5733_v22  ;;  %v5873_v22 = vor.u32 %v6606_v15, %v5870_v48  ;;  %v5680_v15 = vld [vmem:[%s9995_s8 + $0x2e8] sm:$0xf]  ;;  %v6561_v48 = vld [vmem:[%s9995_s8 + $0x300] sm:$0xf0]  ;;  %v5934_v45 = vld [vmem:[%s9995_s8 + $0x4fc] sm:$0xf0] }
 0x2a0   :  { %3804 = vmatmul.bf16.vlgmr.msra.gmra.mxu1 %v8966_v61  ;;  %v5681_v24 = vor.u32 %v6561_v48, %v5680_v15  ;;  %v5820_v15 = vld [vmem:[%s9995_s8 + $0x400] sm:$0xf] }
 0x2a1   :  { %3790 = vmatpush.bf16.msra.mxu0 %v5309_v38  ;;  %v5565_v38 = vor.u32 %v6529_v30, %v5562_v31 }
 0x2a2   :  { %3816 = vmatpush.bf16.msra.mxu2 %v5757_v53  ;;  %3825 = vmatpush.bf16.msra.mxu3 %v6093_v44  ;;  %v6676_v53 = vld [vmem:[%s9995_s8 + $0x69c] sm:$0xf]  ;;  %v6150_v44 = vld [vmem:[%s9995_s8 + $0x6b4] sm:$0xf0] }
 0x2a3   :  { %3849 = vmatpush.bf16.msrb.mxu1 %v5705_v35  ;;  %v5845_v35 = vor.u32 %v6599_v26, %v5842_v27  ;;  %v6153_v51 = vor.u32 %v6676_v53, %v6150_v44  ;;  %v5932_v26 = vld [vmem:[%s9995_s8 + $0x4e0] sm:$0xf]  ;;  %v6624_v27 = vld [vmem:[%s9995_s8 + $0x4f8] sm:$0xf0]  ;;  %v6547_v53 = vld [vmem:[%s9995_s8 + $0x290] sm:$0xf0] }
 0x2a4   :  { %3778 = vmatmul.bf16.vlgmr.msrb.gmra.mxu3 %v9079_v39  ;;  %3791 = vmatmul.bf16.vlgmr.msra.gmra.mxu0 %v8993_v13 }
 0x2a5   :  { %3835 = vmatpush.bf16.msrb.mxu0 %v5509_v46  ;;  %3817 = vmatmul.bf16.vlgmr.msra.gmra.mxu2 %v9001_v57  ;;  %v6522_v46 = vld [vmem:[%s9995_s8 + $0x1cc] sm:$0xf] }
 0x2a6   :  { %3861 = vmatpush.bf16.msrb.mxu2 %v5957_v60  ;;  %3826 = vmatpush.bf16.msra.mxu3 %v6065_v55  ;;  %v5534_v60 = vld [vmem:[%s9995_s8 + $0x1e4] sm:$0xf0]  ;;  %v5786_v55 = vld [vmem:[%s9995_s8 + $0x3dc] sm:$0xf0] }
 0x2a7   :  { %3850 = vmatpush.bf16.msrb.mxu1 %v5677_v50  ;;  %v5817_v50 = vor.u32 %v6592_v42, %v5814_v43  ;;  %v5537_v52 = vor.u32 %v6522_v46, %v5534_v60  ;;  %v5789_v1 = vor.u32 %v6585_v40, %v5786_v55  ;;  %v6617_v42 = vld [vmem:[%s9995_s8 + $0x4c0] sm:$0xf0]  ;;  %v5624_v43 = vld [vmem:[%s9995_s8 + $0x278] sm:$0xf]  ;;  %v6540_v40 = vld [vmem:[%s9995_s8 + $0x258] sm:$0xf0] }
 0x2a8   :  { %v6641_v60 = vld [vmem:[%s9995_s8 + $0x584] sm:$0xf] }
 0x2a9   :  { %3836 = vmatpush.bf16.msrb.mxu0 %v5481_v56  ;;  %v5737_v56 = vor.u32 %v6575_v47, %v5736_v32  ;;  %v6010_v32 = vld [vmem:[%s9995_s8 + $0x59c] sm:$0xf0] }
 0x2aa   :  { %3862 = vmatpush.bf16.msrb.mxu2 %v5929_v59  ;;  %3827 = vmatpush.bf16.msra.mxu3 %v6037_v5  ;;  %v6669_v59 = vld [vmem:[%s9995_s8 + $0x664] sm:$0xf]  ;;  %v5758_v5 = vld [vmem:[%s9995_s8 + $0x3a4] sm:$0xf0]  ;;  %v6013_v55 = vor.u32 %v6641_v60, %v6010_v32  ;;  %v6666_v60 = vld [vmem:[%s9995_s8 + $0x648] sm:$0xf0] }
 0x2ab   :  { %3851 = vmatpush.bf16.msrb.mxu1 %v5649_v41  ;;  %v5341_v41 = vor.u32 %v6473_v34, %v5338_v54  ;;  %v6125_v4 = vor.u32 %v6669_v59, %v6122_v62  ;;  %v5761_v17 = vor.u32 %v6578_v3, %v5758_v5  ;;  %v6498_v34 = vld [vmem:[%s9995_s8 + $0x108] sm:$0xf0]  ;;  %v5596_v54 = vld [vmem:[%s9995_s8 + $0x240] sm:$0xf]  ;;  %v5982_v62 = vld [vmem:[%s9995_s8 + $0x564] sm:$0xf0] }
 0x2ac   :  { %v6634_v59 = vld [vmem:[%s9995_s8 + $0x54c] sm:$0xf]  ;;  %v5597_v0 = vor.u32 %v6540_v40, %v5596_v54  ;;  %v6184_v3 = vld [vmem:[%s9995_s8 + $0x6d8] sm:$0xf]  ;;  %v5568_v5 = vld [vmem:[%s9995_s8 + $0x208] sm:$0xf] }
 0x2ad   :  { %3837 = vmatpush.bf16.msrb.mxu0 %v5453_v6  ;;  %v6662_v6 = vld [vmem:[%s9995_s8 + $0x62c] sm:$0xf]  ;;  %v6516_v32 = vld [vmem:[%s9995_s8 + $0x19c] sm:$0xf]  ;;  %v5682_v54 = vld [vmem:[%s9995_s8 + $0x304] sm:$0xf0] }
 0x2ae   :  { %3863 = vmatpush.bf16.msrb.mxu2 %v5901_v7  ;;  %3828 = vmatpush.bf16.msra.mxu3 %v6009_v18  ;;  %v6094_v7 = vld [vmem:[%s9995_s8 + $0x644] sm:$0xf0] }
 0x2af   :  { %3852 = vmatpush.bf16.msrb.mxu1 %v5621_v12  ;;  %v5960_v12 = vld [vmem:[%s9995_s8 + $0x518] sm:$0xf]  ;;  %v6097_v18 = vor.u32 %v6662_v6, %v6094_v7  ;;  %v6533_v6 = vld [vmem:[%s9995_s8 + $0x220] sm:$0xf0]  ;;  %v5985_v7 = vor.u32 %v6634_v59, %v5982_v62 }
 0x2b0   :  { %v5961_v23 = vor.u32 %v6631_v14, %v5960_v12  ;;  %v5372_v12 = vld [vmem:[%s9995_s8 + $0x80] sm:$0xf]  ;;  %v6484_v14 = vld [vmem:[%s9995_s8 + $0x98] sm:$0xf0]  ;;  %v5569_v48 = vor.u32 %v6533_v6, %v5568_v5  ;;  %v6072_v62 = vld [vmem:[%s9995_s8 + $0x5f8] sm:$0xf] }
 0x2b1   :  { %3838 = vmatpush.bf16.msrb.mxu0 %v5425_v20  ;;  %v6655_v20 = vld [vmem:[%s9995_s8 + $0x5f4] sm:$0xf] }
 0x2b2   :  { %3864 = vmatpush.bf16.msrb.mxu2 %v5873_v22  ;;  %3829 = vmatpush.bf16.msra.mxu3 %v5981_v33  ;;  %v6066_v22 = vld [vmem:[%s9995_s8 + $0x60c] sm:$0xf0]  ;;  %v6648_v33 = vld [vmem:[%s9995_s8 + $0x5bc] sm:$0xf] }
 0x2b3   :  { %3853 = vmatpush.bf16.msrb.mxu1 %v5593_v9  ;;  %v6512_v9 = vld [vmem:[%s9995_s8 + $0x178] sm:$0xf0]  ;;  %v6069_v30 = vor.u32 %v6655_v20, %v6066_v22  ;;  %v6526_v20 = vld [vmem:[%s9995_s8 + $0x1e8] sm:$0xf0]  ;;  %v5373_v22 = vor.u32 %v6484_v14, %v5372_v12  ;;  %v5458_v14 = vld [vmem:[%s9995_s8 + $0x144] sm:$0xf0] }
 0x2b4   :  { %v5485_v31 = vor.u32 %v6512_v9, %v5484_v25 }
 0x2b5   :  { %3839 = vmatpush.bf16.msrb.mxu0 %v5397_v58  ;;  %3830 = vmatmul.bf16.vlgmr.msra.gmra.mxu3 %v9079_v39  ;;  %v6038_v58 = vld [vmem:[%s9995_s8 + $0x5d4] sm:$0xf0] }
 0x2b6   :  { %3865 = vmatpush.bf16.msrb.mxu2 %v5845_v35  ;;  %3874 = vmatpush.bf16.msrb.mxu3 %v6181_v21  ;;  %v5933_v35 = vor.u32 %v6624_v27, %v5932_v26  ;;  %v6505_v21 = vld [vmem:[%s9995_s8 + $0x140] sm:$0xf0]  ;;  %v6041_v44 = vor.u32 %v6648_v33, %v6038_v58  ;;  %v5344_v26 = vld [vmem:[%s9995_s8 + $0x48] sm:$0xf] }
 0x2b7   :  { %3854 = vmatpush.bf16.msrb.mxu1 %v5565_v38  ;;  %v5904_v38 = vld [vmem:[%s9995_s8 + $0x4a8] sm:$0xf]  ;;  %v5457_v46 = vor.u32 %v6505_v21, %v5456_v37  ;;  %v6477_v27 = vld [vmem:[%s9995_s8 + $0x60] sm:$0xf0]  ;;  %v5710_v37 = vld [vmem:[%s9995_s8 + $0x33c] sm:$0xf0] }
 0x2b8   :  { %v5905_v47 = vor.u32 %v6617_v42, %v5904_v38  ;;  %v6673_v33 = vld [vmem:[%s9995_s8 + $0x680] sm:$0xf0]  ;;  %v5316_v21 = vld [vmem:[%s9995_s8 + $0x10] sm:$0xf] }
 0x2b9   :  { %3840 = vmatpush.bf16.msrb.mxu0 %v5369_v49  ;;  %v5625_v49 = vor.u32 %v6547_v53, %v5624_v43  ;;  %v6470_v43 = vld [vmem:[%s9995_s8 + $0x28] sm:$0xf0]  ;;  %v5764_v53 = vld [vmem:[%s9995_s8 + $0x390] sm:$0xf] }
 0x2ba   :  { %3866 = vmatpush.bf16.msrb.mxu2 %v5817_v50  ;;  %3875 = vmatpush.bf16.msrb.mxu3 %v6153_v51  ;;  %v5428_v50 = vld [vmem:[%s9995_s8 + $0xf0] sm:$0xf] }
 0x2bb   :  { %3855 = vmatpush.bf16.msrb.mxu1 %v5537_v52  ;;  %v5876_v51 = vld [vmem:[%s9995_s8 + $0x470] sm:$0xf]  ;;  %v6610_v52 = vld [vmem:[%s9995_s8 + $0x488] sm:$0xf0] }
 0x2bc   :  { %v5877_v63 = vor.u32 %v6610_v52, %v5876_v51  ;;  %v5317_v51 = vor.u32 %v6470_v43, %v5316_v21  ;;  %v6558_v52 = vld [vmem:[%s9995_s8 + $0x2ec] sm:$0xf]  ;;  %v6684_v43 = vld [vmem:[%s9995_s8 + $0x6dc] sm:$0xf] }
 0x2bd   :  { %3841 = vmatpush.bf16.msrb.mxu0 %v5341_v41  ;;  %v5400_v41 = vld [vmem:[%s9995_s8 + $0xb8] sm:$0xf] }
 0x2be   :  { %3867 = vmatpush.bf16.msrb.mxu2 %v5789_v1  ;;  %3876 = vmatpush.bf16.msrb.mxu3 %v6125_v4  ;;  %v6491_v1 = vld [vmem:[%s9995_s8 + $0xd0] sm:$0xf0] }
 0x2bf   :  { %3900 = vmatpush.bf16.msra.mxu1 %v5737_v56  ;;  %v5429_v56 = vor.u32 %v6498_v34, %v5428_v50  ;;  %v6687_v4 = vld [vmem:[%s9995_s8 + $0x6f0] sm:$0xf0]  ;;  %v6628_v50 = vld [vmem:[%s9995_s8 + $0x51c] sm:$0xf]  ;;  %v5962_v34 = vld [vmem:[%s9995_s8 + $0x534] sm:$0xf0] }
 0x2c0   :  { %3856 = vmatmul.bf16.vlgmr.msrb.gmra.mxu1 %v8966_v61  ;;  %v6185_v11 = vor.u32 %v6687_v4, %v6184_v3  ;;  %v5965_v59 = vor.u32 %v6628_v50, %v5962_v34  ;;  %v6551_v3 = vld [vmem:[%s9995_s8 + $0x2b4] sm:$0xf]  ;;  %v5654_v4 = vld [vmem:[%s9995_s8 + $0x2cc] sm:$0xf0]  ;;  %v5374_v50 = vld [vmem:[%s9995_s8 + $0x9c] sm:$0xf0] }
 0x2c1   :  { %3842 = vmatpush.bf16.msrb.mxu0 %v5313_v16  ;;  %v6596_v16 = vld [vmem:[%s9995_s8 + $0x418] sm:$0xf0]  ;;  %v5657_v12 = vor.u32 %v6551_v3, %v5654_v4  ;;  %v5346_v3 = vld [vmem:[%s9995_s8 + $0x64] sm:$0xf0]  ;;  %v6586_v4 = vld [vmem:[%s9995_s8 + $0x3cc] sm:$0xf] }
 0x2c2   :  { %3868 = vmatpush.bf16.msrb.mxu2 %v5761_v17  ;;  %3877 = vmatpush.bf16.msrb.mxu3 %v6097_v18  ;;  %v6156_v17 = vld [vmem:[%s9995_s8 + $0x6a0] sm:$0xf]  ;;  %v6680_v18 = vld [vmem:[%s9995_s8 + $0x6b8] sm:$0xf0]  ;;  %v5821_v25 = vor.u32 %v6596_v16, %v5820_v15  ;;  %v6614_v15 = vld [vmem:[%s9995_s8 + $0x4ac] sm:$0xf] }
 0x2c3   :  { %3901 = vmatpush.bf16.msra.mxu1 %v5709_v8  ;;  %v5401_v8 = vor.u32 %v6491_v1, %v5400_v41  ;;  %v6157_v9 = vor.u32 %v6680_v18, %v6156_v17  ;;  %v5685_v41 = vor.u32 %v6558_v52, %v5682_v54  ;;  %v5486_v1 = vld [vmem:[%s9995_s8 + $0x17c] sm:$0xf0]  ;;  %v6544_v16 = vld [vmem:[%s9995_s8 + $0x27c] sm:$0xf]  ;;  %v5626_v17 = vld [vmem:[%s9995_s8 + $0x294] sm:$0xf0] }
 0x2c4   :  { %3843 = vmatmul.bf16.vlgmr.msrb.gmra.mxu0 %v8993_v13  ;;  %v6593_v52 = vld [vmem:[%s9995_s8 + $0x404] sm:$0xf]  ;;  %v5822_v54 = vld [vmem:[%s9995_s8 + $0x41c] sm:$0xf0] }
 0x2c5   :  { %3887 = vmatpush.bf16.msra.mxu0 %v5513_v19  ;;  %3869 = vmatmul.bf16.vlgmr.msrb.gmra.mxu2 %v9001_v57  ;;  %v5540_v19 = vld [vmem:[%s9995_s8 + $0x1d0] sm:$0xf] }
 0x2c6   :  { %3913 = vmatpush.bf16.msra.mxu2 %v5961_v23  ;;  %3878 = vmatpush.bf16.msrb.mxu3 %v6069_v30  ;;  %v6572_v23 = vld [vmem:[%s9995_s8 + $0x35c] sm:$0xf]  ;;  %v5541_v29 = vor.u32 %v6526_v20, %v5540_v19  ;;  %v6589_v30 = vld [vmem:[%s9995_s8 + $0x3e0] sm:$0xf0] }
 0x2c7   :  { %3902 = vmatpush.bf16.msra.mxu1 %v5681_v24  ;;  %v5738_v24 = vld [vmem:[%s9995_s8 + $0x374] sm:$0xf0]  ;;  %v5793_v38 = vor.u32 %v6589_v30, %v5792_v28  ;;  %v6537_v28 = vld [vmem:[%s9995_s8 + $0x244] sm:$0xf] }
 0x2c8   :  { %v5741_v58 = vor.u32 %v6572_v23, %v5738_v24  ;;  %v6645_v23 = vld [vmem:[%s9995_s8 + $0x5a0] sm:$0xf0]  ;;  %v6495_v24 = vld [vmem:[%s9995_s8 + $0xf4] sm:$0xf] }
 0x2c9   :  { %3888 = vmatpush.bf16.msra.mxu0 %v5485_v31  ;;  %v6128_v31 = vld [vmem:[%s9995_s8 + $0x668] sm:$0xf] }
 0x2ca   :  { %3914 = vmatpush.bf16.msra.mxu2 %v5933_v35  ;;  %3879 = vmatpush.bf16.msrb.mxu3 %v6041_v44  ;;  %v5345_v35 = vor.u32 %v6477_v27, %v5344_v26  ;;  %v6129_v42 = vor.u32 %v6673_v33, %v6128_v31  ;;  %v6582_v44 = vld [vmem:[%s9995_s8 + $0x3a8] sm:$0xf0]  ;;  %v6607_v26 = vld [vmem:[%s9995_s8 + $0x474] sm:$0xf]  ;;  %v5878_v27 = vld [vmem:[%s9995_s8 + $0x48c] sm:$0xf0] }
 0x2cb   :  { %3903 = vmatpush.bf16.msra.mxu1 %v5653_v36  ;;  %v6565_v36 = vld [vmem:[%s9995_s8 + $0x324] sm:$0xf]  ;;  %v5765_v40 = vor.u32 %v6582_v44, %v5764_v53  ;;  %v5988_v31 = vld [vmem:[%s9995_s8 + $0x550] sm:$0xf]  ;;  %v6186_v53 = vld [vmem:[%s9995_s8 + $0x6f4] sm:$0xf0] }
 0x2cc   :  { %v6530_v44 = vld [vmem:[%s9995_s8 + $0x20c] sm:$0xf]  ;;  %v6189_v34 = vor.u32 %v6684_v43, %v6186_v53  ;;  %v5660_v43 = vld [vmem:[%s9995_s8 + $0x2b8] sm:$0xf]  ;;  %v6555_v53 = vld [vmem:[%s9995_s8 + $0x2d0] sm:$0xf0] }
 0x2cd   :  { %3889 = vmatpush.bf16.msra.mxu0 %v5457_v46  ;;  %v6100_v46 = vld [vmem:[%s9995_s8 + $0x630] sm:$0xf] }
 0x2ce   :  { %3915 = vmatpush.bf16.msra.mxu2 %v5905_v47  ;;  %3880 = vmatpush.bf16.msrb.mxu3 %v6013_v55  ;;  %v5713_v47 = vor.u32 %v6565_v36, %v5710_v37  ;;  %v6101_v55 = vor.u32 %v6666_v60, %v6100_v46  ;;  %v6488_v36 = vld [vmem:[%s9995_s8 + $0xbc] sm:$0xf]  ;;  %v5402_v37 = vld [vmem:[%s9995_s8 + $0xd4] sm:$0xf0]  ;;  %v5570_v46 = vld [vmem:[%s9995_s8 + $0x224] sm:$0xf0] }
 0x2cf   :  { %3904 = vmatpush.bf16.msra.mxu1 %v5625_v49  ;;  %v5514_v49 = vld [vmem:[%s9995_s8 + $0x1b4] sm:$0xf0] }
 0x2d1   :  { %3890 = vmatpush.bf16.msra.mxu0 %v5429_v56  ;;  %v5517_v56 = vor.u32 %v6516_v32, %v5514_v49  ;;  %v5405_v32 = vor.u32 %v6488_v36, %v5402_v37  ;;  %v6481_v49 = vld [vmem:[%s9995_s8 + $0x84] sm:$0xf]  ;;  %v5492_v37 = vld [vmem:[%s9995_s8 + $0x168] sm:$0xf] }
 0x2d2   :  { %3916 = vmatpush.bf16.msra.mxu2 %v5877_v63  ;;  %3881 = vmatpush.bf16.msrb.mxu3 %v5985_v7  ;;  %v6659_v63 = vld [vmem:[%s9995_s8 + $0x610] sm:$0xf0]  ;;  %v5937_v7 = vor.u32 %v6621_v2, %v5934_v45 }
 0x2d3   :  { %3905 = vmatpush.bf16.msra.mxu1 %v5597_v0  ;;  %v6509_v0 = vld [vmem:[%s9995_s8 + $0x164] sm:$0xf]  ;;  %v6073_v5 = vor.u32 %v6659_v63, %v6072_v62  ;;  %v5744_v62 = vld [vmem:[%s9995_s8 + $0x360] sm:$0xf]  ;;  %v6576_v63 = vld [vmem:[%s9995_s8 + $0x378] sm:$0xf0] }
 0x2d4   :  { %v5489_v6 = vor.u32 %v6509_v0, %v5486_v1  ;;  %v5377_v0 = vor.u32 %v6481_v49, %v5374_v50  ;;  %v6474_v1 = vld [vmem:[%s9995_s8 + $0x4c] sm:$0xf]  ;;  %v5661_v50 = vor.u32 %v6555_v53, %v5660_v43 }
 0x2d5   :  { %3891 = vmatpush.bf16.msra.mxu0 %v5401_v8  ;;  %3882 = vmatmul.bf16.vlgmr.msrb.gmra.mxu3 %v9079_v39  ;;  %v6044_v8 = vld [vmem:[%s9995_s8 + $0x5c0] sm:$0xf] }
 0x2d6   :  { %3917 = vmatpush.bf16.msra.mxu2 %v5849_v10  ;;  %3926 = vmatpush.bf16.msra.mxu3 %v6185_v11  ;;  %v6652_v10 = vld [vmem:[%s9995_s8 + $0x5d8] sm:$0xf0]  ;;  %v6502_v11 = vld [vmem:[%s9995_s8 + $0x12c] sm:$0xf] }
 0x2d7   :  { %3906 = vmatpush.bf16.msra.mxu1 %v5569_v48  ;;  %v5906_v48 = vld [vmem:[%s9995_s8 + $0x4c4] sm:$0xf0]  ;;  %v6045_v18 = vor.u32 %v6652_v10, %v6044_v8  ;;  %v5461_v19 = vor.u32 %v6502_v11, %v5458_v14  ;;  %v6569_v11 = vld [vmem:[%s9995_s8 + $0x340] sm:$0xf0] }
 0x2d8   :  { %v5909_v20 = vor.u32 %v6614_v15, %v5906_v48  ;;  %v6130_v8 = vld [vmem:[%s9995_s8 + $0x684] sm:$0xf0]  ;;  %v6467_v15 = vld [vmem:[%s9995_s8 + $0x14] sm:$0xf]  ;;  %v5318_v48 = vld [vmem:[%s9995_s8 + $0x2c] sm:$0xf0] }
 0x2d9   :  { %3892 = vmatpush.bf16.msra.mxu0 %v5373_v22  ;;  %v6016_v22 = vld [vmem:[%s9995_s8 + $0x588] sm:$0xf] }
 0x2da   :  { %3918 = vmatpush.bf16.msra.mxu2 %v5821_v25  ;;  %3927 = vmatpush.bf16.msra.mxu3 %v6157_v9  ;;  %v5629_v25 = vor.u32 %v6544_v16, %v5626_v17  ;;  %v5430_v9 = vld [vmem:[%s9995_s8 + $0x10c] sm:$0xf0]  ;;  %v6017_v30 = vor.u32 %v6645_v23, %v6016_v22  ;;  %v5716_v10 = vld [vmem:[%s9995_s8 + $0x328] sm:$0xf]  ;;  %v6579_v16 = vld [vmem:[%s9995_s8 + $0x394] sm:$0xf] }
 0x2db   :  { %3907 = vmatpush.bf16.msra.mxu1 %v5541_v29  ;;  %v5598_v29 = vld [vmem:[%s9995_s8 + $0x25c] sm:$0xf0]  ;;  %v5433_v33 = vor.u32 %v6495_v24, %v5430_v9  ;;  %v5717_v22 = vor.u32 %v6569_v11, %v5716_v10  ;;  %v6520_v24 = vld [vmem:[%s9995_s8 + $0x1b8] sm:$0xf0]  ;;  %v6635_v11 = vld [vmem:[%s9995_s8 + $0x554] sm:$0xf] }
 0x2dc   :  { %v5601_v21 = vor.u32 %v6537_v28, %v5598_v29  ;;  %v5520_v23 = vld [vmem:[%s9995_s8 + $0x1a0] sm:$0xf]  ;;  %v6632_v9 = vld [vmem:[%s9995_s8 + $0x538] sm:$0xf0]  ;;  %v5321_v28 = vor.u32 %v6467_v15, %v5318_v48 }
 0x2dd   :  { %3893 = vmatpush.bf16.msra.mxu0 %v5345_v35  ;;  %v6638_v35 = vld [vmem:[%s9995_s8 + $0x568] sm:$0xf0]  ;;  %v5408_v48 = vld [vmem:[%s9995_s8 + $0xc0] sm:$0xf] }
 0x2de   :  { %3919 = vmatpush.bf16.msra.mxu2 %v5793_v38  ;;  %3928 = vmatpush.bf16.msra.mxu3 %v6129_v42  ;;  %v6600_v38 = vld [vmem:[%s9995_s8 + $0x43c] sm:$0xf]  ;;  %v5850_v42 = vld [vmem:[%s9995_s8 + $0x454] sm:$0xf0]  ;;  %v5989_v60 = vor.u32 %v6638_v35, %v5988_v31  ;;  %v5521_v31 = vor.u32 %v6520_v24, %v5520_v23  ;;  %v6534_v23 = vld [vmem:[%s9995_s8 + $0x228] sm:$0xf0] }
 0x2df   :  { %3952 = vmatpush.bf16.msrb.mxu1 %v5741_v58  ;;  %v5881_v58 = vor.u32 %v6607_v26, %v5878_v27  ;;  %v5688_v26 = vld [vmem:[%s9995_s8 + $0x2f0] sm:$0xf]  ;;  %v6562_v27 = vld [vmem:[%s9995_s8 + $0x308] sm:$0xf0]  ;;  %v9875_v24 = vld [vmem:[%s9996_s9] sm:$0x7f] }
 0x2e0   :  { %3908 = vmatmul.bf16.vlgmr.msra.gmra.mxu1 %v8966_v61  ;;  %v5689_v36 = vor.u32 %v6562_v27, %v5688_v26  ;;  %s4203_s9 = sshll.u32 %s6798_s15, 4  ;;  %s4204_s9 = int_to_ptr.vmem [resolvable:$true] %s4203_s9 }
 0x2e1   :  { %3894 = vmatpush.bf16.msra.mxu0 %v5317_v51  ;;  %v5573_v51 = vor.u32 %v6530_v44, %v5570_v46  ;;  %4208 = dma.vmem_to_hbm [thread:$0]  %s4204_s9, 128, %s4206_s14, [#allocation5]  }
 0x2e2   :  { %3920 = vmatpush.bf16.msra.mxu2 %v5765_v40  ;;  %3929 = vmatpush.bf16.msra.mxu3 %v6101_v55  ;;  %v6677_v40 = vld [vmem:[%s9995_s8 + $0x6a4] sm:$0xf]  ;;  %v6158_v55 = vld [vmem:[%s9995_s8 + $0x6bc] sm:$0xf0]  ;;  %4219 = dma.vmem_to_hbm [thread:$0]  %s4215_s16, 128, %s4217_s18, [#allocation5]  }
 0x2e3   :  { %3953 = vmatpush.bf16.msrb.mxu1 %v5713_v47  ;;  %v5853_v47 = vor.u32 %v6600_v38, %v5850_v42  ;;  %v6161_v2 = vor.u32 %v6677_v40, %v6158_v55  ;;  %v5940_v38 = vld [vmem:[%s9995_s8 + $0x4e8] sm:$0xf]  ;;  %v6625_v42 = vld [vmem:[%s9995_s8 + $0x500] sm:$0xf0]  ;;  %v5632_v40 = vld [vmem:[%s9995_s8 + $0x280] sm:$0xf] }
 0x2e4   :  { %3895 = vmatmul.bf16.vlgmr.msra.gmra.mxu0 %v8993_v13  ;;  %v5941_v49 = vor.u32 %v6625_v42, %v5940_v38  ;;  %v6548_v55 = vld [vmem:[%s9995_s8 + $0x298] sm:$0xf0]  ;;  %v6527_v38 = vld [vmem:[%s9995_s8 + $0x1f0] sm:$0xf0]  ;;  %v2513_v42 = vperm.slane %v9875_v24, 0 }
 0x2e5   :  { %3939 = vmatpush.bf16.msrb.mxu0 %v5517_v56  ;;  %3921 = vmatmul.bf16.vlgmr.msra.gmra.mxu2 %v9001_v57  ;;  %v6523_v56 = vld [vmem:[%s9995_s8 + $0x1d4] sm:$0xf] }
 0x2e6   :  { %3965 = vmatpush.bf16.msrb.mxu2 %v5965_v59  ;;  %3930 = vmatpush.bf16.msra.mxu3 %v6073_v5  ;;  %v5542_v59 = vld [vmem:[%s9995_s8 + $0x1ec] sm:$0xf0]  ;;  %v5794_v5 = vld [vmem:[%s9995_s8 + $0x3e4] sm:$0xf0] }
 0x2e7   :  { %3954 = vmatpush.bf16.msrb.mxu1 %v5685_v41  ;;  %v5825_v41 = vor.u32 %v6593_v52, %v5822_v54  ;;  %v5545_v45 = vor.u32 %v6523_v56, %v5542_v59  ;;  %v5797_v14 = vor.u32 %v6586_v4, %v5794_v5  ;;  %v5912_v52 = vld [vmem:[%s9995_s8 + $0x4b0] sm:$0xf]  ;;  %v6618_v54 = vld [vmem:[%s9995_s8 + $0x4c8] sm:$0xf0]  ;;  %v6611_v4 = vld [vmem:[%s9995_s8 + $0x490] sm:$0xf0] }
 0x2e8   :  { %v5604_v5 = vld [vmem:[%s9995_s8 + $0x248] sm:$0xf] }
 0x2e9   :  { %3940 = vmatpush.bf16.msrb.mxu0 %v5489_v6  ;;  %v5745_v6 = vor.u32 %v6576_v63, %v5744_v62  ;;  %v6642_v62 = vld [vmem:[%s9995_s8 + $0x58c] sm:$0xf]  ;;  %v6018_v63 = vld [vmem:[%s9995_s8 + $0x5a4] sm:$0xf0] }
 0x2ea   :  { %3966 = vmatpush.bf16.msrb.mxu2 %v5937_v7  ;;  %3931 = vmatpush.bf16.msra.mxu3 %v6045_v18  ;;  %v6670_v7 = vld [vmem:[%s9995_s8 + $0x66c] sm:$0xf]  ;;  %v5766_v18 = vld [vmem:[%s9995_s8 + $0x3ac] sm:$0xf0] }
 0x2eb   :  { %3955 = vmatpush.bf16.msrb.mxu1 %v5657_v12  ;;  %v5349_v12 = vor.u32 %v6474_v1, %v5346_v3  ;;  %v6133_v17 = vor.u32 %v6670_v7, %v6130_v8  ;;  %v5769_v29 = vor.u32 %v6579_v16, %v5766_v18  ;;  %v5436_v1 = vld [vmem:[%s9995_s8 + $0xf8] sm:$0xf]  ;;  %v6021_v8 = vor.u32 %v6642_v62, %v6018_v63  ;;  %v6492_v16 = vld [vmem:[%s9995_s8 + $0xd8] sm:$0xf0]  ;;  %v6471_v63 = vld [vmem:[%s9995_s8 + $0x30] sm:$0xf0] }
 0x2ec   :  { %v6604_v18 = vld [vmem:[%s9995_s8 + $0x458] sm:$0xf0]  ;;  %v5324_v62 = vld [vmem:[%s9995_s8 + $0x18] sm:$0xf] }
 0x2ed   :  { %3941 = vmatpush.bf16.msrb.mxu0 %v5461_v19  ;;  %v6663_v19 = vld [vmem:[%s9995_s8 + $0x634] sm:$0xf] }
 0x2ee   :  { %3967 = vmatpush.bf16.msrb.mxu2 %v5909_v20  ;;  %3932 = vmatpush.bf16.msra.mxu3 %v6017_v30  ;;  %v6102_v20 = vld [vmem:[%s9995_s8 + $0x64c] sm:$0xf0] }
 0x2ef   :  { %3956 = vmatpush.bf16.msrb.mxu1 %v5629_v25  ;;  %v5968_v25 = vld [vmem:[%s9995_s8 + $0x520] sm:$0xf]  ;;  %v6105_v30 = vor.u32 %v6663_v19, %v6102_v20  ;;  %v6688_v20 = vld [vmem:[%s9995_s8 + $0x6f8] sm:$0xf0] }
 0x2f0   :  { %v5969_v35 = vor.u32 %v6632_v9, %v5968_v25  ;;  %v6192_v19 = vld [vmem:[%s9995_s8 + $0x6e0] sm:$0xf]  ;;  %v5409_v9 = vor.u32 %v6492_v16, %v5408_v48  ;;  %v6653_v16 = vld [vmem:[%s9995_s8 + $0x5e0] sm:$0xf0] }
 0x2f1   :  { %3942 = vmatpush.bf16.msrb.mxu0 %v5433_v33  ;;  %v6656_v33 = vld [vmem:[%s9995_s8 + $0x5fc] sm:$0xf] }
 0x2f2   :  { %3968 = vmatpush.bf16.msrb.mxu2 %v5881_v58  ;;  %3933 = vmatpush.bf16.msra.mxu3 %v5989_v60  ;;  %v6074_v58 = vld [vmem:[%s9995_s8 + $0x614] sm:$0xf0] }
 0x2f3   :  { %3957 = vmatpush.bf16.msrb.mxu1 %v5601_v21  ;;  %v6513_v21 = vld [vmem:[%s9995_s8 + $0x180] sm:$0xf0]  ;;  %v6077_v46 = vor.u32 %v6656_v33, %v6074_v58 }
 0x2f4   :  { %v5493_v60 = vor.u32 %v6513_v21, %v5492_v37  ;;  %v6681_v37 = vld [vmem:[%s9995_s8 + $0x6c0] sm:$0xf0]  ;;  %v5548_v21 = vld [vmem:[%s9995_s8 + $0x1d8] sm:$0xf] }
 0x2f5   :  { %3943 = vmatpush.bf16.msrb.mxu0 %v5405_v32  ;;  %3934 = vmatmul.bf16.vlgmr.msra.gmra.mxu3 %v9079_v39  ;;  %v6649_v32 = vld [vmem:[%s9995_s8 + $0x5c4] sm:$0xf] }
 0x2f6   :  { %3969 = vmatpush.bf16.msrb.mxu2 %v5853_v47  ;;  %3978 = vmatpush.bf16.msrb.mxu3 %v6189_v34  ;;  %v6046_v47 = vld [vmem:[%s9995_s8 + $0x5dc] sm:$0xf0]  ;;  %v5464_v34 = vld [vmem:[%s9995_s8 + $0x130] sm:$0xf] }
 0x2f7   :  { %3958 = vmatpush.bf16.msrb.mxu1 %v5573_v51  ;;  %v6506_v51 = vld [vmem:[%s9995_s8 + $0x148] sm:$0xf0]  ;;  %v6049_v56 = vor.u32 %v6649_v32, %v6046_v47  ;;  %v5352_v32 = vld [vmem:[%s9995_s8 + $0x50] sm:$0xf] }
 0x2f8   :  { %v5465_v59 = vor.u32 %v6506_v51, %v5464_v34  ;;  %v6478_v47 = vld [vmem:[%s9995_s8 + $0x68] sm:$0xf0]  ;;  %v6136_v51 = vld [vmem:[%s9995_s8 + $0x670] sm:$0xf] }
 0x2f9   :  { %3944 = vmatpush.bf16.msrb.mxu0 %v5377_v0  ;;  %v5913_v0 = vor.u32 %v6618_v54, %v5912_v52  ;;  %v6590_v34 = vld [vmem:[%s9995_s8 + $0x3e8] sm:$0xf0]  ;;  %v5353_v54 = vor.u32 %v6478_v47, %v5352_v32 }
 0x2fa   :  { %3970 = vmatpush.bf16.msrb.mxu2 %v5825_v41  ;;  %3979 = vmatpush.bf16.msrb.mxu3 %v6161_v2  ;;  %v5633_v41 = vor.u32 %v6548_v55, %v5632_v40  ;;  %v6499_v2 = vld [vmem:[%s9995_s8 + $0x110] sm:$0xf0]  ;;  %v6674_v52 = vld [vmem:[%s9995_s8 + $0x688] sm:$0xf0] }
 0x2fb   :  { %3959 = vmatpush.bf16.msrb.mxu1 %v5545_v45  ;;  %v9788_v44 = vpop.f32.mrf.mxu1  ;;  %v5884_v45 = vld [vmem:[%s9995_s8 + $0x478] sm:$0xf]  ;;  %v5437_v10 = vor.u32 %v6499_v2, %v5436_v1  ;;  %v6583_v1 = vld [vmem:[%s9995_s8 + $0x3b0] sm:$0xf0] }
 0x2fc   :  { %v6108_v2 = vld [vmem:[%s9995_s8 + $0x638] sm:$0xf] }
 0x2fd   :  { %3945 = vmatpush.bf16.msrb.mxu0 %v5349_v12  ;;  %v5990_v12 = vld [vmem:[%s9995_s8 + $0x56c] sm:$0xf0] }
 0x2fe   :  { %3971 = vmatpush.bf16.msrb.mxu2 %v5797_v14  ;;  %3980 = vmatpush.bf16.msrb.mxu3 %v6133_v17  ;;  %v5885_v14 = vor.u32 %v6611_v4, %v5884_v45  ;;  %v5856_v17 = vld [vmem:[%s9995_s8 + $0x440] sm:$0xf]  ;;  %v5993_v25 = vor.u32 %v6635_v11, %v5990_v12  ;;  %v6667_v45 = vld [vmem:[%s9995_s8 + $0x650] sm:$0xf0]  ;;  %v5325_v4 = vor.u32 %v6471_v63, %v5324_v62 }
 0x2ff   :  { %4004 = vmatpush.bf16.msra.mxu1 %v5745_v6  ;;  %v6541_v6 = vld [vmem:[%s9995_s8 + $0x260] sm:$0xf0]  ;;  %v5857_v27 = vor.u32 %v6604_v18, %v5856_v17  ;;  %v2514_v18 = vperm.slane %v9875_v24, 1 }
 0x300   :  { %3960 = vmatmul.bf16.vlgmr.msrb.gmra.mxu1 %v8966_v61  ;;  %v5605_v15 = vor.u32 %v6541_v6, %v5604_v5 }
 0x301   :  { %3946 = vmatpush.bf16.msrb.mxu0 %v5321_v28  ;;  %v9831_v3 = vpop.f32.mrf.mxu0  ;;  %v6193_v28 = vor.u32 %v6688_v20, %v6192_v19 }
 0x302   :  { %3972 = vmatpush.bf16.msrb.mxu2 %v5769_v29  ;;  %3981 = vmatpush.bf16.msrb.mxu3 %v6105_v30  ;;  %v5380_v29 = vld [vmem:[%s9995_s8 + $0x88] sm:$0xf]  ;;  %v6485_v30 = vld [vmem:[%s9995_s8 + $0xa0] sm:$0xf0]  ;;  %v3689_v40 = vadd.f32 %v9831_v3, %v2513_v42 }
 0x303   :  { %4005 = vmatpush.bf16.msra.mxu1 %v5717_v22  ;;  %v3703_v7 = vpop.f32.mrf.mxu1  ;;  %v5576_v22 = vld [vmem:[%s9995_s8 + $0x210] sm:$0xf]  ;;  %v5381_v53 = vor.u32 %v6485_v30, %v5380_v29 }
 0x304   :  { %3947 = vmatmul.bf16.vlgmr.msrb.gmra.mxu0 %v8993_v13  ;;  %v5577_v58 = vor.u32 %v6534_v23, %v5576_v22  ;;  %v3702_v5 = vadd.f32 %v9788_v44, %v3689_v40  ;;  %v6109_v7 = vor.u32 %v6667_v45, %v6108_v2  ;;  %v6024_v22 = vld [vmem:[%s9995_s8 + $0x590] sm:$0xf]  ;;  %v6646_v23 = vld [vmem:[%s9995_s8 + $0x5a8] sm:$0xf0] }
 0x305   :  { %3991 = vmatpush.bf16.msra.mxu0 %v5521_v31  ;;  %3973 = vmatmul.bf16.vlgmr.msrb.gmra.mxu2 %v9001_v57  ;;  %v5828_v31 = vld [vmem:[%s9995_s8 + $0x408] sm:$0xf] }
 0x306   :  { %4017 = vmatpush.bf16.msra.mxu2 %v5969_v35  ;;  %3982 = vmatpush.bf16.msrb.mxu3 %v6077_v46  ;;  %v6597_v35 = vld [vmem:[%s9995_s8 + $0x420] sm:$0xf0] }
 0x307   :  { %4006 = vmatpush.bf16.msra.mxu1 %v5689_v36  ;;  %v6164_v36 = vld [vmem:[%s9995_s8 + $0x6a8] sm:$0xf]  ;;  %v5829_v46 = vor.u32 %v6597_v35, %v5828_v31 }
 0x308   :  { %v3714_v26 = vpop.f32.mrf.mxu2 }
 0x309   :  { %3992 = vmatpush.bf16.msra.mxu0 %v5493_v60  ;;  %v3690_v33 = vpop.f32.mrf.mxu0  ;;  %v6165_v60 = vor.u32 %v6681_v37, %v6164_v36  ;;  %v3715_v11 = vadd.f32 %v3714_v26, %v3702_v5  ;;  %v6025_v26 = vor.u32 %v6646_v23, %v6024_v22 }
 0x30a   :  { %4018 = vmatpush.bf16.msra.mxu2 %v5941_v49  ;;  %3983 = vmatpush.bf16.msrb.mxu3 %v6049_v56  ;;  %v5800_v49 = vld [vmem:[%s9995_s8 + $0x3d0] sm:$0xf] }
 0x30b   :  { %4007 = vmatpush.bf16.msra.mxu1 %v5661_v50  ;;  %v9902_v43 = vpop.f32.mrf.mxu1  ;;  %v5549_v50 = vor.u32 %v6527_v38, %v5548_v21  ;;  %v5801_v56 = vor.u32 %v6590_v34, %v5800_v49 }
 0x30d   :  { %3993 = vmatpush.bf16.msra.mxu0 %v5465_v59  ;;  %v6137_v59 = vor.u32 %v6674_v52, %v6136_v51 }
 0x30e   :  { %4019 = vmatpush.bf16.msra.mxu2 %v5913_v0  ;;  %3984 = vmatpush.bf16.msrb.mxu3 %v6021_v8  ;;  %v5772_v0 = vld [vmem:[%s9995_s8 + $0x398] sm:$0xf]  ;;  %v6080_v8 = vld [vmem:[%s9995_s8 + $0x600] sm:$0xf] }
 0x30f   :  { %4008 = vmatpush.bf16.msra.mxu1 %v5633_v41  ;;  %v5773_v6 = vor.u32 %v6583_v1, %v5772_v0 }
 0x310   :  { %v3716_v55 = vpop.f32.mrf.mxu2 }
 0x311   :  { %3994 = vmatpush.bf16.msra.mxu0 %v5437_v10  ;;  %v3740_v41 = vpop.f32.mrf.mxu0  ;;  %v6660_v10 = vld [vmem:[%s9995_s8 + $0x618] sm:$0xf0] }
 0x312   :  { %4020 = vmatpush.bf16.msra.mxu2 %v5885_v14  ;;  %3985 = vmatpush.bf16.msrb.mxu3 %v5993_v25 }
 0x313   :  { %4009 = vmatpush.bf16.msra.mxu1 %v5605_v15  ;;  %v3755_v3 = vpop.f32.mrf.mxu1  ;;  %v6081_v15 = vor.u32 %v6660_v10, %v6080_v8 }
 0x315   :  { %3995 = vmatpush.bf16.msra.mxu0 %v5409_v9  ;;  %3986 = vmatmul.bf16.vlgmr.msrb.gmra.mxu3 %v9079_v39  ;;  %v3741_v9 = vadd.f32 %v3740_v41, %v2514_v18 }
 0x316   :  { %4021 = vmatpush.bf16.msra.mxu2 %v5857_v27  ;;  %4030 = vmatpush.bf16.msra.mxu3 %v6193_v28  ;;  %v6639_v27 = vld [vmem:[%s9995_s8 + $0x570] sm:$0xf0] }
 0x317   :  { %4010 = vmatpush.bf16.msra.mxu1 %v5577_v58  ;;  %v3727_v12 = vpop.f32.mrf.mxu3  ;;  %v3754_v30 = vadd.f32 %v9902_v43, %v3741_v9 }
 0x318   :  { %v3728_v44 = vadd.f32 %v3727_v12, %v3715_v11  ;;  %v3766_v14 = vpop.f32.mrf.mxu2 }
 0x319   :  { %3996 = vmatpush.bf16.msra.mxu0 %v5381_v53  ;;  %v3742_v48 = vpop.f32.mrf.mxu0  ;;  %v3767_v35 = vadd.f32 %v3766_v14, %v3754_v30 }
 0x31a   :  { %4022 = vmatpush.bf16.msra.mxu2 %v5829_v46  ;;  %4031 = vmatpush.bf16.msra.mxu3 %v6165_v60  ;;  %v6194_v17 = vmul.f32 -1.442695, %v3728_v44 }
 0x31b   :  { %4011 = vmatpush.bf16.msra.mxu1 %v5549_v50  ;;  %v2515_v50 = vperm.slane %v9875_v24, 2 }
 0x31c   :  { %6694 = vpow2.f32 %v6194_v17 }
 0x31d   :  { %3997 = vmatpush.bf16.msra.mxu0 %v5353_v54  ;;  %v3805_v19 = vpop.f32.mrf.mxu1 }
 0x31e   :  { %4023 = vmatpush.bf16.msra.mxu2 %v5801_v56  ;;  %4032 = vmatpush.bf16.msra.mxu3 %v6137_v59 }
 0x31f   :  { %4012 = vmatmul.bf16.vlgmr.msra.gmra.mxu1 %v8966_v61  ;;  %v6052_v61 = vld [vmem:[%s9995_s8 + $0x5c8] sm:$0xf]  ;;  %v3729_v25 = vpop.f32.mrf.mxu3 }
 0x320   :  { %v6053_v20 = vor.u32 %v6653_v16, %v6052_v61  ;;  %v2516_v16 = vperm.slane %v9875_v24, 3 }
 0x321   :  { %3998 = vmatpush.bf16.msra.mxu0 %v5325_v4  ;;  %v3792_v28 = vpop.f32.mrf.mxu0 }
 0x322   :  { %4024 = vmatpush.bf16.msra.mxu2 %v5773_v6  ;;  %4033 = vmatpush.bf16.msra.mxu3 %v6109_v7  ;;  %v6695_v29 = vpop.eup %6694  ;;  %v3793_v40 = vadd.f32 %v3792_v28, %v2515_v50 }
 0x323   :  { %v4064_v58 = vadd.f32 1.0, %v6695_v29 }
 0x324   :  { %3999 = vmatmul.bf16.vlgmr.msra.gmra.mxu0 %v8993_v13  ;;  %v3768_v13 = vpop.f32.mrf.mxu2  ;;  %v3806_v59 = vadd.f32 %v3805_v19, %v3793_v40 }
 0x325   :  { %4025 = vmatmul.bf16.vlgmr.msra.gmra.mxu2 %v9001_v57  ;;  %v5996_v57 = vld [vmem:[%s9995_s8 + $0x558] sm:$0xf]  ;;  %v3807_v31 = vpop.f32.mrf.mxu1  ;;  %6696 = vrcp.f32 %v4064_v58  ;;  %v4082_v1 = vand.u32 2147483648, %v4064_v58  ;;  %vm4076_vm5 = vweird.f32 %v4064_v58  ;;  %v4080_v4 = vand.u32 2147483647, %v4064_v58 }
 0x326   :  { %4034 = vmatpush.bf16.msra.mxu3 %v6081_v15  ;;  %v5997_v33 = vor.u32 %v6639_v27, %v5996_v57 }
 0x327   :  { %v3779_v36 = vpop.f32.mrf.mxu3  ;;  %v4083_v10 = vor.u32 1.1754944e-38, %v4082_v1  ;;  %vm4081_vm10 = vcmp.eq.f32.partialorder %v4080_v4, 8.507059e+37 }
 0x328   :  { %v3780_v37 = vadd.f32 %v3779_v36, %v3767_v35 }
 0x329   :  { %v3794_v42 = vpop.f32.mrf.mxu0 }
 0x32a   :  { %4035 = vmatpush.bf16.msra.mxu3 %v6053_v20  ;;  %v6195_v38 = vmul.f32 -1.442695, %v3780_v37 }
 0x32b   :  { %v6697_v46 = vpop.eup %6696 }
 0x32c   :  { %v3818_v21 = vpop.f32.mrf.mxu2  ;;  %6698 = vpow2.f32 %v6195_v38  ;;  %v4072_v43 = vmul.f32 %v6697_v46, %v4064_v58  ;;  %vm4077_vm3 = vweird.f32 %v6697_v46 }
 0x32d   :  { %v3819_v45 = vadd.f32 %v3818_v21, %v3806_v59  ;;  %vm4078_vm6 = vmor %vm4076_vm5, %vm4077_vm3 }
 0x32e   :  { %4036 = vmatpush.bf16.msra.mxu3 %v6025_v26  ;;  %v4073_v49 = vsub.f32 1.0, %v4072_v43 }
 0x32f   :  { %v3781_v53 = vpop.f32.mrf.mxu3 }
 0x330   :  { %v4074_v54 = vmul.f32 %v6697_v46, %v4073_v49 }
 0x332   :  { %4037 = vmatpush.bf16.msra.mxu3 %v5997_v33  ;;  %v6699_v32 = vpop.eup %6698  ;;  %v4075_v62 = vadd.f32 %v6697_v46, %v4074_v54 }
 0x333   :  { %v4065_v47 = vadd.f32 1.0, %v6699_v32 }
 0x334   :  { %v3820_v60 = vpop.f32.mrf.mxu2  ;;  %v4079_v7 = vsel %vm4078_vm6, %v6697_v46, %v4075_v62 }
 0x335   :  { %4038 = vmatmul.bf16.vlgmr.msra.gmra.mxu3 %v9079_v39  ;;  %6700 = vrcp.f32 %v4065_v47  ;;  %v4097_v63 = vand.u32 2147483648, %v4065_v47  ;;  %v4095_v2 = vand.u32 2147483647, %v4065_v47  ;;  %vm4091_vm7 = vweird.f32 %v4065_v47 }
 0x336   :  { %v4084_v14 = vsel %vm4081_vm10, %v4083_v10, %v4079_v7  ;;  %v2518_v7 = vperm.slane %v9875_v24, 5 }
 0x337   :  { %v4098_v8 = vor.u32 1.1754944e-38, %v4097_v63  ;;  %vm4096_vm9 = vcmp.eq.f32.partialorder %v4095_v2, 8.507059e+37 }
 0x338   :  { %v3831_v34 = vpop.f32.mrf.mxu3 }
 0x339   :  { %v3832_v6 = vadd.f32 %v3831_v34, %v3819_v45 }
 0x33b   :  { %v6701_v52 = vpop.eup %6700  ;;  %v6196_v15 = vmul.f32 -1.442695, %v3832_v6 }
 0x33c   :  { %v4087_v55 = vmul.f32 %v6701_v52, %v4065_v47  ;;  %vm4092_vm4 = vweird.f32 %v6701_v52 }
 0x33d   :  { %v3857_v51 = vpop.f32.mrf.mxu1  ;;  %vm4093_vm8 = vmor %vm4091_vm7, %vm4092_vm4  ;;  %6702 = vpow2.f32 %v6196_v15 }
 0x33e   :  { %v4088_v56 = vsub.f32 1.0, %v4087_v55 }
 0x340   :  { %v4089_v0 = vmul.f32 %v6701_v52, %v4088_v56  ;;  %v3833_v41 = vpop.f32.mrf.mxu3 }
 0x341   :  { %v3844_v39 = vpop.f32.mrf.mxu0 }
 0x342   :  { %v4090_v5 = vadd.f32 %v6701_v52, %v4089_v0  ;;  %v3845_v18 = vadd.f32 %v3844_v39, %v2516_v16 }
 0x343   :  { %v6703_v19 = vpop.eup %6702 }
 0x344   :  { %v4094_v11 = vsel %vm4093_vm8, %v6701_v52, %v4090_v5  ;;  %v3858_v20 = vadd.f32 %v3857_v51, %v3845_v18  ;;  %v4066_v22 = vadd.f32 1.0, %v6703_v19  ;;  %v2517_v51 = vperm.slane %v9875_v24, 4 }
 0x345   :  { %v3859_v3 = vpop.f32.mrf.mxu1  ;;  %v4099_v44 = vsel %vm4096_vm9, %v4098_v8, %v4094_v11 }
 0x346   :  { %v4176_v61 = vpack.c.bf16 %v4099_v44, %v4084_v14  ;;  %6704 = vrcp.f32 %v4066_v22  ;;  %vm4106_vm12 = vweird.f32 %v4066_v22  ;;  %v4112_v60 = vand.u32 2147483648, %v4066_v22 }
 0x347   :  { %v4110_v47 = vand.u32 2147483647, %v4066_v22 }
 0x348   :  { %v3870_v12 = vpop.f32.mrf.mxu2  ;;  %4180 = vst [vmem:[#allocation2] sm:$0xff] %v4176_v61  ;;  %v4113_v52 = vor.u32 1.1754944e-38, %v4112_v60 }
 0x349   :  { %v3846_v48 = vpop.f32.mrf.mxu0  ;;  %v3871_v23 = vadd.f32 %v3870_v12, %v3858_v20  ;;  %vm4111_vm1 = vcmp.eq.f32.partialorder %v4110_v47, 8.507059e+37 }
 0x34c   :  { %v6705_v27 = vpop.eup %6704 }
 0x34d   :  { %v4102_v31 = vmul.f32 %v6705_v27, %v4066_v22  ;;  %vm4107_vm11 = vweird.f32 %v6705_v27 }
 0x34e   :  { %vm4108_vm14 = vmor %vm4106_vm12, %vm4107_vm11 }
 0x34f   :  { %v4103_v36 = vsub.f32 1.0, %v4102_v31 }
 0x350   :  { %v3872_v17 = vpop.f32.mrf.mxu2 }
 0x351   :  { %v4104_v37 = vmul.f32 %v6705_v27, %v4103_v36 }
 0x353   :  { %v4105_v46 = vadd.f32 %v6705_v27, %v4104_v37 }
 0x355   :  { %v4109_v50 = vsel %vm4108_vm14, %v6705_v27, %v4105_v46 }
 0x356   :  { %v4114_v59 = vsel %vm4111_vm1, %v4113_v52, %v4109_v50 }
 0x358   :  { %v3883_v25 = vpop.f32.mrf.mxu3 }
 0x359   :  { %v3884_v9 = vadd.f32 %v3883_v25, %v3871_v23 }
 0x35b   :  { %v6197_v26 = vmul.f32 -1.442695, %v3884_v9 }
 0x35d   :  { %v3909_v13 = vpop.f32.mrf.mxu1  ;;  %6706 = vpow2.f32 %v6197_v26 }
 0x360   :  { %v3885_v28 = vpop.f32.mrf.mxu3 }
 0x361   :  { %v3896_v57 = vpop.f32.mrf.mxu0 }
 0x362   :  { %v3897_v63 = vadd.f32 %v3896_v57, %v2517_v51  ;;  %v2519_v57 = vperm.slane %v9875_v24, 6 }
 0x363   :  { %v6707_v30 = vpop.eup %6706 }
 0x364   :  { %v4067_v33 = vadd.f32 1.0, %v6707_v30  ;;  %v3910_v0 = vadd.f32 %v3909_v13, %v3897_v63 }
 0x365   :  { %v3911_v29 = vpop.f32.mrf.mxu1 }
 0x366   :  { %6708 = vrcp.f32 %v4067_v33  ;;  %v4127_v32 = vand.u32 2147483648, %v4067_v33  ;;  %v4125_v49 = vand.u32 2147483647, %v4067_v33  ;;  %vm4121_vm15 = vweird.f32 %v4067_v33 }
 0x368   :  { %v3922_v58 = vpop.f32.mrf.mxu2  ;;  %v4128_v54 = vor.u32 1.1754944e-38, %v4127_v32  ;;  %vm4126_vm2 = vcmp.eq.f32.partialorder %v4125_v49, 8.507059e+37 }
 0x369   :  { %v3898_v35 = vpop.f32.mrf.mxu0  ;;  %v3923_v2 = vadd.f32 %v3922_v58, %v3910_v0 }
 0x36c   :  { %v6709_v21 = vpop.eup %6708 }
 0x36d   :  { %v4117_v38 = vmul.f32 %v6709_v21, %v4067_v33  ;;  %vm4122_vm13 = vweird.f32 %v6709_v21 }
 0x36e   :  { %vm4123_vm0 = vmor %vm4121_vm15, %vm4122_vm13  ;;  %vm4183_vm15 = vcmask 125952  }
 0x36f   :  { %v4118_v53 = vsub.f32 1.0, %v4117_v38 }
 0x370   :  { %v3924_v42 = vpop.f32.mrf.mxu2 }
 0x371   :  { %v4119_v43 = vmul.f32 %v6709_v21, %v4118_v53 }
 0x373   :  { %v4120_v34 = vadd.f32 %v6709_v21, %v4119_v43 }
 0x375   :  { %v4124_v55 = vsel %vm4123_vm0, %v6709_v21, %v4120_v34 }
 0x376   :  { %v4129_v39 = vsel %vm4126_vm2, %v4128_v54, %v4124_v55 }
 0x377   :  { %v4177_v62 = vpack.c.bf16 %v4129_v39, %v4114_v59 }
 0x378   :  { %v3935_v40 = vpop.f32.mrf.mxu3 }
 0x379   :  { %4181 = vst [vmem:[#allocation2 + $0x8] sm:$0xff] %v4177_v62  ;;  %v3936_v3 = vadd.f32 %v3935_v40, %v3923_v2 }
 0x37b   :  { %v6198_v5 = vmul.f32 -1.442695, %v3936_v3 }
 0x37d   :  { %v3961_v56 = vpop.f32.mrf.mxu1  ;;  %6710 = vpow2.f32 %v6198_v5 }
 0x380   :  { %v3937_v1 = vpop.f32.mrf.mxu3 }
 0x381   :  { %v3948_v41 = vpop.f32.mrf.mxu0 }
 0x382   :  { %v3949_v10 = vadd.f32 %v3948_v41, %v2518_v7 }
 0x383   :  { %v6711_v11 = vpop.eup %6710 }
 0x384   :  { %v3962_v12 = vadd.f32 %v3961_v56, %v3949_v10  ;;  %v4068_v44 = vadd.f32 1.0, %v6711_v11 }
 0x385   :  { %v3963_v45 = vpop.f32.mrf.mxu1 }
 0x386   :  { %6712 = vrcp.f32 %v4068_v44  ;;  %vm4136_vm4 = vweird.f32 %v4068_v44  ;;  %v4142_v35 = vand.u32 2147483648, %v4068_v44  ;;  %v4140_v21 = vand.u32 2147483647, %v4068_v44 }
 0x388   :  { %v3974_v4 = vpop.f32.mrf.mxu2  ;;  %v4143_v60 = vor.u32 1.1754944e-38, %v4142_v35  ;;  %vm4141_vm9 = vcmp.eq.f32.partialorder %v4140_v21, 8.507059e+37 }
 0x389   :  { %v3950_v6 = vpop.f32.mrf.mxu0  ;;  %v3975_v14 = vadd.f32 %v3974_v4, %v3962_v12 }
 0x38c   :  { %v6713_v18 = vpop.eup %6712 }
 0x38d   :  { %v4132_v23 = vmul.f32 %v6713_v18, %v4068_v44  ;;  %vm4137_vm3 = vweird.f32 %v6713_v18 }
 0x38e   :  { %vm4138_vm6 = vmor %vm4136_vm4, %vm4137_vm3 }
 0x38f   :  { %v4133_v26 = vsub.f32 1.0, %v4132_v23 }
 0x390   :  { %v3976_v8 = vpop.f32.mrf.mxu2 }
 0x391   :  { %v4134_v27 = vmul.f32 %v6713_v18, %v4133_v26 }
 0x393   :  { %v4135_v58 = vadd.f32 %v6713_v18, %v4134_v27 }
 0x395   :  { %v4139_v53 = vsel %vm4138_vm6, %v6713_v18, %v4135_v58 }
 0x396   :  { %v4144_v50 = vsel %vm4141_vm9, %v4143_v60, %v4139_v53 }
 0x398   :  { %v3987_v15 = vpop.f32.mrf.mxu3 }
 0x399   :  { %v3988_v48 = vadd.f32 %v3987_v15, %v3975_v14 }
 0x39b   :  { %v6199_v16 = vmul.f32 -1.442695, %v3988_v48 }
 0x39c   :  { %v4013_v61 = vpop.f32.mrf.mxu1 }
 0x39d   :  { %6714 = vpow2.f32 %v6199_v16 }
 0x3a0   :  { %v3989_v19 = vpop.f32.mrf.mxu3 }
 0x3a1   :  { %v4000_v17 = vpop.f32.mrf.mxu0 }
 0x3a2   :  { %v4001_v31 = vadd.f32 %v4000_v17, %v2519_v57 }
 0x3a3   :  { %v6715_v22 = vpop.eup %6714 }
 0x3a4   :  { %v4015_v20 = vpop.f32.mrf.mxu1  ;;  %v4069_v25 = vadd.f32 1.0, %v6715_v22  ;;  %v4014_v42 = vadd.f32 %v4013_v61, %v4001_v31 }
 0x3a6   :  { %6716 = vrcp.f32 %v4069_v25  ;;  %v4157_v36 = vand.u32 2147483648, %v4069_v25  ;;  %v4155_v38 = vand.u32 2147483647, %v4069_v25  ;;  %vm4151_vm7 = vweird.f32 %v4069_v25 }
 0x3a8   :  { %v4026_v9 = vpop.f32.mrf.mxu2  ;;  %v4158_v32 = vor.u32 1.1754944e-38, %v4157_v36  ;;  %vm4156_vm10 = vcmp.eq.f32.partialorder %v4155_v38, 8.507059e+37 }
 0x3a9   :  { %v4002_v13 = vpop.f32.mrf.mxu0  ;;  %v4027_v24 = vadd.f32 %v4026_v9, %v4014_v42 }
 0x3ac   :  { %v6717_v28 = vpop.eup %6716 }
 0x3ad   :  { %v4147_v29 = vmul.f32 %v6717_v28, %v4069_v25  ;;  %vm4152_vm5 = vweird.f32 %v6717_v28 }
 0x3ae   :  { %vm4153_vm8 = vmor %vm4151_vm7, %vm4152_vm5 }
 0x3af   :  { %v4148_v33 = vsub.f32 1.0, %v4147_v29 }
 0x3b0   :  { %v4028_v30 = vpop.f32.mrf.mxu2 }
 0x3b1   :  { %v4149_v37 = vmul.f32 %v6717_v28, %v4148_v33 }
 0x3b3   :  { %v4150_v46 = vadd.f32 %v6717_v28, %v4149_v37 }
 0x3b5   :  { %v4154_v47 = vsel %vm4153_vm8, %v6717_v28, %v4150_v46 }
 0x3b6   :  { %v4159_v34 = vsel %vm4156_vm10, %v4158_v32, %v4154_v47 }
 0x3b7   :  { %v4178_v51 = vpack.c.bf16 %v4159_v34, %v4144_v50 }
 0x3b8   :  { %v4039_v43 = vpop.f32.mrf.mxu3 }
 0x3b9   :  { %v4040_v49 = vadd.f32 %v4039_v43, %v4027_v24  ;;  %4182 = vst [vmem:[#allocation2 + $0x10] sm:$0xff] %v4178_v51 }
 0x3bb   :  { %v6200_v52 = vmul.f32 -1.442695, %v4040_v49 }
 0x3bd   :  { %6718 = vpow2.f32 %v6200_v52 }
 0x3c0   :  { %v4041_v54 = vpop.f32.mrf.mxu3 }
 0x3c3   :  { %v6719_v40 = vpop.eup %6718 }
 0x3c4   :  { %v4070_v55 = vadd.f32 1.0, %v6719_v40 }
 0x3c6   :  { %6720 = vrcp.f32 %v4070_v55  ;;  %v4172_v62 = vand.u32 2147483648, %v4070_v55  ;;  %v4170_v0 = vand.u32 2147483647, %v4070_v55  ;;  %vm4166_vm12 = vweird.f32 %v4070_v55 }
 0x3c8   :  { %v4173_v1 = vor.u32 1.1754944e-38, %v4172_v62  ;;  %vm4171_vm14 = vcmp.eq.f32.partialorder %v4170_v0, 8.507059e+37 }
 0x3cc   :  { %v6721_v56 = vpop.eup %6720 }
 0x3cd   :  { %v4162_v59 = vmul.f32 %v6721_v56, %v4070_v55  ;;  %vm4167_vm11 = vweird.f32 %v6721_v56 }
 0x3ce   :  { %vm4168_vm13 = vmor %vm4166_vm12, %vm4167_vm11 }
 0x3cf   :  { %v4163_v39 = vsub.f32 1.0, %v4162_v59 }
 0x3d1   :  { %v4164_v63 = vmul.f32 %v6721_v56, %v4163_v39 }
 0x3d3   :  { %v4165_v41 = vadd.f32 %v6721_v56, %v4164_v63 }
 0x3d5   :  { %v4169_v2 = vsel %vm4168_vm13, %v6721_v56, %v4165_v41 }
 0x3d6   :  { %v4174_v45 = vsel %vm4171_vm14, %v4173_v1, %v4169_v2 }
 0x3d7   :  { %v4179_v3 = vpack.c.bf16 %v4174_v45, %v4174_v45 }
 0x3d9   :  { %4184 = vst.msk [vmem:[#allocation2 + $0x18] sm:$0xf] %vm4183_vm15, %v4179_v3 }
 0x3da   :  { %4197 = dma.vmem_to_hbm [thread:$0]  %s4193_s12, 448, %s4195_s21, [#allocation3]  }
 0x3db   :  { %6794 = dma.done.wait [#allocation3], 448  }
 0x3dc   :  { %6795 = vsyncadd [#allocation3], 4294966848 }
 0x3dd   :  { %6796 = dma.done.wait [#allocation5], 256  }
 0x3de   :  { %6797 = vsyncadd [#allocation5], 4294967040 }
 0x3df   :  { %4232 = vsyncpa [#allocation3], 1 }
 0x3e0   :  { %4233 = vsyncpa [#allocation5], 1 }

</bundles_post_ra>
